<compile_context>
chip_gen: v5e
topology: v5e:2x2
jax: 0.10.0
libtpu: 0.0.40
codegen_flags: <defaults>
</compile_context>

<pallas_src>
import functools

import jax
import jax.numpy as jnp
from jax import lax
from jax.experimental import pallas as pl
from jax.experimental.pallas import tpu as pltpu


def _round_up(x, m):
    return (x + m - 1) // m * m


def _rbm_cdk_kernel(v_ref, w_ref, hb_ref, vb_ref, vk_ref, *,
                    cd_k, seed, draw_stride):
    """One batch block of the CD-k Gibbs chain.

    v_ref  : (TB, VP) f32   visible input block
    w_ref  : (HP, VP) bf16  weights, same (n_hidden, n_visible) layout as torch
    hb_ref : (1, HP)  f32   hidden bias   (padded entries ~ -1e9)
    vb_ref : (1, VP)  f32   visible bias  (padded entries ~ -1e9)
    vk_ref : (TB, VP) f32   output: visible sample after cd_k Gibbs steps
    """
    pid = pl.program_id(0)

    W = w_ref[...]          # (HP, VP) bf16 -- stored layout, never transposed
    hb = hb_ref[...]        # (1, HP) f32
    vb = vb_ref[...]        # (1, VP) f32

    n_draws = 1 + 2 * cd_k
    seed_mix = (int(seed) * 0x9E3779B9) & 0xFFFFFFFF   # python-int, folded

    def uniform(shape, draw_idx):
        # Counter-based PRNG: a unique 32-bit counter per (block, draw,
        # element), pushed through a splitmix32-style mixer twice.  Pure VPU
        # integer ops -> works on Mosaic and in interpret mode.
        rows = lax.broadcasted_iota(jnp.int32, shape, 0)
        cols = lax.broadcasted_iota(jnp.int32, shape, 1)
        base = pid * jnp.int32(n_draws * draw_stride) + jnp.int32(draw_idx * draw_stride)
        ctr = (base + rows * jnp.int32(shape[1]) + cols).astype(jnp.uint32)
        x = ctr + jnp.uint32(seed_mix)
        for _ in range(2):
            x = x ^ (x >> jnp.uint32(16))
            x = x * jnp.uint32(0x7FEB352D)
            x = x ^ (x >> jnp.uint32(15))
            x = x * jnp.uint32(0x846CA68B)
            x = x ^ (x >> jnp.uint32(16))
        # 24-bit uniform in [0, 1)
        u24 = (x >> jnp.uint32(8)).astype(jnp.int32)
        return u24.astype(jnp.float32) * jnp.float32(1.0 / (1 << 24))

    def bernoulli(p, draw_idx):
        return (uniform(p.shape, draw_idx) < p).astype(jnp.float32)

    def v_to_h_p(v_bf):     # (TB, VP) bf16 -> (TB, HP) f32 probabilities
        logits = lax.dot_general(
            v_bf, W, (((1,), (1,)), ((), ())),       # contract V dims: v @ W.T
            preferred_element_type=jnp.float32) + hb
        return jax.nn.sigmoid(logits)

    def h_to_v_p(h_bf):     # (TB, HP) bf16 -> (TB, VP) f32 probabilities
        logits = jnp.dot(h_bf, W, preferred_element_type=jnp.float32) + vb
        return jax.nn.sigmoid(logits)

    v0_bf = v_ref[...].astype(jnp.bfloat16)
    h = bernoulli(v_to_h_p(v0_bf), 0).astype(jnp.bfloat16)

    v_k = None
    for k in range(cd_k):   # cd_k is static -> unrolled (small tiles, cd_k<=~10)
        v_k = bernoulli(h_to_v_p(h), 1 + 2 * k)
        h = bernoulli(v_to_h_p(v_k.astype(jnp.bfloat16)), 2 + 2 * k).astype(jnp.bfloat16)

    vk_ref[...] = v_k


def rbm_forward(v, W, h_bias, v_bias, *, cd_k=10, seed=0, block_b=256):
    """Returns (v, v_k) like RBM.forward(v, CD_k)."""
    assert cd_k >= 1, "CD_k must be >= 1 (PyTorch forward would also fail for 0)"
    B, V = v.shape
    H, V2 = W.shape
    assert V2 == V and h_bias.shape == (H,) and v_bias.shape == (V,)

    # Lane-dense padding: feature dims to multiples of 128, batch to block size.
    VP = _round_up(V, 128)
    HP = _round_up(H, 128)
    TB = min(block_b, _round_up(B, 8))
    BP = _round_up(B, TB)

    NEG = jnp.float32(-1e9)   # sigmoid(-1e9) == 0 -> padded units always sample 0

    W_p = jnp.zeros((HP, VP), jnp.bfloat16).at[:H, :V].set(W.astype(jnp.bfloat16))
    hb_p = jnp.full((1, HP), NEG, jnp.float32).at[0, :H].set(h_bias.astype(jnp.float32))
    vb_p = jnp.full((1, VP), NEG, jnp.float32).at[0, :V].set(v_bias.astype(jnp.float32))
    v_p = jnp.zeros((BP, VP), jnp.float32).at[:B, :V].set(v.astype(jnp.float32))

    kernel = functools.partial(
        _rbm_cdk_kernel, cd_k=int(cd_k), seed=int(seed),
        draw_stride=TB * max(HP, VP))

    vk_p = pl.pallas_call(
        kernel,
        grid=(BP // TB,),
        out_shape=jax.ShapeDtypeStruct((BP, VP), jnp.float32),
        in_specs=[
            pl.BlockSpec((TB, VP), lambda i: (i, 0)),   # v : blocked over batch
            pl.BlockSpec((HP, VP), lambda i: (0, 0)),   # W : replicated
            pl.BlockSpec((1, HP), lambda i: (0, 0)),    # h_bias
            pl.BlockSpec((1, VP), lambda i: (0, 0)),    # v_bias
        ],
        out_specs=pl.BlockSpec((TB, VP), lambda i: (i, 0)),
        compiler_params=pltpu.CompilerParams(
            dimension_semantics=("parallel",)),
    )(v_p, W_p, hb_p, vb_p)

    v_k = vk_p[:B, :V]
    # The module returns the input `v` unchanged -> no need to route it
    # through the kernel (saves a full VMEM store + HBM writeback).
    return v, v_k


if __name__ == "__main__":
    # Module defaults: n_visible=256, n_hidden=64. Small batch for the demo.
    # (For real workloads use batch >= 128 per block to fill the MXU rows.)
    B, V, H = 8, 256, 64
    CD_K = 10

    key = jax.random.PRNGKey(0)
    k_w, k_v = jax.random.split(key)

    # Deterministic init mirroring torch: W ~ U(-1/(V+H), 1/(V+H)), biases = 0.
    bound = 1.0 / (V + H)
    W = jax.random.uniform(k_w, (H, V), jnp.float32, minval=-bound, maxval=bound)
    h_bias = jnp.zeros((H,), jnp.float32)
    v_bias = jnp.zeros((V,), jnp.float32)

    # Binary visible input (typical RBM input).
    v = jax.random.bernoulli(k_v, 0.5, (B, V)).astype(jnp.float32)

    v_out, v_k = rbm_forward(v, W, h_bias, v_bias, cd_k=CD_K, seed=0)
    jax.block_until_ready((v_out, v_k))

    assert v_out.shape == (B, V) and v_k.shape == (B, V)
    assert bool(jnp.all((v_k == 0.0) | (v_k == 1.0)))   # samples are binary
    assert bool(jnp.all(v_out == v))                    # first return is v unchanged

    print("KERNEL_OK")
</pallas_src>

<mosaic_0001>
module attributes {stable_mosaic.version = 11 : i64} {
  func.func @_rbm_cdk_kernel(%arg0: i32, %arg1: memref<8x256xf32, #tpu.memory_space<vmem>>, %arg2: memref<128x256xbf16, #tpu.memory_space<vmem>>, %arg3: memref<1x128xf32, #tpu.memory_space<vmem>>, %arg4: memref<1x256xf32, #tpu.memory_space<vmem>>, %arg5: memref<8x256xf32, #tpu.memory_space<vmem>>) attributes {dimension_semantics = [#tpu.dimension_semantics<parallel>], iteration_bounds = array<i64: 1>, scalar_prefetch = 0 : i64, scratch_operands = 0 : i64, tpu.core_type = #tpu.core_type<tc>, window_params = [{transform_indices = @transform_0, window_bounds = array<i64: 8, 256>}, {pipeline_mode = #tpu.pipeline_mode<synchronous>, transform_indices = @transform_1, window_bounds = array<i64: 128, 256>}, {pipeline_mode = #tpu.pipeline_mode<synchronous>, transform_indices = @transform_2, window_bounds = array<i64: 1, 128>}, {pipeline_mode = #tpu.pipeline_mode<synchronous>, transform_indices = @transform_3, window_bounds = array<i64: 1, 256>}, {transform_indices = @transform_4, window_bounds = array<i64: 8, 256>}]} {
    %c0 = arith.constant 0 : index
    %c0_0 = arith.constant 0 : index
    %0 = vector.load %arg2[%c0, %c0_0] : memref<128x256xbf16, #tpu.memory_space<vmem>>, vector<128x256xbf16>
    %c0_1 = arith.constant 0 : index
    %c0_2 = arith.constant 0 : index
    %1 = vector.load %arg3[%c0_1, %c0_2] : memref<1x128xf32, #tpu.memory_space<vmem>>, vector<1x128xf32>
    %c0_3 = arith.constant 0 : index
    %c0_4 = arith.constant 0 : index
    %2 = vector.load %arg4[%c0_3, %c0_4] : memref<1x256xf32, #tpu.memory_space<vmem>>, vector<1x256xf32>
    %c0_5 = arith.constant 0 : index
    %c0_6 = arith.constant 0 : index
    %3 = vector.load %arg1[%c0_5, %c0_6] : memref<8x256xf32, #tpu.memory_space<vmem>>, vector<8x256xf32>
    %4 = arith.truncf %3 : vector<8x256xf32> to vector<8x256xbf16>
    %cst = arith.constant dense<0.000000e+00> : vector<8x128xf32>
    %5 = tpu.matmul %4, %0, %cst {dimension_numbers = #tpu.dot_dimension_numbers<[1], [1], [0], [0], [0, 0, 1, 0], [], []>} : vector<8x256xbf16>, vector<128x256xbf16>, vector<8x128xf32> -> vector<8x128xf32>
    %6 = vector.broadcast %1 : vector<1x128xf32> to vector<8x128xf32>
    %7 = arith.addf %5, %6 : vector<8x128xf32>
    %8 = arith.negf %7 : vector<8x128xf32>
    %9 = math.exp %8 : vector<8x128xf32>
    %cst_7 = arith.constant 1.000000e+00 : f32
    %10 = vector.broadcast %cst_7 : f32 to vector<8x128xf32>
    %11 = arith.addf %10, %9 : vector<8x128xf32>
    %12 = arith.divf %10, %11 : vector<8x128xf32>
    %13 = tpu.iota {dimensions = array<i32: 0>} : vector<8x128xi32>
    %14 = tpu.iota {dimensions = array<i32: 1>} : vector<8x128xi32>
    %c43008_i32 = arith.constant 43008 : i32
    %15 = arith.muli %arg0, %c43008_i32 : i32
    %c0_i32 = arith.constant 0 : i32
    %16 = arith.addi %15, %c0_i32 : i32
    %c128_i32 = arith.constant 128 : i32
    %17 = vector.broadcast %c128_i32 : i32 to vector<8x128xi32>
    %18 = arith.muli %13, %17 : vector<8x128xi32>
    %19 = vector.broadcast %16 : i32 to vector<8x128xi32>
    %20 = arith.addi %19, %18 : vector<8x128xi32>
    %21 = arith.addi %20, %14 : vector<8x128xi32>
    %c0_i32_8 = arith.constant 0 : i32
    %22 = vector.broadcast %c0_i32_8 : i32 to vector<8x128xi32>
    %23 = arith.addi %21, %22 : vector<8x128xi32>
    %c16_i32 = arith.constant 16 : i32
    %24 = vector.broadcast %c16_i32 : i32 to vector<8x128xi32>
    %25 = arith.shrui %23, %24 : vector<8x128xi32>
    %26 = arith.xori %23, %25 : vector<8x128xi32>
    %c2146121005_i32 = arith.constant 2146121005 : i32
    %27 = vector.broadcast %c2146121005_i32 : i32 to vector<8x128xi32>
    %28 = arith.muli %26, %27 : vector<8x128xi32>
    %c15_i32 = arith.constant 15 : i32
    %29 = vector.broadcast %c15_i32 : i32 to vector<8x128xi32>
    %30 = arith.shrui %28, %29 : vector<8x128xi32>
    %31 = arith.xori %28, %30 : vector<8x128xi32>
    %c-2073254261_i32 = arith.constant -2073254261 : i32
    %32 = vector.broadcast %c-2073254261_i32 : i32 to vector<8x128xi32>
    %33 = arith.muli %31, %32 : vector<8x128xi32>
    %c16_i32_9 = arith.constant 16 : i32
    %34 = vector.broadcast %c16_i32_9 : i32 to vector<8x128xi32>
    %35 = arith.shrui %33, %34 : vector<8x128xi32>
    %36 = arith.xori %33, %35 : vector<8x128xi32>
    %c16_i32_10 = arith.constant 16 : i32
    %37 = vector.broadcast %c16_i32_10 : i32 to vector<8x128xi32>
    %38 = arith.shrui %36, %37 : vector<8x128xi32>
    %39 = arith.xori %36, %38 : vector<8x128xi32>
    %c2146121005_i32_11 = arith.constant 2146121005 : i32
    %40 = vector.broadcast %c2146121005_i32_11 : i32 to vector<8x128xi32>
    %41 = arith.muli %39, %40 : vector<8x128xi32>
    %c15_i32_12 = arith.constant 15 : i32
    %42 = vector.broadcast %c15_i32_12 : i32 to vector<8x128xi32>
    %43 = arith.shrui %41, %42 : vector<8x128xi32>
    %44 = arith.xori %41, %43 : vector<8x128xi32>
    %c-2073254261_i32_13 = arith.constant -2073254261 : i32
    %45 = vector.broadcast %c-2073254261_i32_13 : i32 to vector<8x128xi32>
    %46 = arith.muli %44, %45 : vector<8x128xi32>
    %c16_i32_14 = arith.constant 16 : i32
    %47 = vector.broadcast %c16_i32_14 : i32 to vector<8x128xi32>
    %48 = arith.shrui %46, %47 : vector<8x128xi32>
    %49 = arith.xori %46, %48 : vector<8x128xi32>
    %c8_i32 = arith.constant 8 : i32
    %50 = vector.broadcast %c8_i32 : i32 to vector<8x128xi32>
    %51 = arith.shrui %49, %50 : vector<8x128xi32>
    %52 = arith.sitofp %51 : vector<8x128xi32> to vector<8x128xf32>
    %cst_15 = arith.constant 5.96046448E-8 : f32
    %53 = vector.broadcast %cst_15 : f32 to vector<8x128xf32>
    %54 = arith.mulf %52, %53 : vector<8x128xf32>
    %55 = arith.cmpf olt, %54, %12 : vector<8x128xf32>
    %56 = arith.extui %55 : vector<8x128xi1> to vector<8x128xi32>
    %57 = arith.sitofp %56 : vector<8x128xi32> to vector<8x128xf32>
    %58 = arith.truncf %57 : vector<8x128xf32> to vector<8x128xbf16>
    %cst_16 = arith.constant dense<0.000000e+00> : vector<8x256xf32>
    %59 = tpu.matmul %58, %0, %cst_16 {dimension_numbers = #tpu.dot_dimension_numbers<[1], [0], [0], [1], [0, 0, 1, 1], [], []>} : vector<8x128xbf16>, vector<128x256xbf16>, vector<8x256xf32> -> vector<8x256xf32>
    %60 = vector.broadcast %2 : vector<1x256xf32> to vector<8x256xf32>
    %61 = arith.addf %59, %60 : vector<8x256xf32>
    %62 = arith.negf %61 : vector<8x256xf32>
    %63 = math.exp %62 : vector<8x256xf32>
    %cst_17 = arith.constant 1.000000e+00 : f32
    %64 = vector.broadcast %cst_17 : f32 to vector<8x256xf32>
    %65 = arith.addf %64, %63 : vector<8x256xf32>
    %66 = arith.divf %64, %65 : vector<8x256xf32>
    %67 = tpu.iota {dimensions = array<i32: 0>} : vector<8x256xi32>
    %68 = tpu.iota {dimensions = array<i32: 1>} : vector<8x256xi32>
    %c43008_i32_18 = arith.constant 43008 : i32
    %69 = arith.muli %arg0, %c43008_i32_18 : i32
    %c2048_i32 = arith.constant 2048 : i32
    %70 = arith.addi %69, %c2048_i32 : i32
    %c256_i32 = arith.constant 256 : i32
    %71 = vector.broadcast %c256_i32 : i32 to vector<8x256xi32>
    %72 = arith.muli %67, %71 : vector<8x256xi32>
    %73 = vector.broadcast %70 : i32 to vector<8x256xi32>
    %74 = arith.addi %73, %72 : vector<8x256xi32>
    %75 = arith.addi %74, %68 : vector<8x256xi32>
    %c0_i32_19 = arith.constant 0 : i32
    %76 = vector.broadcast %c0_i32_19 : i32 to vector<8x256xi32>
    %77 = arith.addi %75, %76 : vector<8x256xi32>
    %c16_i32_20 = arith.constant 16 : i32
    %78 = vector.broadcast %c16_i32_20 : i32 to vector<8x256xi32>
    %79 = arith.shrui %77, %78 : vector<8x256xi32>
    %80 = arith.xori %77, %79 : vector<8x256xi32>
    %c2146121005_i32_21 = arith.constant 2146121005 : i32
    %81 = vector.broadcast %c2146121005_i32_21 : i32 to vector<8x256xi32>
    %82 = arith.muli %80, %81 : vector<8x256xi32>
    %c15_i32_22 = arith.constant 15 : i32
    %83 = vector.broadcast %c15_i32_22 : i32 to vector<8x256xi32>
    %84 = arith.shrui %82, %83 : vector<8x256xi32>
    %85 = arith.xori %82, %84 : vector<8x256xi32>
    %c-2073254261_i32_23 = arith.constant -2073254261 : i32
    %86 = vector.broadcast %c-2073254261_i32_23 : i32 to vector<8x256xi32>
    %87 = arith.muli %85, %86 : vector<8x256xi32>
    %c16_i32_24 = arith.constant 16 : i32
    %88 = vector.broadcast %c16_i32_24 : i32 to vector<8x256xi32>
    %89 = arith.shrui %87, %88 : vector<8x256xi32>
    %90 = arith.xori %87, %89 : vector<8x256xi32>
    %c16_i32_25 = arith.constant 16 : i32
    %91 = vector.broadcast %c16_i32_25 : i32 to vector<8x256xi32>
    %92 = arith.shrui %90, %91 : vector<8x256xi32>
    %93 = arith.xori %90, %92 : vector<8x256xi32>
    %c2146121005_i32_26 = arith.constant 2146121005 : i32
    %94 = vector.broadcast %c2146121005_i32_26 : i32 to vector<8x256xi32>
    %95 = arith.muli %93, %94 : vector<8x256xi32>
    %c15_i32_27 = arith.constant 15 : i32
    %96 = vector.broadcast %c15_i32_27 : i32 to vector<8x256xi32>
    %97 = arith.shrui %95, %96 : vector<8x256xi32>
    %98 = arith.xori %95, %97 : vector<8x256xi32>
    %c-2073254261_i32_28 = arith.constant -2073254261 : i32
    %99 = vector.broadcast %c-2073254261_i32_28 : i32 to vector<8x256xi32>
    %100 = arith.muli %98, %99 : vector<8x256xi32>
    %c16_i32_29 = arith.constant 16 : i32
    %101 = vector.broadcast %c16_i32_29 : i32 to vector<8x256xi32>
    %102 = arith.shrui %100, %101 : vector<8x256xi32>
    %103 = arith.xori %100, %102 : vector<8x256xi32>
    %c8_i32_30 = arith.constant 8 : i32
    %104 = vector.broadcast %c8_i32_30 : i32 to vector<8x256xi32>
    %105 = arith.shrui %103, %104 : vector<8x256xi32>
    %106 = arith.sitofp %105 : vector<8x256xi32> to vector<8x256xf32>
    %cst_31 = arith.constant 5.96046448E-8 : f32
    %107 = vector.broadcast %cst_31 : f32 to vector<8x256xf32>
    %108 = arith.mulf %106, %107 : vector<8x256xf32>
    %109 = arith.cmpf olt, %108, %66 : vector<8x256xf32>
    %110 = arith.extui %109 : vector<8x256xi1> to vector<8x256xi32>
    %111 = arith.sitofp %110 : vector<8x256xi32> to vector<8x256xf32>
    %112 = arith.truncf %111 : vector<8x256xf32> to vector<8x256xbf16>
    %cst_32 = arith.constant dense<0.000000e+00> : vector<8x128xf32>
    %113 = tpu.matmul %112, %0, %cst_32 {dimension_numbers = #tpu.dot_dimension_numbers<[1], [1], [0], [0], [0, 0, 1, 0], [], []>} : vector<8x256xbf16>, vector<128x256xbf16>, vector<8x128xf32> -> vector<8x128xf32>
    %114 = vector.broadcast %1 : vector<1x128xf32> to vector<8x128xf32>
    %115 = arith.addf %113, %114 : vector<8x128xf32>
    %116 = arith.negf %115 : vector<8x128xf32>
    %117 = math.exp %116 : vector<8x128xf32>
    %cst_33 = arith.constant 1.000000e+00 : f32
    %118 = vector.broadcast %cst_33 : f32 to vector<8x128xf32>
    %119 = arith.addf %118, %117 : vector<8x128xf32>
    %120 = arith.divf %118, %119 : vector<8x128xf32>
    %121 = tpu.iota {dimensions = array<i32: 0>} : vector<8x128xi32>
    %122 = tpu.iota {dimensions = array<i32: 1>} : vector<8x128xi32>
    %c43008_i32_34 = arith.constant 43008 : i32
    %123 = arith.muli %arg0, %c43008_i32_34 : i32
    %c4096_i32 = arith.constant 4096 : i32
    %124 = arith.addi %123, %c4096_i32 : i32
    %c128_i32_35 = arith.constant 128 : i32
    %125 = vector.broadcast %c128_i32_35 : i32 to vector<8x128xi32>
    %126 = arith.muli %121, %125 : vector<8x128xi32>
    %127 = vector.broadcast %124 : i32 to vector<8x128xi32>
    %128 = arith.addi %127, %126 : vector<8x128xi32>
    %129 = arith.addi %128, %122 : vector<8x128xi32>
    %c0_i32_36 = arith.constant 0 : i32
    %130 = vector.broadcast %c0_i32_36 : i32 to vector<8x128xi32>
    %131 = arith.addi %129, %130 : vector<8x128xi32>
    %c16_i32_37 = arith.constant 16 : i32
    %132 = vector.broadcast %c16_i32_37 : i32 to vector<8x128xi32>
    %133 = arith.shrui %131, %132 : vector<8x128xi32>
    %134 = arith.xori %131, %133 : vector<8x128xi32>
    %c2146121005_i32_38 = arith.constant 2146121005 : i32
    %135 = vector.broadcast %c2146121005_i32_38 : i32 to vector<8x128xi32>
    %136 = arith.muli %134, %135 : vector<8x128xi32>
    %c15_i32_39 = arith.constant 15 : i32
    %137 = vector.broadcast %c15_i32_39 : i32 to vector<8x128xi32>
    %138 = arith.shrui %136, %137 : vector<8x128xi32>
    %139 = arith.xori %136, %138 : vector<8x128xi32>
    %c-2073254261_i32_40 = arith.constant -2073254261 : i32
    %140 = vector.broadcast %c-2073254261_i32_40 : i32 to vector<8x128xi32>
    %141 = arith.muli %139, %140 : vector<8x128xi32>
    %c16_i32_41 = arith.constant 16 : i32
    %142 = vector.broadcast %c16_i32_41 : i32 to vector<8x128xi32>
    %143 = arith.shrui %141, %142 : vector<8x128xi32>
    %144 = arith.xori %141, %143 : vector<8x128xi32>
    %c16_i32_42 = arith.constant 16 : i32
    %145 = vector.broadcast %c16_i32_42 : i32 to vector<8x128xi32>
    %146 = arith.shrui %144, %145 : vector<8x128xi32>
    %147 = arith.xori %144, %146 : vector<8x128xi32>
    %c2146121005_i32_43 = arith.constant 2146121005 : i32
    %148 = vector.broadcast %c2146121005_i32_43 : i32 to vector<8x128xi32>
    %149 = arith.muli %147, %148 : vector<8x128xi32>
    %c15_i32_44 = arith.constant 15 : i32
    %150 = vector.broadcast %c15_i32_44 : i32 to vector<8x128xi32>
    %151 = arith.shrui %149, %150 : vector<8x128xi32>
    %152 = arith.xori %149, %151 : vector<8x128xi32>
    %c-2073254261_i32_45 = arith.constant -2073254261 : i32
    %153 = vector.broadcast %c-2073254261_i32_45 : i32 to vector<8x128xi32>
    %154 = arith.muli %152, %153 : vector<8x128xi32>
    %c16_i32_46 = arith.constant 16 : i32
    %155 = vector.broadcast %c16_i32_46 : i32 to vector<8x128xi32>
    %156 = arith.shrui %154, %155 : vector<8x128xi32>
    %157 = arith.xori %154, %156 : vector<8x128xi32>
    %c8_i32_47 = arith.constant 8 : i32
    %158 = vector.broadcast %c8_i32_47 : i32 to vector<8x128xi32>
    %159 = arith.shrui %157, %158 : vector<8x128xi32>
    %160 = arith.sitofp %159 : vector<8x128xi32> to vector<8x128xf32>
    %cst_48 = arith.constant 5.96046448E-8 : f32
    %161 = vector.broadcast %cst_48 : f32 to vector<8x128xf32>
    %162 = arith.mulf %160, %161 : vector<8x128xf32>
    %163 = arith.cmpf olt, %162, %120 : vector<8x128xf32>
    %164 = arith.extui %163 : vector<8x128xi1> to vector<8x128xi32>
    %165 = arith.sitofp %164 : vector<8x128xi32> to vector<8x128xf32>
    %166 = arith.truncf %165 : vector<8x128xf32> to vector<8x128xbf16>
    %cst_49 = arith.constant dense<0.000000e+00> : vector<8x256xf32>
    %167 = tpu.matmul %166, %0, %cst_49 {dimension_numbers = #tpu.dot_dimension_numbers<[1], [0], [0], [1], [0, 0, 1, 1], [], []>} : vector<8x128xbf16>, vector<128x256xbf16>, vector<8x256xf32> -> vector<8x256xf32>
    %168 = vector.broadcast %2 : vector<1x256xf32> to vector<8x256xf32>
    %169 = arith.addf %167, %168 : vector<8x256xf32>
    %170 = arith.negf %169 : vector<8x256xf32>
    %171 = math.exp %170 : vector<8x256xf32>
    %cst_50 = arith.constant 1.000000e+00 : f32
    %172 = vector.broadcast %cst_50 : f32 to vector<8x256xf32>
    %173 = arith.addf %172, %171 : vector<8x256xf32>
    %174 = arith.divf %172, %173 : vector<8x256xf32>
    %175 = tpu.iota {dimensions = array<i32: 0>} : vector<8x256xi32>
    %176 = tpu.iota {dimensions = array<i32: 1>} : vector<8x256xi32>
    %c43008_i32_51 = arith.constant 43008 : i32
    %177 = arith.muli %arg0, %c43008_i32_51 : i32
    %c6144_i32 = arith.constant 6144 : i32
    %178 = arith.addi %177, %c6144_i32 : i32
    %c256_i32_52 = arith.constant 256 : i32
    %179 = vector.broadcast %c256_i32_52 : i32 to vector<8x256xi32>
    %180 = arith.muli %175, %179 : vector<8x256xi32>
    %181 = vector.broadcast %178 : i32 to vector<8x256xi32>
    %182 = arith.addi %181, %180 : vector<8x256xi32>
    %183 = arith.addi %182, %176 : vector<8x256xi32>
    %c0_i32_53 = arith.constant 0 : i32
    %184 = vector.broadcast %c0_i32_53 : i32 to vector<8x256xi32>
    %185 = arith.addi %183, %184 : vector<8x256xi32>
    %c16_i32_54 = arith.constant 16 : i32
    %186 = vector.broadcast %c16_i32_54 : i32 to vector<8x256xi32>
    %187 = arith.shrui %185, %186 : vector<8x256xi32>
    %188 = arith.xori %185, %187 : vector<8x256xi32>
    %c2146121005_i32_55 = arith.constant 2146121005 : i32
    %189 = vector.broadcast %c2146121005_i32_55 : i32 to vector<8x256xi32>
    %190 = arith.muli %188, %189 : vector<8x256xi32>
    %c15_i32_56 = arith.constant 15 : i32
    %191 = vector.broadcast %c15_i32_56 : i32 to vector<8x256xi32>
    %192 = arith.shrui %190, %191 : vector<8x256xi32>
    %193 = arith.xori %190, %192 : vector<8x256xi32>
    %c-2073254261_i32_57 = arith.constant -2073254261 : i32
    %194 = vector.broadcast %c-2073254261_i32_57 : i32 to vector<8x256xi32>
    %195 = arith.muli %193, %194 : vector<8x256xi32>
    %c16_i32_58 = arith.constant 16 : i32
    %196 = vector.broadcast %c16_i32_58 : i32 to vector<8x256xi32>
    %197 = arith.shrui %195, %196 : vector<8x256xi32>
    %198 = arith.xori %195, %197 : vector<8x256xi32>
    %c16_i32_59 = arith.constant 16 : i32
    %199 = vector.broadcast %c16_i32_59 : i32 to vector<8x256xi32>
    %200 = arith.shrui %198, %199 : vector<8x256xi32>
    %201 = arith.xori %198, %200 : vector<8x256xi32>
    %c2146121005_i32_60 = arith.constant 2146121005 : i32
    %202 = vector.broadcast %c2146121005_i32_60 : i32 to vector<8x256xi32>
    %203 = arith.muli %201, %202 : vector<8x256xi32>
    %c15_i32_61 = arith.constant 15 : i32
    %204 = vector.broadcast %c15_i32_61 : i32 to vector<8x256xi32>
    %205 = arith.shrui %203, %204 : vector<8x256xi32>
    %206 = arith.xori %203, %205 : vector<8x256xi32>
    %c-2073254261_i32_62 = arith.constant -2073254261 : i32
    %207 = vector.broadcast %c-2073254261_i32_62 : i32 to vector<8x256xi32>
    %208 = arith.muli %206, %207 : vector<8x256xi32>
    %c16_i32_63 = arith.constant 16 : i32
    %209 = vector.broadcast %c16_i32_63 : i32 to vector<8x256xi32>
    %210 = arith.shrui %208, %209 : vector<8x256xi32>
    %211 = arith.xori %208, %210 : vector<8x256xi32>
    %c8_i32_64 = arith.constant 8 : i32
    %212 = vector.broadcast %c8_i32_64 : i32 to vector<8x256xi32>
    %213 = arith.shrui %211, %212 : vector<8x256xi32>
    %214 = arith.sitofp %213 : vector<8x256xi32> to vector<8x256xf32>
    %cst_65 = arith.constant 5.96046448E-8 : f32
    %215 = vector.broadcast %cst_65 : f32 to vector<8x256xf32>
    %216 = arith.mulf %214, %215 : vector<8x256xf32>
    %217 = arith.cmpf olt, %216, %174 : vector<8x256xf32>
    %218 = arith.extui %217 : vector<8x256xi1> to vector<8x256xi32>
    %219 = arith.sitofp %218 : vector<8x256xi32> to vector<8x256xf32>
    %220 = arith.truncf %219 : vector<8x256xf32> to vector<8x256xbf16>
    %cst_66 = arith.constant dense<0.000000e+00> : vector<8x128xf32>
    %221 = tpu.matmul %220, %0, %cst_66 {dimension_numbers = #tpu.dot_dimension_numbers<[1], [1], [0], [0], [0, 0, 1, 0], [], []>} : vector<8x256xbf16>, vector<128x256xbf16>, vector<8x128xf32> -> vector<8x128xf32>
    %222 = vector.broadcast %1 : vector<1x128xf32> to vector<8x128xf32>
    %223 = arith.addf %221, %222 : vector<8x128xf32>
    %224 = arith.negf %223 : vector<8x128xf32>
    %225 = math.exp %224 : vector<8x128xf32>
    %cst_67 = arith.constant 1.000000e+00 : f32
    %226 = vector.broadcast %cst_67 : f32 to vector<8x128xf32>
    %227 = arith.addf %226, %225 : vector<8x128xf32>
    %228 = arith.divf %226, %227 : vector<8x128xf32>
    %229 = tpu.iota {dimensions = array<i32: 0>} : vector<8x128xi32>
    %230 = tpu.iota {dimensions = array<i32: 1>} : vector<8x128xi32>
    %c43008_i32_68 = arith.constant 43008 : i32
    %231 = arith.muli %arg0, %c43008_i32_68 : i32
    %c8192_i32 = arith.constant 8192 : i32
    %232 = arith.addi %231, %c8192_i32 : i32
    %c128_i32_69 = arith.constant 128 : i32
    %233 = vector.broadcast %c128_i32_69 : i32 to vector<8x128xi32>
    %234 = arith.muli %229, %233 : vector<8x128xi32>
    %235 = vector.broadcast %232 : i32 to vector<8x128xi32>
    %236 = arith.addi %235, %234 : vector<8x128xi32>
    %237 = arith.addi %236, %230 : vector<8x128xi32>
    %c0_i32_70 = arith.constant 0 : i32
    %238 = vector.broadcast %c0_i32_70 : i32 to vector<8x128xi32>
    %239 = arith.addi %237, %238 : vector<8x128xi32>
    %c16_i32_71 = arith.constant 16 : i32
    %240 = vector.broadcast %c16_i32_71 : i32 to vector<8x128xi32>
    %241 = arith.shrui %239, %240 : vector<8x128xi32>
    %242 = arith.xori %239, %241 : vector<8x128xi32>
    %c2146121005_i32_72 = arith.constant 2146121005 : i32
    %243 = vector.broadcast %c2146121005_i32_72 : i32 to vector<8x128xi32>
    %244 = arith.muli %242, %243 : vector<8x128xi32>
    %c15_i32_73 = arith.constant 15 : i32
    %245 = vector.broadcast %c15_i32_73 : i32 to vector<8x128xi32>
    %246 = arith.shrui %244, %245 : vector<8x128xi32>
    %247 = arith.xori %244, %246 : vector<8x128xi32>
    %c-2073254261_i32_74 = arith.constant -2073254261 : i32
    %248 = vector.broadcast %c-2073254261_i32_74 : i32 to vector<8x128xi32>
    %249 = arith.muli %247, %248 : vector<8x128xi32>
    %c16_i32_75 = arith.constant 16 : i32
    %250 = vector.broadcast %c16_i32_75 : i32 to vector<8x128xi32>
    %251 = arith.shrui %249, %250 : vector<8x128xi32>
    %252 = arith.xori %249, %251 : vector<8x128xi32>
    %c16_i32_76 = arith.constant 16 : i32
    %253 = vector.broadcast %c16_i32_76 : i32 to vector<8x128xi32>
    %254 = arith.shrui %252, %253 : vector<8x128xi32>
    %255 = arith.xori %252, %254 : vector<8x128xi32>
    %c2146121005_i32_77 = arith.constant 2146121005 : i32
    %256 = vector.broadcast %c2146121005_i32_77 : i32 to vector<8x128xi32>
    %257 = arith.muli %255, %256 : vector<8x128xi32>
    %c15_i32_78 = arith.constant 15 : i32
    %258 = vector.broadcast %c15_i32_78 : i32 to vector<8x128xi32>
    %259 = arith.shrui %257, %258 : vector<8x128xi32>
    %260 = arith.xori %257, %259 : vector<8x128xi32>
    %c-2073254261_i32_79 = arith.constant -2073254261 : i32
    %261 = vector.broadcast %c-2073254261_i32_79 : i32 to vector<8x128xi32>
    %262 = arith.muli %260, %261 : vector<8x128xi32>
    %c16_i32_80 = arith.constant 16 : i32
    %263 = vector.broadcast %c16_i32_80 : i32 to vector<8x128xi32>
    %264 = arith.shrui %262, %263 : vector<8x128xi32>
    %265 = arith.xori %262, %264 : vector<8x128xi32>
    %c8_i32_81 = arith.constant 8 : i32
    %266 = vector.broadcast %c8_i32_81 : i32 to vector<8x128xi32>
    %267 = arith.shrui %265, %266 : vector<8x128xi32>
    %268 = arith.sitofp %267 : vector<8x128xi32> to vector<8x128xf32>
    %cst_82 = arith.constant 5.96046448E-8 : f32
    %269 = vector.broadcast %cst_82 : f32 to vector<8x128xf32>
    %270 = arith.mulf %268, %269 : vector<8x128xf32>
    %271 = arith.cmpf olt, %270, %228 : vector<8x128xf32>
    %272 = arith.extui %271 : vector<8x128xi1> to vector<8x128xi32>
    %273 = arith.sitofp %272 : vector<8x128xi32> to vector<8x128xf32>
    %274 = arith.truncf %273 : vector<8x128xf32> to vector<8x128xbf16>
    %cst_83 = arith.constant dense<0.000000e+00> : vector<8x256xf32>
    %275 = tpu.matmul %274, %0, %cst_83 {dimension_numbers = #tpu.dot_dimension_numbers<[1], [0], [0], [1], [0, 0, 1, 1], [], []>} : vector<8x128xbf16>, vector<128x256xbf16>, vector<8x256xf32> -> vector<8x256xf32>
    %276 = vector.broadcast %2 : vector<1x256xf32> to vector<8x256xf32>
    %277 = arith.addf %275, %276 : vector<8x256xf32>
    %278 = arith.negf %277 : vector<8x256xf32>
    %279 = math.exp %278 : vector<8x256xf32>
    %cst_84 = arith.constant 1.000000e+00 : f32
    %280 = vector.broadcast %cst_84 : f32 to vector<8x256xf32>
    %281 = arith.addf %280, %279 : vector<8x256xf32>
    %282 = arith.divf %280, %281 : vector<8x256xf32>
    %283 = tpu.iota {dimensions = array<i32: 0>} : vector<8x256xi32>
    %284 = tpu.iota {dimensions = array<i32: 1>} : vector<8x256xi32>
    %c43008_i32_85 = arith.constant 43008 : i32
    %285 = arith.muli %arg0, %c43008_i32_85 : i32
    %c10240_i32 = arith.constant 10240 : i32
    %286 = arith.addi %285, %c10240_i32 : i32
    %c256_i32_86 = arith.constant 256 : i32
    %287 = vector.broadcast %c256_i32_86 : i32 to vector<8x256xi32>
    %288 = arith.muli %283, %287 : vector<8x256xi32>
    %289 = vector.broadcast %286 : i32 to vector<8x256xi32>
    %290 = arith.addi %289, %288 : vector<8x256xi32>
    %291 = arith.addi %290, %284 : vector<8x256xi32>
    %c0_i32_87 = arith.constant 0 : i32
    %292 = vector.broadcast %c0_i32_87 : i32 to vector<8x256xi32>
    %293 = arith.addi %291, %292 : vector<8x256xi32>
    %c16_i32_88 = arith.constant 16 : i32
    %294 = vector.broadcast %c16_i32_88 : i32 to vector<8x256xi32>
    %295 = arith.shrui %293, %294 : vector<8x256xi32>
    %296 = arith.xori %293, %295 : vector<8x256xi32>
    %c2146121005_i32_89 = arith.constant 2146121005 : i32
    %297 = vector.broadcast %c2146121005_i32_89 : i32 to vector<8x256xi32>
    %298 = arith.muli %296, %297 : vector<8x256xi32>
    %c15_i32_90 = arith.constant 15 : i32
    %299 = vector.broadcast %c15_i32_90 : i32 to vector<8x256xi32>
    %300 = arith.shrui %298, %299 : vector<8x256xi32>
    %301 = arith.xori %298, %300 : vector<8x256xi32>
    %c-2073254261_i32_91 = arith.constant -2073254261 : i32
    %302 = vector.broadcast %c-2073254261_i32_91 : i32 to vector<8x256xi32>
    %303 = arith.muli %301, %302 : vector<8x256xi32>
    %c16_i32_92 = arith.constant 16 : i32
    %304 = vector.broadcast %c16_i32_92 : i32 to vector<8x256xi32>
    %305 = arith.shrui %303, %304 : vector<8x256xi32>
    %306 = arith.xori %303, %305 : vector<8x256xi32>
    %c16_i32_93 = arith.constant 16 : i32
    %307 = vector.broadcast %c16_i32_93 : i32 to vector<8x256xi32>
    %308 = arith.shrui %306, %307 : vector<8x256xi32>
    %309 = arith.xori %306, %308 : vector<8x256xi32>
    %c2146121005_i32_94 = arith.constant 2146121005 : i32
    %310 = vector.broadcast %c2146121005_i32_94 : i32 to vector<8x256xi32>
    %311 = arith.muli %309, %310 : vector<8x256xi32>
    %c15_i32_95 = arith.constant 15 : i32
    %312 = vector.broadcast %c15_i32_95 : i32 to vector<8x256xi32>
    %313 = arith.shrui %311, %312 : vector<8x256xi32>
    %314 = arith.xori %311, %313 : vector<8x256xi32>
    %c-2073254261_i32_96 = arith.constant -2073254261 : i32
    %315 = vector.broadcast %c-2073254261_i32_96 : i32 to vector<8x256xi32>
    %316 = arith.muli %314, %315 : vector<8x256xi32>
    %c16_i32_97 = arith.constant 16 : i32
    %317 = vector.broadcast %c16_i32_97 : i32 to vector<8x256xi32>
    %318 = arith.shrui %316, %317 : vector<8x256xi32>
    %319 = arith.xori %316, %318 : vector<8x256xi32>
    %c8_i32_98 = arith.constant 8 : i32
    %320 = vector.broadcast %c8_i32_98 : i32 to vector<8x256xi32>
    %321 = arith.shrui %319, %320 : vector<8x256xi32>
    %322 = arith.sitofp %321 : vector<8x256xi32> to vector<8x256xf32>
    %cst_99 = arith.constant 5.96046448E-8 : f32
    %323 = vector.broadcast %cst_99 : f32 to vector<8x256xf32>
    %324 = arith.mulf %322, %323 : vector<8x256xf32>
    %325 = arith.cmpf olt, %324, %282 : vector<8x256xf32>
    %326 = arith.extui %325 : vector<8x256xi1> to vector<8x256xi32>
    %327 = arith.sitofp %326 : vector<8x256xi32> to vector<8x256xf32>
    %328 = arith.truncf %327 : vector<8x256xf32> to vector<8x256xbf16>
    %cst_100 = arith.constant dense<0.000000e+00> : vector<8x128xf32>
    %329 = tpu.matmul %328, %0, %cst_100 {dimension_numbers = #tpu.dot_dimension_numbers<[1], [1], [0], [0], [0, 0, 1, 0], [], []>} : vector<8x256xbf16>, vector<128x256xbf16>, vector<8x128xf32> -> vector<8x128xf32>
    %330 = vector.broadcast %1 : vector<1x128xf32> to vector<8x128xf32>
    %331 = arith.addf %329, %330 : vector<8x128xf32>
    %332 = arith.negf %331 : vector<8x128xf32>
    %333 = math.exp %332 : vector<8x128xf32>
    %cst_101 = arith.constant 1.000000e+00 : f32
    %334 = vector.broadcast %cst_101 : f32 to vector<8x128xf32>
    %335 = arith.addf %334, %333 : vector<8x128xf32>
    %336 = arith.divf %334, %335 : vector<8x128xf32>
    %337 = tpu.iota {dimensions = array<i32: 0>} : vector<8x128xi32>
    %338 = tpu.iota {dimensions = array<i32: 1>} : vector<8x128xi32>
    %c43008_i32_102 = arith.constant 43008 : i32
    %339 = arith.muli %arg0, %c43008_i32_102 : i32
    %c12288_i32 = arith.constant 12288 : i32
    %340 = arith.addi %339, %c12288_i32 : i32
    %c128_i32_103 = arith.constant 128 : i32
    %341 = vector.broadcast %c128_i32_103 : i32 to vector<8x128xi32>
    %342 = arith.muli %337, %341 : vector<8x128xi32>
    %343 = vector.broadcast %340 : i32 to vector<8x128xi32>
    %344 = arith.addi %343, %342 : vector<8x128xi32>
    %345 = arith.addi %344, %338 : vector<8x128xi32>
    %c0_i32_104 = arith.constant 0 : i32
    %346 = vector.broadcast %c0_i32_104 : i32 to vector<8x128xi32>
    %347 = arith.addi %345, %346 : vector<8x128xi32>
    %c16_i32_105 = arith.constant 16 : i32
    %348 = vector.broadcast %c16_i32_105 : i32 to vector<8x128xi32>
    %349 = arith.shrui %347, %348 : vector<8x128xi32>
    %350 = arith.xori %347, %349 : vector<8x128xi32>
    %c2146121005_i32_106 = arith.constant 2146121005 : i32
    %351 = vector.broadcast %c2146121005_i32_106 : i32 to vector<8x128xi32>
    %352 = arith.muli %350, %351 : vector<8x128xi32>
    %c15_i32_107 = arith.constant 15 : i32
    %353 = vector.broadcast %c15_i32_107 : i32 to vector<8x128xi32>
    %354 = arith.shrui %352, %353 : vector<8x128xi32>
    %355 = arith.xori %352, %354 : vector<8x128xi32>
    %c-2073254261_i32_108 = arith.constant -2073254261 : i32
    %356 = vector.broadcast %c-2073254261_i32_108 : i32 to vector<8x128xi32>
    %357 = arith.muli %355, %356 : vector<8x128xi32>
    %c16_i32_109 = arith.constant 16 : i32
    %358 = vector.broadcast %c16_i32_109 : i32 to vector<8x128xi32>
    %359 = arith.shrui %357, %358 : vector<8x128xi32>
    %360 = arith.xori %357, %359 : vector<8x128xi32>
    %c16_i32_110 = arith.constant 16 : i32
    %361 = vector.broadcast %c16_i32_110 : i32 to vector<8x128xi32>
    %362 = arith.shrui %360, %361 : vector<8x128xi32>
    %363 = arith.xori %360, %362 : vector<8x128xi32>
    %c2146121005_i32_111 = arith.constant 2146121005 : i32
    %364 = vector.broadcast %c2146121005_i32_111 : i32 to vector<8x128xi32>
    %365 = arith.muli %363, %364 : vector<8x128xi32>
    %c15_i32_112 = arith.constant 15 : i32
    %366 = vector.broadcast %c15_i32_112 : i32 to vector<8x128xi32>
    %367 = arith.shrui %365, %366 : vector<8x128xi32>
    %368 = arith.xori %365, %367 : vector<8x128xi32>
    %c-2073254261_i32_113 = arith.constant -2073254261 : i32
    %369 = vector.broadcast %c-2073254261_i32_113 : i32 to vector<8x128xi32>
    %370 = arith.muli %368, %369 : vector<8x128xi32>
    %c16_i32_114 = arith.constant 16 : i32
    %371 = vector.broadcast %c16_i32_114 : i32 to vector<8x128xi32>
    %372 = arith.shrui %370, %371 : vector<8x128xi32>
    %373 = arith.xori %370, %372 : vector<8x128xi32>
    %c8_i32_115 = arith.constant 8 : i32
    %374 = vector.broadcast %c8_i32_115 : i32 to vector<8x128xi32>
    %375 = arith.shrui %373, %374 : vector<8x128xi32>
    %376 = arith.sitofp %375 : vector<8x128xi32> to vector<8x128xf32>
    %cst_116 = arith.constant 5.96046448E-8 : f32
    %377 = vector.broadcast %cst_116 : f32 to vector<8x128xf32>
    %378 = arith.mulf %376, %377 : vector<8x128xf32>
    %379 = arith.cmpf olt, %378, %336 : vector<8x128xf32>
    %380 = arith.extui %379 : vector<8x128xi1> to vector<8x128xi32>
    %381 = arith.sitofp %380 : vector<8x128xi32> to vector<8x128xf32>
    %382 = arith.truncf %381 : vector<8x128xf32> to vector<8x128xbf16>
    %cst_117 = arith.constant dense<0.000000e+00> : vector<8x256xf32>
    %383 = tpu.matmul %382, %0, %cst_117 {dimension_numbers = #tpu.dot_dimension_numbers<[1], [0], [0], [1], [0, 0, 1, 1], [], []>} : vector<8x128xbf16>, vector<128x256xbf16>, vector<8x256xf32> -> vector<8x256xf32>
    %384 = vector.broadcast %2 : vector<1x256xf32> to vector<8x256xf32>
    %385 = arith.addf %383, %384 : vector<8x256xf32>
    %386 = arith.negf %385 : vector<8x256xf32>
    %387 = math.exp %386 : vector<8x256xf32>
    %cst_118 = arith.constant 1.000000e+00 : f32
    %388 = vector.broadcast %cst_118 : f32 to vector<8x256xf32>
    %389 = arith.addf %388, %387 : vector<8x256xf32>
    %390 = arith.divf %388, %389 : vector<8x256xf32>
    %391 = tpu.iota {dimensions = array<i32: 0>} : vector<8x256xi32>
    %392 = tpu.iota {dimensions = array<i32: 1>} : vector<8x256xi32>
    %c43008_i32_119 = arith.constant 43008 : i32
    %393 = arith.muli %arg0, %c43008_i32_119 : i32
    %c14336_i32 = arith.constant 14336 : i32
    %394 = arith.addi %393, %c14336_i32 : i32
    %c256_i32_120 = arith.constant 256 : i32
    %395 = vector.broadcast %c256_i32_120 : i32 to vector<8x256xi32>
    %396 = arith.muli %391, %395 : vector<8x256xi32>
    %397 = vector.broadcast %394 : i32 to vector<8x256xi32>
    %398 = arith.addi %397, %396 : vector<8x256xi32>
    %399 = arith.addi %398, %392 : vector<8x256xi32>
    %c0_i32_121 = arith.constant 0 : i32
    %400 = vector.broadcast %c0_i32_121 : i32 to vector<8x256xi32>
    %401 = arith.addi %399, %400 : vector<8x256xi32>
    %c16_i32_122 = arith.constant 16 : i32
    %402 = vector.broadcast %c16_i32_122 : i32 to vector<8x256xi32>
    %403 = arith.shrui %401, %402 : vector<8x256xi32>
    %404 = arith.xori %401, %403 : vector<8x256xi32>
    %c2146121005_i32_123 = arith.constant 2146121005 : i32
    %405 = vector.broadcast %c2146121005_i32_123 : i32 to vector<8x256xi32>
    %406 = arith.muli %404, %405 : vector<8x256xi32>
    %c15_i32_124 = arith.constant 15 : i32
    %407 = vector.broadcast %c15_i32_124 : i32 to vector<8x256xi32>
    %408 = arith.shrui %406, %407 : vector<8x256xi32>
    %409 = arith.xori %406, %408 : vector<8x256xi32>
    %c-2073254261_i32_125 = arith.constant -2073254261 : i32
    %410 = vector.broadcast %c-2073254261_i32_125 : i32 to vector<8x256xi32>
    %411 = arith.muli %409, %410 : vector<8x256xi32>
    %c16_i32_126 = arith.constant 16 : i32
    %412 = vector.broadcast %c16_i32_126 : i32 to vector<8x256xi32>
    %413 = arith.shrui %411, %412 : vector<8x256xi32>
    %414 = arith.xori %411, %413 : vector<8x256xi32>
    %c16_i32_127 = arith.constant 16 : i32
    %415 = vector.broadcast %c16_i32_127 : i32 to vector<8x256xi32>
    %416 = arith.shrui %414, %415 : vector<8x256xi32>
    %417 = arith.xori %414, %416 : vector<8x256xi32>
    %c2146121005_i32_128 = arith.constant 2146121005 : i32
    %418 = vector.broadcast %c2146121005_i32_128 : i32 to vector<8x256xi32>
    %419 = arith.muli %417, %418 : vector<8x256xi32>
    %c15_i32_129 = arith.constant 15 : i32
    %420 = vector.broadcast %c15_i32_129 : i32 to vector<8x256xi32>
    %421 = arith.shrui %419, %420 : vector<8x256xi32>
    %422 = arith.xori %419, %421 : vector<8x256xi32>
    %c-2073254261_i32_130 = arith.constant -2073254261 : i32
    %423 = vector.broadcast %c-2073254261_i32_130 : i32 to vector<8x256xi32>
    %424 = arith.muli %422, %423 : vector<8x256xi32>
    %c16_i32_131 = arith.constant 16 : i32
    %425 = vector.broadcast %c16_i32_131 : i32 to vector<8x256xi32>
    %426 = arith.shrui %424, %425 : vector<8x256xi32>
    %427 = arith.xori %424, %426 : vector<8x256xi32>
    %c8_i32_132 = arith.constant 8 : i32
    %428 = vector.broadcast %c8_i32_132 : i32 to vector<8x256xi32>
    %429 = arith.shrui %427, %428 : vector<8x256xi32>
    %430 = arith.sitofp %429 : vector<8x256xi32> to vector<8x256xf32>
    %cst_133 = arith.constant 5.96046448E-8 : f32
    %431 = vector.broadcast %cst_133 : f32 to vector<8x256xf32>
    %432 = arith.mulf %430, %431 : vector<8x256xf32>
    %433 = arith.cmpf olt, %432, %390 : vector<8x256xf32>
    %434 = arith.extui %433 : vector<8x256xi1> to vector<8x256xi32>
    %435 = arith.sitofp %434 : vector<8x256xi32> to vector<8x256xf32>
    %436 = arith.truncf %435 : vector<8x256xf32> to vector<8x256xbf16>
    %cst_134 = arith.constant dense<0.000000e+00> : vector<8x128xf32>
    %437 = tpu.matmul %436, %0, %cst_134 {dimension_numbers = #tpu.dot_dimension_numbers<[1], [1], [0], [0], [0, 0, 1, 0], [], []>} : vector<8x256xbf16>, vector<128x256xbf16>, vector<8x128xf32> -> vector<8x128xf32>
    %438 = vector.broadcast %1 : vector<1x128xf32> to vector<8x128xf32>
    %439 = arith.addf %437, %438 : vector<8x128xf32>
    %440 = arith.negf %439 : vector<8x128xf32>
    %441 = math.exp %440 : vector<8x128xf32>
    %cst_135 = arith.constant 1.000000e+00 : f32
    %442 = vector.broadcast %cst_135 : f32 to vector<8x128xf32>
    %443 = arith.addf %442, %441 : vector<8x128xf32>
    %444 = arith.divf %442, %443 : vector<8x128xf32>
    %445 = tpu.iota {dimensions = array<i32: 0>} : vector<8x128xi32>
    %446 = tpu.iota {dimensions = array<i32: 1>} : vector<8x128xi32>
    %c43008_i32_136 = arith.constant 43008 : i32
    %447 = arith.muli %arg0, %c43008_i32_136 : i32
    %c16384_i32 = arith.constant 16384 : i32
    %448 = arith.addi %447, %c16384_i32 : i32
    %c128_i32_137 = arith.constant 128 : i32
    %449 = vector.broadcast %c128_i32_137 : i32 to vector<8x128xi32>
    %450 = arith.muli %445, %449 : vector<8x128xi32>
    %451 = vector.broadcast %448 : i32 to vector<8x128xi32>
    %452 = arith.addi %451, %450 : vector<8x128xi32>
    %453 = arith.addi %452, %446 : vector<8x128xi32>
    %c0_i32_138 = arith.constant 0 : i32
    %454 = vector.broadcast %c0_i32_138 : i32 to vector<8x128xi32>
    %455 = arith.addi %453, %454 : vector<8x128xi32>
    %c16_i32_139 = arith.constant 16 : i32
    %456 = vector.broadcast %c16_i32_139 : i32 to vector<8x128xi32>
    %457 = arith.shrui %455, %456 : vector<8x128xi32>
    %458 = arith.xori %455, %457 : vector<8x128xi32>
    %c2146121005_i32_140 = arith.constant 2146121005 : i32
    %459 = vector.broadcast %c2146121005_i32_140 : i32 to vector<8x128xi32>
    %460 = arith.muli %458, %459 : vector<8x128xi32>
    %c15_i32_141 = arith.constant 15 : i32
    %461 = vector.broadcast %c15_i32_141 : i32 to vector<8x128xi32>
    %462 = arith.shrui %460, %461 : vector<8x128xi32>
    %463 = arith.xori %460, %462 : vector<8x128xi32>
    %c-2073254261_i32_142 = arith.constant -2073254261 : i32
    %464 = vector.broadcast %c-2073254261_i32_142 : i32 to vector<8x128xi32>
    %465 = arith.muli %463, %464 : vector<8x128xi32>
    %c16_i32_143 = arith.constant 16 : i32
    %466 = vector.broadcast %c16_i32_143 : i32 to vector<8x128xi32>
    %467 = arith.shrui %465, %466 : vector<8x128xi32>
    %468 = arith.xori %465, %467 : vector<8x128xi32>
    %c16_i32_144 = arith.constant 16 : i32
    %469 = vector.broadcast %c16_i32_144 : i32 to vector<8x128xi32>
    %470 = arith.shrui %468, %469 : vector<8x128xi32>
    %471 = arith.xori %468, %470 : vector<8x128xi32>
    %c2146121005_i32_145 = arith.constant 2146121005 : i32
    %472 = vector.broadcast %c2146121005_i32_145 : i32 to vector<8x128xi32>
    %473 = arith.muli %471, %472 : vector<8x128xi32>
    %c15_i32_146 = arith.constant 15 : i32
    %474 = vector.broadcast %c15_i32_146 : i32 to vector<8x128xi32>
    %475 = arith.shrui %473, %474 : vector<8x128xi32>
    %476 = arith.xori %473, %475 : vector<8x128xi32>
    %c-2073254261_i32_147 = arith.constant -2073254261 : i32
    %477 = vector.broadcast %c-2073254261_i32_147 : i32 to vector<8x128xi32>
    %478 = arith.muli %476, %477 : vector<8x128xi32>
    %c16_i32_148 = arith.constant 16 : i32
    %479 = vector.broadcast %c16_i32_148 : i32 to vector<8x128xi32>
    %480 = arith.shrui %478, %479 : vector<8x128xi32>
    %481 = arith.xori %478, %480 : vector<8x128xi32>
    %c8_i32_149 = arith.constant 8 : i32
    %482 = vector.broadcast %c8_i32_149 : i32 to vector<8x128xi32>
    %483 = arith.shrui %481, %482 : vector<8x128xi32>
    %484 = arith.sitofp %483 : vector<8x128xi32> to vector<8x128xf32>
    %cst_150 = arith.constant 5.96046448E-8 : f32
    %485 = vector.broadcast %cst_150 : f32 to vector<8x128xf32>
    %486 = arith.mulf %484, %485 : vector<8x128xf32>
    %487 = arith.cmpf olt, %486, %444 : vector<8x128xf32>
    %488 = arith.extui %487 : vector<8x128xi1> to vector<8x128xi32>
    %489 = arith.sitofp %488 : vector<8x128xi32> to vector<8x128xf32>
    %490 = arith.truncf %489 : vector<8x128xf32> to vector<8x128xbf16>
    %cst_151 = arith.constant dense<0.000000e+00> : vector<8x256xf32>
    %491 = tpu.matmul %490, %0, %cst_151 {dimension_numbers = #tpu.dot_dimension_numbers<[1], [0], [0], [1], [0, 0, 1, 1], [], []>} : vector<8x128xbf16>, vector<128x256xbf16>, vector<8x256xf32> -> vector<8x256xf32>
    %492 = vector.broadcast %2 : vector<1x256xf32> to vector<8x256xf32>
    %493 = arith.addf %491, %492 : vector<8x256xf32>
    %494 = arith.negf %493 : vector<8x256xf32>
    %495 = math.exp %494 : vector<8x256xf32>
    %cst_152 = arith.constant 1.000000e+00 : f32
    %496 = vector.broadcast %cst_152 : f32 to vector<8x256xf32>
    %497 = arith.addf %496, %495 : vector<8x256xf32>
    %498 = arith.divf %496, %497 : vector<8x256xf32>
    %499 = tpu.iota {dimensions = array<i32: 0>} : vector<8x256xi32>
    %500 = tpu.iota {dimensions = array<i32: 1>} : vector<8x256xi32>
    %c43008_i32_153 = arith.constant 43008 : i32
    %501 = arith.muli %arg0, %c43008_i32_153 : i32
    %c18432_i32 = arith.constant 18432 : i32
    %502 = arith.addi %501, %c18432_i32 : i32
    %c256_i32_154 = arith.constant 256 : i32
    %503 = vector.broadcast %c256_i32_154 : i32 to vector<8x256xi32>
    %504 = arith.muli %499, %503 : vector<8x256xi32>
    %505 = vector.broadcast %502 : i32 to vector<8x256xi32>
    %506 = arith.addi %505, %504 : vector<8x256xi32>
    %507 = arith.addi %506, %500 : vector<8x256xi32>
    %c0_i32_155 = arith.constant 0 : i32
    %508 = vector.broadcast %c0_i32_155 : i32 to vector<8x256xi32>
    %509 = arith.addi %507, %508 : vector<8x256xi32>
    %c16_i32_156 = arith.constant 16 : i32
    %510 = vector.broadcast %c16_i32_156 : i32 to vector<8x256xi32>
    %511 = arith.shrui %509, %510 : vector<8x256xi32>
    %512 = arith.xori %509, %511 : vector<8x256xi32>
    %c2146121005_i32_157 = arith.constant 2146121005 : i32
    %513 = vector.broadcast %c2146121005_i32_157 : i32 to vector<8x256xi32>
    %514 = arith.muli %512, %513 : vector<8x256xi32>
    %c15_i32_158 = arith.constant 15 : i32
    %515 = vector.broadcast %c15_i32_158 : i32 to vector<8x256xi32>
    %516 = arith.shrui %514, %515 : vector<8x256xi32>
    %517 = arith.xori %514, %516 : vector<8x256xi32>
    %c-2073254261_i32_159 = arith.constant -2073254261 : i32
    %518 = vector.broadcast %c-2073254261_i32_159 : i32 to vector<8x256xi32>
    %519 = arith.muli %517, %518 : vector<8x256xi32>
    %c16_i32_160 = arith.constant 16 : i32
    %520 = vector.broadcast %c16_i32_160 : i32 to vector<8x256xi32>
    %521 = arith.shrui %519, %520 : vector<8x256xi32>
    %522 = arith.xori %519, %521 : vector<8x256xi32>
    %c16_i32_161 = arith.constant 16 : i32
    %523 = vector.broadcast %c16_i32_161 : i32 to vector<8x256xi32>
    %524 = arith.shrui %522, %523 : vector<8x256xi32>
    %525 = arith.xori %522, %524 : vector<8x256xi32>
    %c2146121005_i32_162 = arith.constant 2146121005 : i32
    %526 = vector.broadcast %c2146121005_i32_162 : i32 to vector<8x256xi32>
    %527 = arith.muli %525, %526 : vector<8x256xi32>
    %c15_i32_163 = arith.constant 15 : i32
    %528 = vector.broadcast %c15_i32_163 : i32 to vector<8x256xi32>
    %529 = arith.shrui %527, %528 : vector<8x256xi32>
    %530 = arith.xori %527, %529 : vector<8x256xi32>
    %c-2073254261_i32_164 = arith.constant -2073254261 : i32
    %531 = vector.broadcast %c-2073254261_i32_164 : i32 to vector<8x256xi32>
    %532 = arith.muli %530, %531 : vector<8x256xi32>
    %c16_i32_165 = arith.constant 16 : i32
    %533 = vector.broadcast %c16_i32_165 : i32 to vector<8x256xi32>
    %534 = arith.shrui %532, %533 : vector<8x256xi32>
    %535 = arith.xori %532, %534 : vector<8x256xi32>
    %c8_i32_166 = arith.constant 8 : i32
    %536 = vector.broadcast %c8_i32_166 : i32 to vector<8x256xi32>
    %537 = arith.shrui %535, %536 : vector<8x256xi32>
    %538 = arith.sitofp %537 : vector<8x256xi32> to vector<8x256xf32>
    %cst_167 = arith.constant 5.96046448E-8 : f32
    %539 = vector.broadcast %cst_167 : f32 to vector<8x256xf32>
    %540 = arith.mulf %538, %539 : vector<8x256xf32>
    %541 = arith.cmpf olt, %540, %498 : vector<8x256xf32>
    %542 = arith.extui %541 : vector<8x256xi1> to vector<8x256xi32>
    %543 = arith.sitofp %542 : vector<8x256xi32> to vector<8x256xf32>
    %544 = arith.truncf %543 : vector<8x256xf32> to vector<8x256xbf16>
    %cst_168 = arith.constant dense<0.000000e+00> : vector<8x128xf32>
    %545 = tpu.matmul %544, %0, %cst_168 {dimension_numbers = #tpu.dot_dimension_numbers<[1], [1], [0], [0], [0, 0, 1, 0], [], []>} : vector<8x256xbf16>, vector<128x256xbf16>, vector<8x128xf32> -> vector<8x128xf32>
    %546 = vector.broadcast %1 : vector<1x128xf32> to vector<8x128xf32>
    %547 = arith.addf %545, %546 : vector<8x128xf32>
    %548 = arith.negf %547 : vector<8x128xf32>
    %549 = math.exp %548 : vector<8x128xf32>
    %cst_169 = arith.constant 1.000000e+00 : f32
    %550 = vector.broadcast %cst_169 : f32 to vector<8x128xf32>
    %551 = arith.addf %550, %549 : vector<8x128xf32>
    %552 = arith.divf %550, %551 : vector<8x128xf32>
    %553 = tpu.iota {dimensions = array<i32: 0>} : vector<8x128xi32>
    %554 = tpu.iota {dimensions = array<i32: 1>} : vector<8x128xi32>
    %c43008_i32_170 = arith.constant 43008 : i32
    %555 = arith.muli %arg0, %c43008_i32_170 : i32
    %c20480_i32 = arith.constant 20480 : i32
    %556 = arith.addi %555, %c20480_i32 : i32
    %c128_i32_171 = arith.constant 128 : i32
    %557 = vector.broadcast %c128_i32_171 : i32 to vector<8x128xi32>
    %558 = arith.muli %553, %557 : vector<8x128xi32>
    %559 = vector.broadcast %556 : i32 to vector<8x128xi32>
    %560 = arith.addi %559, %558 : vector<8x128xi32>
    %561 = arith.addi %560, %554 : vector<8x128xi32>
    %c0_i32_172 = arith.constant 0 : i32
    %562 = vector.broadcast %c0_i32_172 : i32 to vector<8x128xi32>
    %563 = arith.addi %561, %562 : vector<8x128xi32>
    %c16_i32_173 = arith.constant 16 : i32
    %564 = vector.broadcast %c16_i32_173 : i32 to vector<8x128xi32>
    %565 = arith.shrui %563, %564 : vector<8x128xi32>
    %566 = arith.xori %563, %565 : vector<8x128xi32>
    %c2146121005_i32_174 = arith.constant 2146121005 : i32
    %567 = vector.broadcast %c2146121005_i32_174 : i32 to vector<8x128xi32>
    %568 = arith.muli %566, %567 : vector<8x128xi32>
    %c15_i32_175 = arith.constant 15 : i32
    %569 = vector.broadcast %c15_i32_175 : i32 to vector<8x128xi32>
    %570 = arith.shrui %568, %569 : vector<8x128xi32>
    %571 = arith.xori %568, %570 : vector<8x128xi32>
    %c-2073254261_i32_176 = arith.constant -2073254261 : i32
    %572 = vector.broadcast %c-2073254261_i32_176 : i32 to vector<8x128xi32>
    %573 = arith.muli %571, %572 : vector<8x128xi32>
    %c16_i32_177 = arith.constant 16 : i32
    %574 = vector.broadcast %c16_i32_177 : i32 to vector<8x128xi32>
    %575 = arith.shrui %573, %574 : vector<8x128xi32>
    %576 = arith.xori %573, %575 : vector<8x128xi32>
    %c16_i32_178 = arith.constant 16 : i32
    %577 = vector.broadcast %c16_i32_178 : i32 to vector<8x128xi32>
    %578 = arith.shrui %576, %577 : vector<8x128xi32>
    %579 = arith.xori %576, %578 : vector<8x128xi32>
    %c2146121005_i32_179 = arith.constant 2146121005 : i32
    %580 = vector.broadcast %c2146121005_i32_179 : i32 to vector<8x128xi32>
    %581 = arith.muli %579, %580 : vector<8x128xi32>
    %c15_i32_180 = arith.constant 15 : i32
    %582 = vector.broadcast %c15_i32_180 : i32 to vector<8x128xi32>
    %583 = arith.shrui %581, %582 : vector<8x128xi32>
    %584 = arith.xori %581, %583 : vector<8x128xi32>
    %c-2073254261_i32_181 = arith.constant -2073254261 : i32
    %585 = vector.broadcast %c-2073254261_i32_181 : i32 to vector<8x128xi32>
    %586 = arith.muli %584, %585 : vector<8x128xi32>
    %c16_i32_182 = arith.constant 16 : i32
    %587 = vector.broadcast %c16_i32_182 : i32 to vector<8x128xi32>
    %588 = arith.shrui %586, %587 : vector<8x128xi32>
    %589 = arith.xori %586, %588 : vector<8x128xi32>
    %c8_i32_183 = arith.constant 8 : i32
    %590 = vector.broadcast %c8_i32_183 : i32 to vector<8x128xi32>
    %591 = arith.shrui %589, %590 : vector<8x128xi32>
    %592 = arith.sitofp %591 : vector<8x128xi32> to vector<8x128xf32>
    %cst_184 = arith.constant 5.96046448E-8 : f32
    %593 = vector.broadcast %cst_184 : f32 to vector<8x128xf32>
    %594 = arith.mulf %592, %593 : vector<8x128xf32>
    %595 = arith.cmpf olt, %594, %552 : vector<8x128xf32>
    %596 = arith.extui %595 : vector<8x128xi1> to vector<8x128xi32>
    %597 = arith.sitofp %596 : vector<8x128xi32> to vector<8x128xf32>
    %598 = arith.truncf %597 : vector<8x128xf32> to vector<8x128xbf16>
    %cst_185 = arith.constant dense<0.000000e+00> : vector<8x256xf32>
    %599 = tpu.matmul %598, %0, %cst_185 {dimension_numbers = #tpu.dot_dimension_numbers<[1], [0], [0], [1], [0, 0, 1, 1], [], []>} : vector<8x128xbf16>, vector<128x256xbf16>, vector<8x256xf32> -> vector<8x256xf32>
    %600 = vector.broadcast %2 : vector<1x256xf32> to vector<8x256xf32>
    %601 = arith.addf %599, %600 : vector<8x256xf32>
    %602 = arith.negf %601 : vector<8x256xf32>
    %603 = math.exp %602 : vector<8x256xf32>
    %cst_186 = arith.constant 1.000000e+00 : f32
    %604 = vector.broadcast %cst_186 : f32 to vector<8x256xf32>
    %605 = arith.addf %604, %603 : vector<8x256xf32>
    %606 = arith.divf %604, %605 : vector<8x256xf32>
    %607 = tpu.iota {dimensions = array<i32: 0>} : vector<8x256xi32>
    %608 = tpu.iota {dimensions = array<i32: 1>} : vector<8x256xi32>
    %c43008_i32_187 = arith.constant 43008 : i32
    %609 = arith.muli %arg0, %c43008_i32_187 : i32
    %c22528_i32 = arith.constant 22528 : i32
    %610 = arith.addi %609, %c22528_i32 : i32
    %c256_i32_188 = arith.constant 256 : i32
    %611 = vector.broadcast %c256_i32_188 : i32 to vector<8x256xi32>
    %612 = arith.muli %607, %611 : vector<8x256xi32>
    %613 = vector.broadcast %610 : i32 to vector<8x256xi32>
    %614 = arith.addi %613, %612 : vector<8x256xi32>
    %615 = arith.addi %614, %608 : vector<8x256xi32>
    %c0_i32_189 = arith.constant 0 : i32
    %616 = vector.broadcast %c0_i32_189 : i32 to vector<8x256xi32>
    %617 = arith.addi %615, %616 : vector<8x256xi32>
    %c16_i32_190 = arith.constant 16 : i32
    %618 = vector.broadcast %c16_i32_190 : i32 to vector<8x256xi32>
    %619 = arith.shrui %617, %618 : vector<8x256xi32>
    %620 = arith.xori %617, %619 : vector<8x256xi32>
    %c2146121005_i32_191 = arith.constant 2146121005 : i32
    %621 = vector.broadcast %c2146121005_i32_191 : i32 to vector<8x256xi32>
    %622 = arith.muli %620, %621 : vector<8x256xi32>
    %c15_i32_192 = arith.constant 15 : i32
    %623 = vector.broadcast %c15_i32_192 : i32 to vector<8x256xi32>
    %624 = arith.shrui %622, %623 : vector<8x256xi32>
    %625 = arith.xori %622, %624 : vector<8x256xi32>
    %c-2073254261_i32_193 = arith.constant -2073254261 : i32
    %626 = vector.broadcast %c-2073254261_i32_193 : i32 to vector<8x256xi32>
    %627 = arith.muli %625, %626 : vector<8x256xi32>
    %c16_i32_194 = arith.constant 16 : i32
    %628 = vector.broadcast %c16_i32_194 : i32 to vector<8x256xi32>
    %629 = arith.shrui %627, %628 : vector<8x256xi32>
    %630 = arith.xori %627, %629 : vector<8x256xi32>
    %c16_i32_195 = arith.constant 16 : i32
    %631 = vector.broadcast %c16_i32_195 : i32 to vector<8x256xi32>
    %632 = arith.shrui %630, %631 : vector<8x256xi32>
    %633 = arith.xori %630, %632 : vector<8x256xi32>
    %c2146121005_i32_196 = arith.constant 2146121005 : i32
    %634 = vector.broadcast %c2146121005_i32_196 : i32 to vector<8x256xi32>
    %635 = arith.muli %633, %634 : vector<8x256xi32>
    %c15_i32_197 = arith.constant 15 : i32
    %636 = vector.broadcast %c15_i32_197 : i32 to vector<8x256xi32>
    %637 = arith.shrui %635, %636 : vector<8x256xi32>
    %638 = arith.xori %635, %637 : vector<8x256xi32>
    %c-2073254261_i32_198 = arith.constant -2073254261 : i32
    %639 = vector.broadcast %c-2073254261_i32_198 : i32 to vector<8x256xi32>
    %640 = arith.muli %638, %639 : vector<8x256xi32>
    %c16_i32_199 = arith.constant 16 : i32
    %641 = vector.broadcast %c16_i32_199 : i32 to vector<8x256xi32>
    %642 = arith.shrui %640, %641 : vector<8x256xi32>
    %643 = arith.xori %640, %642 : vector<8x256xi32>
    %c8_i32_200 = arith.constant 8 : i32
    %644 = vector.broadcast %c8_i32_200 : i32 to vector<8x256xi32>
    %645 = arith.shrui %643, %644 : vector<8x256xi32>
    %646 = arith.sitofp %645 : vector<8x256xi32> to vector<8x256xf32>
    %cst_201 = arith.constant 5.96046448E-8 : f32
    %647 = vector.broadcast %cst_201 : f32 to vector<8x256xf32>
    %648 = arith.mulf %646, %647 : vector<8x256xf32>
    %649 = arith.cmpf olt, %648, %606 : vector<8x256xf32>
    %650 = arith.extui %649 : vector<8x256xi1> to vector<8x256xi32>
    %651 = arith.sitofp %650 : vector<8x256xi32> to vector<8x256xf32>
    %652 = arith.truncf %651 : vector<8x256xf32> to vector<8x256xbf16>
    %cst_202 = arith.constant dense<0.000000e+00> : vector<8x128xf32>
    %653 = tpu.matmul %652, %0, %cst_202 {dimension_numbers = #tpu.dot_dimension_numbers<[1], [1], [0], [0], [0, 0, 1, 0], [], []>} : vector<8x256xbf16>, vector<128x256xbf16>, vector<8x128xf32> -> vector<8x128xf32>
    %654 = vector.broadcast %1 : vector<1x128xf32> to vector<8x128xf32>
    %655 = arith.addf %653, %654 : vector<8x128xf32>
    %656 = arith.negf %655 : vector<8x128xf32>
    %657 = math.exp %656 : vector<8x128xf32>
    %cst_203 = arith.constant 1.000000e+00 : f32
    %658 = vector.broadcast %cst_203 : f32 to vector<8x128xf32>
    %659 = arith.addf %658, %657 : vector<8x128xf32>
    %660 = arith.divf %658, %659 : vector<8x128xf32>
    %661 = tpu.iota {dimensions = array<i32: 0>} : vector<8x128xi32>
    %662 = tpu.iota {dimensions = array<i32: 1>} : vector<8x128xi32>
    %c43008_i32_204 = arith.constant 43008 : i32
    %663 = arith.muli %arg0, %c43008_i32_204 : i32
    %c24576_i32 = arith.constant 24576 : i32
    %664 = arith.addi %663, %c24576_i32 : i32
    %c128_i32_205 = arith.constant 128 : i32
    %665 = vector.broadcast %c128_i32_205 : i32 to vector<8x128xi32>
    %666 = arith.muli %661, %665 : vector<8x128xi32>
    %667 = vector.broadcast %664 : i32 to vector<8x128xi32>
    %668 = arith.addi %667, %666 : vector<8x128xi32>
    %669 = arith.addi %668, %662 : vector<8x128xi32>
    %c0_i32_206 = arith.constant 0 : i32
    %670 = vector.broadcast %c0_i32_206 : i32 to vector<8x128xi32>
    %671 = arith.addi %669, %670 : vector<8x128xi32>
    %c16_i32_207 = arith.constant 16 : i32
    %672 = vector.broadcast %c16_i32_207 : i32 to vector<8x128xi32>
    %673 = arith.shrui %671, %672 : vector<8x128xi32>
    %674 = arith.xori %671, %673 : vector<8x128xi32>
    %c2146121005_i32_208 = arith.constant 2146121005 : i32
    %675 = vector.broadcast %c2146121005_i32_208 : i32 to vector<8x128xi32>
    %676 = arith.muli %674, %675 : vector<8x128xi32>
    %c15_i32_209 = arith.constant 15 : i32
    %677 = vector.broadcast %c15_i32_209 : i32 to vector<8x128xi32>
    %678 = arith.shrui %676, %677 : vector<8x128xi32>
    %679 = arith.xori %676, %678 : vector<8x128xi32>
    %c-2073254261_i32_210 = arith.constant -2073254261 : i32
    %680 = vector.broadcast %c-2073254261_i32_210 : i32 to vector<8x128xi32>
    %681 = arith.muli %679, %680 : vector<8x128xi32>
    %c16_i32_211 = arith.constant 16 : i32
    %682 = vector.broadcast %c16_i32_211 : i32 to vector<8x128xi32>
    %683 = arith.shrui %681, %682 : vector<8x128xi32>
    %684 = arith.xori %681, %683 : vector<8x128xi32>
    %c16_i32_212 = arith.constant 16 : i32
    %685 = vector.broadcast %c16_i32_212 : i32 to vector<8x128xi32>
    %686 = arith.shrui %684, %685 : vector<8x128xi32>
    %687 = arith.xori %684, %686 : vector<8x128xi32>
    %c2146121005_i32_213 = arith.constant 2146121005 : i32
    %688 = vector.broadcast %c2146121005_i32_213 : i32 to vector<8x128xi32>
    %689 = arith.muli %687, %688 : vector<8x128xi32>
    %c15_i32_214 = arith.constant 15 : i32
    %690 = vector.broadcast %c15_i32_214 : i32 to vector<8x128xi32>
    %691 = arith.shrui %689, %690 : vector<8x128xi32>
    %692 = arith.xori %689, %691 : vector<8x128xi32>
    %c-2073254261_i32_215 = arith.constant -2073254261 : i32
    %693 = vector.broadcast %c-2073254261_i32_215 : i32 to vector<8x128xi32>
    %694 = arith.muli %692, %693 : vector<8x128xi32>
    %c16_i32_216 = arith.constant 16 : i32
    %695 = vector.broadcast %c16_i32_216 : i32 to vector<8x128xi32>
    %696 = arith.shrui %694, %695 : vector<8x128xi32>
    %697 = arith.xori %694, %696 : vector<8x128xi32>
    %c8_i32_217 = arith.constant 8 : i32
    %698 = vector.broadcast %c8_i32_217 : i32 to vector<8x128xi32>
    %699 = arith.shrui %697, %698 : vector<8x128xi32>
    %700 = arith.sitofp %699 : vector<8x128xi32> to vector<8x128xf32>
    %cst_218 = arith.constant 5.96046448E-8 : f32
    %701 = vector.broadcast %cst_218 : f32 to vector<8x128xf32>
    %702 = arith.mulf %700, %701 : vector<8x128xf32>
    %703 = arith.cmpf olt, %702, %660 : vector<8x128xf32>
    %704 = arith.extui %703 : vector<8x128xi1> to vector<8x128xi32>
    %705 = arith.sitofp %704 : vector<8x128xi32> to vector<8x128xf32>
    %706 = arith.truncf %705 : vector<8x128xf32> to vector<8x128xbf16>
    %cst_219 = arith.constant dense<0.000000e+00> : vector<8x256xf32>
    %707 = tpu.matmul %706, %0, %cst_219 {dimension_numbers = #tpu.dot_dimension_numbers<[1], [0], [0], [1], [0, 0, 1, 1], [], []>} : vector<8x128xbf16>, vector<128x256xbf16>, vector<8x256xf32> -> vector<8x256xf32>
    %708 = vector.broadcast %2 : vector<1x256xf32> to vector<8x256xf32>
    %709 = arith.addf %707, %708 : vector<8x256xf32>
    %710 = arith.negf %709 : vector<8x256xf32>
    %711 = math.exp %710 : vector<8x256xf32>
    %cst_220 = arith.constant 1.000000e+00 : f32
    %712 = vector.broadcast %cst_220 : f32 to vector<8x256xf32>
    %713 = arith.addf %712, %711 : vector<8x256xf32>
    %714 = arith.divf %712, %713 : vector<8x256xf32>
    %715 = tpu.iota {dimensions = array<i32: 0>} : vector<8x256xi32>
    %716 = tpu.iota {dimensions = array<i32: 1>} : vector<8x256xi32>
    %c43008_i32_221 = arith.constant 43008 : i32
    %717 = arith.muli %arg0, %c43008_i32_221 : i32
    %c26624_i32 = arith.constant 26624 : i32
    %718 = arith.addi %717, %c26624_i32 : i32
    %c256_i32_222 = arith.constant 256 : i32
    %719 = vector.broadcast %c256_i32_222 : i32 to vector<8x256xi32>
    %720 = arith.muli %715, %719 : vector<8x256xi32>
    %721 = vector.broadcast %718 : i32 to vector<8x256xi32>
    %722 = arith.addi %721, %720 : vector<8x256xi32>
    %723 = arith.addi %722, %716 : vector<8x256xi32>
    %c0_i32_223 = arith.constant 0 : i32
    %724 = vector.broadcast %c0_i32_223 : i32 to vector<8x256xi32>
    %725 = arith.addi %723, %724 : vector<8x256xi32>
    %c16_i32_224 = arith.constant 16 : i32
    %726 = vector.broadcast %c16_i32_224 : i32 to vector<8x256xi32>
    %727 = arith.shrui %725, %726 : vector<8x256xi32>
    %728 = arith.xori %725, %727 : vector<8x256xi32>
    %c2146121005_i32_225 = arith.constant 2146121005 : i32
    %729 = vector.broadcast %c2146121005_i32_225 : i32 to vector<8x256xi32>
    %730 = arith.muli %728, %729 : vector<8x256xi32>
    %c15_i32_226 = arith.constant 15 : i32
    %731 = vector.broadcast %c15_i32_226 : i32 to vector<8x256xi32>
    %732 = arith.shrui %730, %731 : vector<8x256xi32>
    %733 = arith.xori %730, %732 : vector<8x256xi32>
    %c-2073254261_i32_227 = arith.constant -2073254261 : i32
    %734 = vector.broadcast %c-2073254261_i32_227 : i32 to vector<8x256xi32>
    %735 = arith.muli %733, %734 : vector<8x256xi32>
    %c16_i32_228 = arith.constant 16 : i32
    %736 = vector.broadcast %c16_i32_228 : i32 to vector<8x256xi32>
    %737 = arith.shrui %735, %736 : vector<8x256xi32>
    %738 = arith.xori %735, %737 : vector<8x256xi32>
    %c16_i32_229 = arith.constant 16 : i32
    %739 = vector.broadcast %c16_i32_229 : i32 to vector<8x256xi32>
    %740 = arith.shrui %738, %739 : vector<8x256xi32>
    %741 = arith.xori %738, %740 : vector<8x256xi32>
    %c2146121005_i32_230 = arith.constant 2146121005 : i32
    %742 = vector.broadcast %c2146121005_i32_230 : i32 to vector<8x256xi32>
    %743 = arith.muli %741, %742 : vector<8x256xi32>
    %c15_i32_231 = arith.constant 15 : i32
    %744 = vector.broadcast %c15_i32_231 : i32 to vector<8x256xi32>
    %745 = arith.shrui %743, %744 : vector<8x256xi32>
    %746 = arith.xori %743, %745 : vector<8x256xi32>
    %c-2073254261_i32_232 = arith.constant -2073254261 : i32
    %747 = vector.broadcast %c-2073254261_i32_232 : i32 to vector<8x256xi32>
    %748 = arith.muli %746, %747 : vector<8x256xi32>
    %c16_i32_233 = arith.constant 16 : i32
    %749 = vector.broadcast %c16_i32_233 : i32 to vector<8x256xi32>
    %750 = arith.shrui %748, %749 : vector<8x256xi32>
    %751 = arith.xori %748, %750 : vector<8x256xi32>
    %c8_i32_234 = arith.constant 8 : i32
    %752 = vector.broadcast %c8_i32_234 : i32 to vector<8x256xi32>
    %753 = arith.shrui %751, %752 : vector<8x256xi32>
    %754 = arith.sitofp %753 : vector<8x256xi32> to vector<8x256xf32>
    %cst_235 = arith.constant 5.96046448E-8 : f32
    %755 = vector.broadcast %cst_235 : f32 to vector<8x256xf32>
    %756 = arith.mulf %754, %755 : vector<8x256xf32>
    %757 = arith.cmpf olt, %756, %714 : vector<8x256xf32>
    %758 = arith.extui %757 : vector<8x256xi1> to vector<8x256xi32>
    %759 = arith.sitofp %758 : vector<8x256xi32> to vector<8x256xf32>
    %760 = arith.truncf %759 : vector<8x256xf32> to vector<8x256xbf16>
    %cst_236 = arith.constant dense<0.000000e+00> : vector<8x128xf32>
    %761 = tpu.matmul %760, %0, %cst_236 {dimension_numbers = #tpu.dot_dimension_numbers<[1], [1], [0], [0], [0, 0, 1, 0], [], []>} : vector<8x256xbf16>, vector<128x256xbf16>, vector<8x128xf32> -> vector<8x128xf32>
    %762 = vector.broadcast %1 : vector<1x128xf32> to vector<8x128xf32>
    %763 = arith.addf %761, %762 : vector<8x128xf32>
    %764 = arith.negf %763 : vector<8x128xf32>
    %765 = math.exp %764 : vector<8x128xf32>
    %cst_237 = arith.constant 1.000000e+00 : f32
    %766 = vector.broadcast %cst_237 : f32 to vector<8x128xf32>
    %767 = arith.addf %766, %765 : vector<8x128xf32>
    %768 = arith.divf %766, %767 : vector<8x128xf32>
    %769 = tpu.iota {dimensions = array<i32: 0>} : vector<8x128xi32>
    %770 = tpu.iota {dimensions = array<i32: 1>} : vector<8x128xi32>
    %c43008_i32_238 = arith.constant 43008 : i32
    %771 = arith.muli %arg0, %c43008_i32_238 : i32
    %c28672_i32 = arith.constant 28672 : i32
    %772 = arith.addi %771, %c28672_i32 : i32
    %c128_i32_239 = arith.constant 128 : i32
    %773 = vector.broadcast %c128_i32_239 : i32 to vector<8x128xi32>
    %774 = arith.muli %769, %773 : vector<8x128xi32>
    %775 = vector.broadcast %772 : i32 to vector<8x128xi32>
    %776 = arith.addi %775, %774 : vector<8x128xi32>
    %777 = arith.addi %776, %770 : vector<8x128xi32>
    %c0_i32_240 = arith.constant 0 : i32
    %778 = vector.broadcast %c0_i32_240 : i32 to vector<8x128xi32>
    %779 = arith.addi %777, %778 : vector<8x128xi32>
    %c16_i32_241 = arith.constant 16 : i32
    %780 = vector.broadcast %c16_i32_241 : i32 to vector<8x128xi32>
    %781 = arith.shrui %779, %780 : vector<8x128xi32>
    %782 = arith.xori %779, %781 : vector<8x128xi32>
    %c2146121005_i32_242 = arith.constant 2146121005 : i32
    %783 = vector.broadcast %c2146121005_i32_242 : i32 to vector<8x128xi32>
    %784 = arith.muli %782, %783 : vector<8x128xi32>
    %c15_i32_243 = arith.constant 15 : i32
    %785 = vector.broadcast %c15_i32_243 : i32 to vector<8x128xi32>
    %786 = arith.shrui %784, %785 : vector<8x128xi32>
    %787 = arith.xori %784, %786 : vector<8x128xi32>
    %c-2073254261_i32_244 = arith.constant -2073254261 : i32
    %788 = vector.broadcast %c-2073254261_i32_244 : i32 to vector<8x128xi32>
    %789 = arith.muli %787, %788 : vector<8x128xi32>
    %c16_i32_245 = arith.constant 16 : i32
    %790 = vector.broadcast %c16_i32_245 : i32 to vector<8x128xi32>
    %791 = arith.shrui %789, %790 : vector<8x128xi32>
    %792 = arith.xori %789, %791 : vector<8x128xi32>
    %c16_i32_246 = arith.constant 16 : i32
    %793 = vector.broadcast %c16_i32_246 : i32 to vector<8x128xi32>
    %794 = arith.shrui %792, %793 : vector<8x128xi32>
    %795 = arith.xori %792, %794 : vector<8x128xi32>
    %c2146121005_i32_247 = arith.constant 2146121005 : i32
    %796 = vector.broadcast %c2146121005_i32_247 : i32 to vector<8x128xi32>
    %797 = arith.muli %795, %796 : vector<8x128xi32>
    %c15_i32_248 = arith.constant 15 : i32
    %798 = vector.broadcast %c15_i32_248 : i32 to vector<8x128xi32>
    %799 = arith.shrui %797, %798 : vector<8x128xi32>
    %800 = arith.xori %797, %799 : vector<8x128xi32>
    %c-2073254261_i32_249 = arith.constant -2073254261 : i32
    %801 = vector.broadcast %c-2073254261_i32_249 : i32 to vector<8x128xi32>
    %802 = arith.muli %800, %801 : vector<8x128xi32>
    %c16_i32_250 = arith.constant 16 : i32
    %803 = vector.broadcast %c16_i32_250 : i32 to vector<8x128xi32>
    %804 = arith.shrui %802, %803 : vector<8x128xi32>
    %805 = arith.xori %802, %804 : vector<8x128xi32>
    %c8_i32_251 = arith.constant 8 : i32
    %806 = vector.broadcast %c8_i32_251 : i32 to vector<8x128xi32>
    %807 = arith.shrui %805, %806 : vector<8x128xi32>
    %808 = arith.sitofp %807 : vector<8x128xi32> to vector<8x128xf32>
    %cst_252 = arith.constant 5.96046448E-8 : f32
    %809 = vector.broadcast %cst_252 : f32 to vector<8x128xf32>
    %810 = arith.mulf %808, %809 : vector<8x128xf32>
    %811 = arith.cmpf olt, %810, %768 : vector<8x128xf32>
    %812 = arith.extui %811 : vector<8x128xi1> to vector<8x128xi32>
    %813 = arith.sitofp %812 : vector<8x128xi32> to vector<8x128xf32>
    %814 = arith.truncf %813 : vector<8x128xf32> to vector<8x128xbf16>
    %cst_253 = arith.constant dense<0.000000e+00> : vector<8x256xf32>
    %815 = tpu.matmul %814, %0, %cst_253 {dimension_numbers = #tpu.dot_dimension_numbers<[1], [0], [0], [1], [0, 0, 1, 1], [], []>} : vector<8x128xbf16>, vector<128x256xbf16>, vector<8x256xf32> -> vector<8x256xf32>
    %816 = vector.broadcast %2 : vector<1x256xf32> to vector<8x256xf32>
    %817 = arith.addf %815, %816 : vector<8x256xf32>
    %818 = arith.negf %817 : vector<8x256xf32>
    %819 = math.exp %818 : vector<8x256xf32>
    %cst_254 = arith.constant 1.000000e+00 : f32
    %820 = vector.broadcast %cst_254 : f32 to vector<8x256xf32>
    %821 = arith.addf %820, %819 : vector<8x256xf32>
    %822 = arith.divf %820, %821 : vector<8x256xf32>
    %823 = tpu.iota {dimensions = array<i32: 0>} : vector<8x256xi32>
    %824 = tpu.iota {dimensions = array<i32: 1>} : vector<8x256xi32>
    %c43008_i32_255 = arith.constant 43008 : i32
    %825 = arith.muli %arg0, %c43008_i32_255 : i32
    %c30720_i32 = arith.constant 30720 : i32
    %826 = arith.addi %825, %c30720_i32 : i32
    %c256_i32_256 = arith.constant 256 : i32
    %827 = vector.broadcast %c256_i32_256 : i32 to vector<8x256xi32>
    %828 = arith.muli %823, %827 : vector<8x256xi32>
    %829 = vector.broadcast %826 : i32 to vector<8x256xi32>
    %830 = arith.addi %829, %828 : vector<8x256xi32>
    %831 = arith.addi %830, %824 : vector<8x256xi32>
    %c0_i32_257 = arith.constant 0 : i32
    %832 = vector.broadcast %c0_i32_257 : i32 to vector<8x256xi32>
    %833 = arith.addi %831, %832 : vector<8x256xi32>
    %c16_i32_258 = arith.constant 16 : i32
    %834 = vector.broadcast %c16_i32_258 : i32 to vector<8x256xi32>
    %835 = arith.shrui %833, %834 : vector<8x256xi32>
    %836 = arith.xori %833, %835 : vector<8x256xi32>
    %c2146121005_i32_259 = arith.constant 2146121005 : i32
    %837 = vector.broadcast %c2146121005_i32_259 : i32 to vector<8x256xi32>
    %838 = arith.muli %836, %837 : vector<8x256xi32>
    %c15_i32_260 = arith.constant 15 : i32
    %839 = vector.broadcast %c15_i32_260 : i32 to vector<8x256xi32>
    %840 = arith.shrui %838, %839 : vector<8x256xi32>
    %841 = arith.xori %838, %840 : vector<8x256xi32>
    %c-2073254261_i32_261 = arith.constant -2073254261 : i32
    %842 = vector.broadcast %c-2073254261_i32_261 : i32 to vector<8x256xi32>
    %843 = arith.muli %841, %842 : vector<8x256xi32>
    %c16_i32_262 = arith.constant 16 : i32
    %844 = vector.broadcast %c16_i32_262 : i32 to vector<8x256xi32>
    %845 = arith.shrui %843, %844 : vector<8x256xi32>
    %846 = arith.xori %843, %845 : vector<8x256xi32>
    %c16_i32_263 = arith.constant 16 : i32
    %847 = vector.broadcast %c16_i32_263 : i32 to vector<8x256xi32>
    %848 = arith.shrui %846, %847 : vector<8x256xi32>
    %849 = arith.xori %846, %848 : vector<8x256xi32>
    %c2146121005_i32_264 = arith.constant 2146121005 : i32
    %850 = vector.broadcast %c2146121005_i32_264 : i32 to vector<8x256xi32>
    %851 = arith.muli %849, %850 : vector<8x256xi32>
    %c15_i32_265 = arith.constant 15 : i32
    %852 = vector.broadcast %c15_i32_265 : i32 to vector<8x256xi32>
    %853 = arith.shrui %851, %852 : vector<8x256xi32>
    %854 = arith.xori %851, %853 : vector<8x256xi32>
    %c-2073254261_i32_266 = arith.constant -2073254261 : i32
    %855 = vector.broadcast %c-2073254261_i32_266 : i32 to vector<8x256xi32>
    %856 = arith.muli %854, %855 : vector<8x256xi32>
    %c16_i32_267 = arith.constant 16 : i32
    %857 = vector.broadcast %c16_i32_267 : i32 to vector<8x256xi32>
    %858 = arith.shrui %856, %857 : vector<8x256xi32>
    %859 = arith.xori %856, %858 : vector<8x256xi32>
    %c8_i32_268 = arith.constant 8 : i32
    %860 = vector.broadcast %c8_i32_268 : i32 to vector<8x256xi32>
    %861 = arith.shrui %859, %860 : vector<8x256xi32>
    %862 = arith.sitofp %861 : vector<8x256xi32> to vector<8x256xf32>
    %cst_269 = arith.constant 5.96046448E-8 : f32
    %863 = vector.broadcast %cst_269 : f32 to vector<8x256xf32>
    %864 = arith.mulf %862, %863 : vector<8x256xf32>
    %865 = arith.cmpf olt, %864, %822 : vector<8x256xf32>
    %866 = arith.extui %865 : vector<8x256xi1> to vector<8x256xi32>
    %867 = arith.sitofp %866 : vector<8x256xi32> to vector<8x256xf32>
    %868 = arith.truncf %867 : vector<8x256xf32> to vector<8x256xbf16>
    %cst_270 = arith.constant dense<0.000000e+00> : vector<8x128xf32>
    %869 = tpu.matmul %868, %0, %cst_270 {dimension_numbers = #tpu.dot_dimension_numbers<[1], [1], [0], [0], [0, 0, 1, 0], [], []>} : vector<8x256xbf16>, vector<128x256xbf16>, vector<8x128xf32> -> vector<8x128xf32>
    %870 = vector.broadcast %1 : vector<1x128xf32> to vector<8x128xf32>
    %871 = arith.addf %869, %870 : vector<8x128xf32>
    %872 = arith.negf %871 : vector<8x128xf32>
    %873 = math.exp %872 : vector<8x128xf32>
    %cst_271 = arith.constant 1.000000e+00 : f32
    %874 = vector.broadcast %cst_271 : f32 to vector<8x128xf32>
    %875 = arith.addf %874, %873 : vector<8x128xf32>
    %876 = arith.divf %874, %875 : vector<8x128xf32>
    %877 = tpu.iota {dimensions = array<i32: 0>} : vector<8x128xi32>
    %878 = tpu.iota {dimensions = array<i32: 1>} : vector<8x128xi32>
    %c43008_i32_272 = arith.constant 43008 : i32
    %879 = arith.muli %arg0, %c43008_i32_272 : i32
    %c32768_i32 = arith.constant 32768 : i32
    %880 = arith.addi %879, %c32768_i32 : i32
    %c128_i32_273 = arith.constant 128 : i32
    %881 = vector.broadcast %c128_i32_273 : i32 to vector<8x128xi32>
    %882 = arith.muli %877, %881 : vector<8x128xi32>
    %883 = vector.broadcast %880 : i32 to vector<8x128xi32>
    %884 = arith.addi %883, %882 : vector<8x128xi32>
    %885 = arith.addi %884, %878 : vector<8x128xi32>
    %c0_i32_274 = arith.constant 0 : i32
    %886 = vector.broadcast %c0_i32_274 : i32 to vector<8x128xi32>
    %887 = arith.addi %885, %886 : vector<8x128xi32>
    %c16_i32_275 = arith.constant 16 : i32
    %888 = vector.broadcast %c16_i32_275 : i32 to vector<8x128xi32>
    %889 = arith.shrui %887, %888 : vector<8x128xi32>
    %890 = arith.xori %887, %889 : vector<8x128xi32>
    %c2146121005_i32_276 = arith.constant 2146121005 : i32
    %891 = vector.broadcast %c2146121005_i32_276 : i32 to vector<8x128xi32>
    %892 = arith.muli %890, %891 : vector<8x128xi32>
    %c15_i32_277 = arith.constant 15 : i32
    %893 = vector.broadcast %c15_i32_277 : i32 to vector<8x128xi32>
    %894 = arith.shrui %892, %893 : vector<8x128xi32>
    %895 = arith.xori %892, %894 : vector<8x128xi32>
    %c-2073254261_i32_278 = arith.constant -2073254261 : i32
    %896 = vector.broadcast %c-2073254261_i32_278 : i32 to vector<8x128xi32>
    %897 = arith.muli %895, %896 : vector<8x128xi32>
    %c16_i32_279 = arith.constant 16 : i32
    %898 = vector.broadcast %c16_i32_279 : i32 to vector<8x128xi32>
    %899 = arith.shrui %897, %898 : vector<8x128xi32>
    %900 = arith.xori %897, %899 : vector<8x128xi32>
    %c16_i32_280 = arith.constant 16 : i32
    %901 = vector.broadcast %c16_i32_280 : i32 to vector<8x128xi32>
    %902 = arith.shrui %900, %901 : vector<8x128xi32>
    %903 = arith.xori %900, %902 : vector<8x128xi32>
    %c2146121005_i32_281 = arith.constant 2146121005 : i32
    %904 = vector.broadcast %c2146121005_i32_281 : i32 to vector<8x128xi32>
    %905 = arith.muli %903, %904 : vector<8x128xi32>
    %c15_i32_282 = arith.constant 15 : i32
    %906 = vector.broadcast %c15_i32_282 : i32 to vector<8x128xi32>
    %907 = arith.shrui %905, %906 : vector<8x128xi32>
    %908 = arith.xori %905, %907 : vector<8x128xi32>
    %c-2073254261_i32_283 = arith.constant -2073254261 : i32
    %909 = vector.broadcast %c-2073254261_i32_283 : i32 to vector<8x128xi32>
    %910 = arith.muli %908, %909 : vector<8x128xi32>
    %c16_i32_284 = arith.constant 16 : i32
    %911 = vector.broadcast %c16_i32_284 : i32 to vector<8x128xi32>
    %912 = arith.shrui %910, %911 : vector<8x128xi32>
    %913 = arith.xori %910, %912 : vector<8x128xi32>
    %c8_i32_285 = arith.constant 8 : i32
    %914 = vector.broadcast %c8_i32_285 : i32 to vector<8x128xi32>
    %915 = arith.shrui %913, %914 : vector<8x128xi32>
    %916 = arith.sitofp %915 : vector<8x128xi32> to vector<8x128xf32>
    %cst_286 = arith.constant 5.96046448E-8 : f32
    %917 = vector.broadcast %cst_286 : f32 to vector<8x128xf32>
    %918 = arith.mulf %916, %917 : vector<8x128xf32>
    %919 = arith.cmpf olt, %918, %876 : vector<8x128xf32>
    %920 = arith.extui %919 : vector<8x128xi1> to vector<8x128xi32>
    %921 = arith.sitofp %920 : vector<8x128xi32> to vector<8x128xf32>
    %922 = arith.truncf %921 : vector<8x128xf32> to vector<8x128xbf16>
    %cst_287 = arith.constant dense<0.000000e+00> : vector<8x256xf32>
    %923 = tpu.matmul %922, %0, %cst_287 {dimension_numbers = #tpu.dot_dimension_numbers<[1], [0], [0], [1], [0, 0, 1, 1], [], []>} : vector<8x128xbf16>, vector<128x256xbf16>, vector<8x256xf32> -> vector<8x256xf32>
    %924 = vector.broadcast %2 : vector<1x256xf32> to vector<8x256xf32>
    %925 = arith.addf %923, %924 : vector<8x256xf32>
    %926 = arith.negf %925 : vector<8x256xf32>
    %927 = math.exp %926 : vector<8x256xf32>
    %cst_288 = arith.constant 1.000000e+00 : f32
    %928 = vector.broadcast %cst_288 : f32 to vector<8x256xf32>
    %929 = arith.addf %928, %927 : vector<8x256xf32>
    %930 = arith.divf %928, %929 : vector<8x256xf32>
    %931 = tpu.iota {dimensions = array<i32: 0>} : vector<8x256xi32>
    %932 = tpu.iota {dimensions = array<i32: 1>} : vector<8x256xi32>
    %c43008_i32_289 = arith.constant 43008 : i32
    %933 = arith.muli %arg0, %c43008_i32_289 : i32
    %c34816_i32 = arith.constant 34816 : i32
    %934 = arith.addi %933, %c34816_i32 : i32
    %c256_i32_290 = arith.constant 256 : i32
    %935 = vector.broadcast %c256_i32_290 : i32 to vector<8x256xi32>
    %936 = arith.muli %931, %935 : vector<8x256xi32>
    %937 = vector.broadcast %934 : i32 to vector<8x256xi32>
    %938 = arith.addi %937, %936 : vector<8x256xi32>
    %939 = arith.addi %938, %932 : vector<8x256xi32>
    %c0_i32_291 = arith.constant 0 : i32
    %940 = vector.broadcast %c0_i32_291 : i32 to vector<8x256xi32>
    %941 = arith.addi %939, %940 : vector<8x256xi32>
    %c16_i32_292 = arith.constant 16 : i32
    %942 = vector.broadcast %c16_i32_292 : i32 to vector<8x256xi32>
    %943 = arith.shrui %941, %942 : vector<8x256xi32>
    %944 = arith.xori %941, %943 : vector<8x256xi32>
    %c2146121005_i32_293 = arith.constant 2146121005 : i32
    %945 = vector.broadcast %c2146121005_i32_293 : i32 to vector<8x256xi32>
    %946 = arith.muli %944, %945 : vector<8x256xi32>
    %c15_i32_294 = arith.constant 15 : i32
    %947 = vector.broadcast %c15_i32_294 : i32 to vector<8x256xi32>
    %948 = arith.shrui %946, %947 : vector<8x256xi32>
    %949 = arith.xori %946, %948 : vector<8x256xi32>
    %c-2073254261_i32_295 = arith.constant -2073254261 : i32
    %950 = vector.broadcast %c-2073254261_i32_295 : i32 to vector<8x256xi32>
    %951 = arith.muli %949, %950 : vector<8x256xi32>
    %c16_i32_296 = arith.constant 16 : i32
    %952 = vector.broadcast %c16_i32_296 : i32 to vector<8x256xi32>
    %953 = arith.shrui %951, %952 : vector<8x256xi32>
    %954 = arith.xori %951, %953 : vector<8x256xi32>
    %c16_i32_297 = arith.constant 16 : i32
    %955 = vector.broadcast %c16_i32_297 : i32 to vector<8x256xi32>
    %956 = arith.shrui %954, %955 : vector<8x256xi32>
    %957 = arith.xori %954, %956 : vector<8x256xi32>
    %c2146121005_i32_298 = arith.constant 2146121005 : i32
    %958 = vector.broadcast %c2146121005_i32_298 : i32 to vector<8x256xi32>
    %959 = arith.muli %957, %958 : vector<8x256xi32>
    %c15_i32_299 = arith.constant 15 : i32
    %960 = vector.broadcast %c15_i32_299 : i32 to vector<8x256xi32>
    %961 = arith.shrui %959, %960 : vector<8x256xi32>
    %962 = arith.xori %959, %961 : vector<8x256xi32>
    %c-2073254261_i32_300 = arith.constant -2073254261 : i32
    %963 = vector.broadcast %c-2073254261_i32_300 : i32 to vector<8x256xi32>
    %964 = arith.muli %962, %963 : vector<8x256xi32>
    %c16_i32_301 = arith.constant 16 : i32
    %965 = vector.broadcast %c16_i32_301 : i32 to vector<8x256xi32>
    %966 = arith.shrui %964, %965 : vector<8x256xi32>
    %967 = arith.xori %964, %966 : vector<8x256xi32>
    %c8_i32_302 = arith.constant 8 : i32
    %968 = vector.broadcast %c8_i32_302 : i32 to vector<8x256xi32>
    %969 = arith.shrui %967, %968 : vector<8x256xi32>
    %970 = arith.sitofp %969 : vector<8x256xi32> to vector<8x256xf32>
    %cst_303 = arith.constant 5.96046448E-8 : f32
    %971 = vector.broadcast %cst_303 : f32 to vector<8x256xf32>
    %972 = arith.mulf %970, %971 : vector<8x256xf32>
    %973 = arith.cmpf olt, %972, %930 : vector<8x256xf32>
    %974 = arith.extui %973 : vector<8x256xi1> to vector<8x256xi32>
    %975 = arith.sitofp %974 : vector<8x256xi32> to vector<8x256xf32>
    %976 = arith.truncf %975 : vector<8x256xf32> to vector<8x256xbf16>
    %cst_304 = arith.constant dense<0.000000e+00> : vector<8x128xf32>
    %977 = tpu.matmul %976, %0, %cst_304 {dimension_numbers = #tpu.dot_dimension_numbers<[1], [1], [0], [0], [0, 0, 1, 0], [], []>} : vector<8x256xbf16>, vector<128x256xbf16>, vector<8x128xf32> -> vector<8x128xf32>
    %978 = vector.broadcast %1 : vector<1x128xf32> to vector<8x128xf32>
    %979 = arith.addf %977, %978 : vector<8x128xf32>
    %980 = arith.negf %979 : vector<8x128xf32>
    %981 = math.exp %980 : vector<8x128xf32>
    %cst_305 = arith.constant 1.000000e+00 : f32
    %982 = vector.broadcast %cst_305 : f32 to vector<8x128xf32>
    %983 = arith.addf %982, %981 : vector<8x128xf32>
    %984 = arith.divf %982, %983 : vector<8x128xf32>
    %985 = tpu.iota {dimensions = array<i32: 0>} : vector<8x128xi32>
    %986 = tpu.iota {dimensions = array<i32: 1>} : vector<8x128xi32>
    %c43008_i32_306 = arith.constant 43008 : i32
    %987 = arith.muli %arg0, %c43008_i32_306 : i32
    %c36864_i32 = arith.constant 36864 : i32
    %988 = arith.addi %987, %c36864_i32 : i32
    %c128_i32_307 = arith.constant 128 : i32
    %989 = vector.broadcast %c128_i32_307 : i32 to vector<8x128xi32>
    %990 = arith.muli %985, %989 : vector<8x128xi32>
    %991 = vector.broadcast %988 : i32 to vector<8x128xi32>
    %992 = arith.addi %991, %990 : vector<8x128xi32>
    %993 = arith.addi %992, %986 : vector<8x128xi32>
    %c0_i32_308 = arith.constant 0 : i32
    %994 = vector.broadcast %c0_i32_308 : i32 to vector<8x128xi32>
    %995 = arith.addi %993, %994 : vector<8x128xi32>
    %c16_i32_309 = arith.constant 16 : i32
    %996 = vector.broadcast %c16_i32_309 : i32 to vector<8x128xi32>
    %997 = arith.shrui %995, %996 : vector<8x128xi32>
    %998 = arith.xori %995, %997 : vector<8x128xi32>
    %c2146121005_i32_310 = arith.constant 2146121005 : i32
    %999 = vector.broadcast %c2146121005_i32_310 : i32 to vector<8x128xi32>
    %1000 = arith.muli %998, %999 : vector<8x128xi32>
    %c15_i32_311 = arith.constant 15 : i32
    %1001 = vector.broadcast %c15_i32_311 : i32 to vector<8x128xi32>
    %1002 = arith.shrui %1000, %1001 : vector<8x128xi32>
    %1003 = arith.xori %1000, %1002 : vector<8x128xi32>
    %c-2073254261_i32_312 = arith.constant -2073254261 : i32
    %1004 = vector.broadcast %c-2073254261_i32_312 : i32 to vector<8x128xi32>
    %1005 = arith.muli %1003, %1004 : vector<8x128xi32>
    %c16_i32_313 = arith.constant 16 : i32
    %1006 = vector.broadcast %c16_i32_313 : i32 to vector<8x128xi32>
    %1007 = arith.shrui %1005, %1006 : vector<8x128xi32>
    %1008 = arith.xori %1005, %1007 : vector<8x128xi32>
    %c16_i32_314 = arith.constant 16 : i32
    %1009 = vector.broadcast %c16_i32_314 : i32 to vector<8x128xi32>
    %1010 = arith.shrui %1008, %1009 : vector<8x128xi32>
    %1011 = arith.xori %1008, %1010 : vector<8x128xi32>
    %c2146121005_i32_315 = arith.constant 2146121005 : i32
    %1012 = vector.broadcast %c2146121005_i32_315 : i32 to vector<8x128xi32>
    %1013 = arith.muli %1011, %1012 : vector<8x128xi32>
    %c15_i32_316 = arith.constant 15 : i32
    %1014 = vector.broadcast %c15_i32_316 : i32 to vector<8x128xi32>
    %1015 = arith.shrui %1013, %1014 : vector<8x128xi32>
    %1016 = arith.xori %1013, %1015 : vector<8x128xi32>
    %c-2073254261_i32_317 = arith.constant -2073254261 : i32
    %1017 = vector.broadcast %c-2073254261_i32_317 : i32 to vector<8x128xi32>
    %1018 = arith.muli %1016, %1017 : vector<8x128xi32>
    %c16_i32_318 = arith.constant 16 : i32
    %1019 = vector.broadcast %c16_i32_318 : i32 to vector<8x128xi32>
    %1020 = arith.shrui %1018, %1019 : vector<8x128xi32>
    %1021 = arith.xori %1018, %1020 : vector<8x128xi32>
    %c8_i32_319 = arith.constant 8 : i32
    %1022 = vector.broadcast %c8_i32_319 : i32 to vector<8x128xi32>
    %1023 = arith.shrui %1021, %1022 : vector<8x128xi32>
    %1024 = arith.sitofp %1023 : vector<8x128xi32> to vector<8x128xf32>
    %cst_320 = arith.constant 5.96046448E-8 : f32
    %1025 = vector.broadcast %cst_320 : f32 to vector<8x128xf32>
    %1026 = arith.mulf %1024, %1025 : vector<8x128xf32>
    %1027 = arith.cmpf olt, %1026, %984 : vector<8x128xf32>
    %1028 = arith.extui %1027 : vector<8x128xi1> to vector<8x128xi32>
    %1029 = arith.sitofp %1028 : vector<8x128xi32> to vector<8x128xf32>
    %1030 = arith.truncf %1029 : vector<8x128xf32> to vector<8x128xbf16>
    %cst_321 = arith.constant dense<0.000000e+00> : vector<8x256xf32>
    %1031 = tpu.matmul %1030, %0, %cst_321 {dimension_numbers = #tpu.dot_dimension_numbers<[1], [0], [0], [1], [0, 0, 1, 1], [], []>} : vector<8x128xbf16>, vector<128x256xbf16>, vector<8x256xf32> -> vector<8x256xf32>
    %1032 = vector.broadcast %2 : vector<1x256xf32> to vector<8x256xf32>
    %1033 = arith.addf %1031, %1032 : vector<8x256xf32>
    %1034 = arith.negf %1033 : vector<8x256xf32>
    %1035 = math.exp %1034 : vector<8x256xf32>
    %cst_322 = arith.constant 1.000000e+00 : f32
    %1036 = vector.broadcast %cst_322 : f32 to vector<8x256xf32>
    %1037 = arith.addf %1036, %1035 : vector<8x256xf32>
    %1038 = arith.divf %1036, %1037 : vector<8x256xf32>
    %1039 = tpu.iota {dimensions = array<i32: 0>} : vector<8x256xi32>
    %1040 = tpu.iota {dimensions = array<i32: 1>} : vector<8x256xi32>
    %c43008_i32_323 = arith.constant 43008 : i32
    %1041 = arith.muli %arg0, %c43008_i32_323 : i32
    %c38912_i32 = arith.constant 38912 : i32
    %1042 = arith.addi %1041, %c38912_i32 : i32
    %c256_i32_324 = arith.constant 256 : i32
    %1043 = vector.broadcast %c256_i32_324 : i32 to vector<8x256xi32>
    %1044 = arith.muli %1039, %1043 : vector<8x256xi32>
    %1045 = vector.broadcast %1042 : i32 to vector<8x256xi32>
    %1046 = arith.addi %1045, %1044 : vector<8x256xi32>
    %1047 = arith.addi %1046, %1040 : vector<8x256xi32>
    %c0_i32_325 = arith.constant 0 : i32
    %1048 = vector.broadcast %c0_i32_325 : i32 to vector<8x256xi32>
    %1049 = arith.addi %1047, %1048 : vector<8x256xi32>
    %c16_i32_326 = arith.constant 16 : i32
    %1050 = vector.broadcast %c16_i32_326 : i32 to vector<8x256xi32>
    %1051 = arith.shrui %1049, %1050 : vector<8x256xi32>
    %1052 = arith.xori %1049, %1051 : vector<8x256xi32>
    %c2146121005_i32_327 = arith.constant 2146121005 : i32
    %1053 = vector.broadcast %c2146121005_i32_327 : i32 to vector<8x256xi32>
    %1054 = arith.muli %1052, %1053 : vector<8x256xi32>
    %c15_i32_328 = arith.constant 15 : i32
    %1055 = vector.broadcast %c15_i32_328 : i32 to vector<8x256xi32>
    %1056 = arith.shrui %1054, %1055 : vector<8x256xi32>
    %1057 = arith.xori %1054, %1056 : vector<8x256xi32>
    %c-2073254261_i32_329 = arith.constant -2073254261 : i32
    %1058 = vector.broadcast %c-2073254261_i32_329 : i32 to vector<8x256xi32>
    %1059 = arith.muli %1057, %1058 : vector<8x256xi32>
    %c16_i32_330 = arith.constant 16 : i32
    %1060 = vector.broadcast %c16_i32_330 : i32 to vector<8x256xi32>
    %1061 = arith.shrui %1059, %1060 : vector<8x256xi32>
    %1062 = arith.xori %1059, %1061 : vector<8x256xi32>
    %c16_i32_331 = arith.constant 16 : i32
    %1063 = vector.broadcast %c16_i32_331 : i32 to vector<8x256xi32>
    %1064 = arith.shrui %1062, %1063 : vector<8x256xi32>
    %1065 = arith.xori %1062, %1064 : vector<8x256xi32>
    %c2146121005_i32_332 = arith.constant 2146121005 : i32
    %1066 = vector.broadcast %c2146121005_i32_332 : i32 to vector<8x256xi32>
    %1067 = arith.muli %1065, %1066 : vector<8x256xi32>
    %c15_i32_333 = arith.constant 15 : i32
    %1068 = vector.broadcast %c15_i32_333 : i32 to vector<8x256xi32>
    %1069 = arith.shrui %1067, %1068 : vector<8x256xi32>
    %1070 = arith.xori %1067, %1069 : vector<8x256xi32>
    %c-2073254261_i32_334 = arith.constant -2073254261 : i32
    %1071 = vector.broadcast %c-2073254261_i32_334 : i32 to vector<8x256xi32>
    %1072 = arith.muli %1070, %1071 : vector<8x256xi32>
    %c16_i32_335 = arith.constant 16 : i32
    %1073 = vector.broadcast %c16_i32_335 : i32 to vector<8x256xi32>
    %1074 = arith.shrui %1072, %1073 : vector<8x256xi32>
    %1075 = arith.xori %1072, %1074 : vector<8x256xi32>
    %c8_i32_336 = arith.constant 8 : i32
    %1076 = vector.broadcast %c8_i32_336 : i32 to vector<8x256xi32>
    %1077 = arith.shrui %1075, %1076 : vector<8x256xi32>
    %1078 = arith.sitofp %1077 : vector<8x256xi32> to vector<8x256xf32>
    %cst_337 = arith.constant 5.96046448E-8 : f32
    %1079 = vector.broadcast %cst_337 : f32 to vector<8x256xf32>
    %1080 = arith.mulf %1078, %1079 : vector<8x256xf32>
    %1081 = arith.cmpf olt, %1080, %1038 : vector<8x256xf32>
    %1082 = arith.extui %1081 : vector<8x256xi1> to vector<8x256xi32>
    %1083 = arith.sitofp %1082 : vector<8x256xi32> to vector<8x256xf32>
    %c0_338 = arith.constant 0 : index
    %c0_339 = arith.constant 0 : index
    %1084 = vector.load %arg5[%c0_338, %c0_339] : memref<8x256xf32, #tpu.memory_space<vmem>>, vector<8x256xf32>
    tpu.vector_store %arg5[%c0_338, %c0_339], %1083 {strides = array<i32>} : memref<8x256xf32, #tpu.memory_space<vmem>>, vector<8x256xf32>,
    return
  }
  func.func @transform_0(%arg0: i32) -> (i32, i32) {
    %c0_i32 = arith.constant 0 : i32
    %c0_i32_0 = arith.constant 0 : i32
    return %arg0, %c0_i32 : i32, i32
  }
  func.func @transform_1(%arg0: i32) -> (i32, i32) {
    %c0_i32 = arith.constant 0 : i32
    %c0_i32_0 = arith.constant 0 : i32
    %c0_i32_1 = arith.constant 0 : i32
    return %c0_i32, %c0_i32_0 : i32, i32
  }
  func.func @transform_2(%arg0: i32) -> (i32, i32) {
    %c0_i32 = arith.constant 0 : i32
    %c0_i32_0 = arith.constant 0 : i32
    %c0_i32_1 = arith.constant 0 : i32
    return %c0_i32, %c0_i32_0 : i32, i32
  }
  func.func @transform_3(%arg0: i32) -> (i32, i32) {
    %c0_i32 = arith.constant 0 : i32
    %c0_i32_0 = arith.constant 0 : i32
    %c0_i32_1 = arith.constant 0 : i32
    return %c0_i32, %c0_i32_0 : i32, i32
  }
  func.func @transform_4(%arg0: i32) -> (i32, i32) {
    %c0_i32 = arith.constant 0 : i32
    %c0_i32_0 = arith.constant 0 : i32
    return %arg0, %c0_i32 : i32, i32
  }
}

</mosaic_0001>

<bundles_post_ra>
// kernel: tpu_custom_call.1
= control target key start
LH: loop header
LB: loop body
LE: loop exit
PB: predicated region body
PF: predicated region fallthrough
CT: control target
= control target key end

     0   :  { %9 = vsyncpa [#allocation3], 0  ;;  %s3056_s0 = inlined_call_operand.hbm [shape: f32[8,256], index: 0, kind: input, shape index: {}]   ;;  %s3057_s1 = inlined_call_operand.hbm [shape: bf16[128,256], index: 1, kind: input, shape index: {}]   ;;  %s3058_s2 = inlined_call_operand.hbm [shape: f32[1,128], index: 2, kind: input, shape index: {}]   ;;  %s3059_s3 = inlined_call_operand.vmem [shape: f32[1,256], index: 3, kind: input, shape index: {}]   ;;  %s3060_s4 = inlined_call_operand.hbm [shape: f32[8,256], index: 4, kind: output, shape index: {}]  }
   0x1   :  { %10 = vsyncpa [#allocation6], 0  ;;  %s27_s17 = sshll.u32 %s3057_s1, 4  ;;  %s28_s17 = int_to_ptr.hbm [resolvable:$true] %s27_s17 }
   0x2   :  { %11 = vsyncpa [#allocation4], 0  ;;  %s2515_s18 = smov [#allocation5]   ;;  %s17_s22 = sshll.u32 %s3056_s0, 4  ;;  %s18_s22 = int_to_ptr.hbm [resolvable:$true] %s17_s22 }
   0x3   :  { %s29_s19 = sshll.u32 %s2515_s18, 4  ;;  %s2516_s23 = smov 128   ;;  %s30_s19 = int_to_ptr.vmem [resolvable:$true] %s29_s19 }
   0x4   :  { %s2517_s24 = smov 8   ;;  %s2518_s25 = smov [#allocation2]  }
   0x5   :  { %35 = dma.hbm_to_vmem [thread:$0]  %s28_s17, 2048, %s30_s19, [#allocation6], %s2516_s23, %s2516_s23, %s2517_s24  }
   0x6   :  { %s19_s26 = sshll.u32 %s2518_s25, 4  ;;  %s41_s29 = sshll.u32 %s3058_s2, 4  ;;  %s20_s26 = int_to_ptr.vmem [resolvable:$true] %s19_s26  ;;  %s42_s29 = int_to_ptr.hbm [resolvable:$true] %s41_s29 }
   0x7   :  { %22 = dma.hbm_to_vmem [thread:$0]  %s18_s22, 256, %s20_s26, [#allocation3]  }
   0x8   :  { %s2519_s1 = smov [#allocation7]  }
   0x9   :  { %s43_s30 = sshll.u32 %s2519_s1, 4  ;;  %s44_s30 = int_to_ptr.vmem [resolvable:$true] %s43_s30 }
   0xa   :  { %46 = dma.hbm_to_vmem [thread:$0]  %s42_s29, 16, %s44_s30, [#allocation6]  }
   0xb   :  { %2509 = dma.done.wait [#allocation3], 256  }
   0xc   :  { %2510 = vsyncadd [#allocation3], 4294967040 }
   0xd   :  { %2511 = dma.done.wait [#allocation6], 2064  }
   0xe   :  { %2512 = vsyncadd [#allocation6], 4294965232  ;;  %v2124_v0 = vld [vmem:[#allocation5 + $0x70] sm:$0xf]  ;;  %v2281_v1 = vld [vmem:[#allocation5 + $0x74] sm:$0xf0]  ;;  %v211_v52 = vlaneseq }
   0xf   :  { %v2280_v2 = vld [vmem:[#allocation5 + $0x74] sm:$0xf]  ;;  %v2557_v3 = vor.u32 %v2281_v1, %v2124_v0  ;;  %v2126_v4 = vld [vmem:[#allocation5 + $0x78] sm:$0xf0]  ;;  %v2116_v6 = vld [vmem:[#allocation5 + $0x60] sm:$0xf] }
  0x10   :  { %v2559_v5 = vor.u32 %v2280_v2, %v2126_v4  ;;  %v2279_v7 = vld [vmem:[#allocation5 + $0x64] sm:$0xf0]  ;;  %v2278_v8 = vld [vmem:[#allocation5 + $0x64] sm:$0xf]  ;;  %v2118_v9 = vld [vmem:[#allocation5 + $0x68] sm:$0xf0] }
  0x11   :  { %166 = vmatpush.bf16.xpose.msra.mxu0 %v2557_v3  ;;  %248 = vmatpush.bf16.msra.mxu2 %v2557_v3  ;;  %v2565_v10 = vor.u32 %v2279_v7, %v2116_v6  ;;  %v2567_v11 = vor.u32 %v2278_v8, %v2118_v9  ;;  %v2108_v12 = vld [vmem:[#allocation5 + $0x50] sm:$0xf]  ;;  %v2277_v13 = vld [vmem:[#allocation5 + $0x54] sm:$0xf0]  ;;  %v2276_v14 = vld [vmem:[#allocation5 + $0x54] sm:$0xf] }
  0x12   :  { %179 = vmatpush.bf16.xpose.msra.mxu1 %v2559_v5  ;;  %261 = vmatpush.bf16.msra.mxu3 %v2559_v5  ;;  %v2110_v15 = vld [vmem:[#allocation5 + $0x58] sm:$0xf0]  ;;  %v2571_v16 = vor.u32 %v2277_v13, %v2108_v12  ;;  %v2100_v18 = vld [vmem:[#allocation5 + $0x40] sm:$0xf]  ;;  %v2275_v19 = vld [vmem:[#allocation5 + $0x44] sm:$0xf0] }
  0x13   :  { %v2573_v17 = vor.u32 %v2276_v14, %v2110_v15  ;;  %v2274_v20 = vld [vmem:[#allocation5 + $0x44] sm:$0xf]  ;;  %v2102_v21 = vld [vmem:[#allocation5 + $0x48] sm:$0xf0]  ;;  %v2579_v22 = vor.u32 %v2275_v19, %v2100_v18  ;;  %v2092_v24 = vld [vmem:[#allocation5 + $0x30] sm:$0xf] }
  0x14   :  { %v2581_v23 = vor.u32 %v2274_v20, %v2102_v21  ;;  %v2273_v25 = vld [vmem:[#allocation5 + $0x34] sm:$0xf0]  ;;  %v2272_v26 = vld [vmem:[#allocation5 + $0x34] sm:$0xf]  ;;  %v2094_v27 = vld [vmem:[#allocation5 + $0x38] sm:$0xf0] }
  0x15   :  { %249 = vmatpush.bf16.msra.mxu2 %v2565_v10  ;;  %v2585_v28 = vor.u32 %v2273_v25, %v2092_v24  ;;  %v2587_v29 = vor.u32 %v2272_v26, %v2094_v27  ;;  %v2084_v30 = vld [vmem:[#allocation5 + $0x20] sm:$0xf]  ;;  %v2271_v31 = vld [vmem:[#allocation5 + $0x24] sm:$0xf0]  ;;  %v2270_v32 = vld [vmem:[#allocation5 + $0x24] sm:$0xf] }
  0x16   :  { %262 = vmatpush.bf16.msra.mxu3 %v2567_v11  ;;  %v2086_v33 = vld [vmem:[#allocation5 + $0x28] sm:$0xf0]  ;;  %v2593_v34 = vor.u32 %v2271_v31, %v2084_v30  ;;  %v2076_v36 = vld [vmem:[#allocation5 + $0x10] sm:$0xf]  ;;  %v2269_v37 = vld [vmem:[#allocation5 + $0x14] sm:$0xf0] }
  0x17   :  { %v2595_v35 = vor.u32 %v2270_v32, %v2086_v33  ;;  %v2268_v38 = vld [vmem:[#allocation5 + $0x14] sm:$0xf]  ;;  %v2078_v39 = vld [vmem:[#allocation5 + $0x18] sm:$0xf0]  ;;  %v2599_v40 = vor.u32 %v2269_v37, %v2076_v36  ;;  %v2068_v42 = vld [vmem:[#allocation5] sm:$0xf] }
  0x18   :  { %v2601_v41 = vor.u32 %v2268_v38, %v2078_v39  ;;  %v2267_v43 = vld [vmem:[#allocation5 + $0x4] sm:$0xf0]  ;;  %v2266_v44 = vld [vmem:[#allocation5 + $0x4] sm:$0xf]  ;;  %v2070_v45 = vld [vmem:[#allocation5 + $0x8] sm:$0xf0] }
  0x19   :  { %167 = vmatpush.bf16.xpose.msra.mxu0 %v2565_v10  ;;  %250 = vmatpush.bf16.msra.mxu2 %v2571_v16  ;;  %v2607_v46 = vor.u32 %v2267_v43, %v2068_v42  ;;  %v2609_v47 = vor.u32 %v2266_v44, %v2070_v45  ;;  %v79_v48 = vld [vmem:[#allocation2] sm:$0xff]  ;;  %v80_v49 = vld [vmem:[#allocation2 + $0x8] sm:$0xff]  ;;  %v2669_v53 = vshrl.u32 %v211_v52, 7  ;;  %v2671_v54 = vand.u32 127, %v211_v52  ;;  %v2678_v4 = vld [vmem:[#allocation7] ss:$0 sm:$0xff] }
  0x1a   :  { %180 = vmatpush.bf16.xpose.msra.mxu1 %v2567_v11  ;;  %263 = vmatpush.bf16.msra.mxu3 %v2573_v17  ;;  %v81_v50 = vpack.c.bf16 %v79_v48, %v79_v48  ;;  %v82_v51 = vpack.c.bf16 %v80_v49, %v80_v49  ;;  %v2520_v48 = vmov 1.0|1.0   ;;  %s2055_s8 = sshll.u32 %s3060_s4, 4  ;;  %s2056_s8 = int_to_ptr.hbm [resolvable:$true] %s2055_s8 }
  0x1b   :  { %v2674_v55 = vmul.u32 128, %v2669_v53  ;;  %v2700_v49 = vmul.u32 256, %v2669_v53 }
  0x1d   :  { %251 = vmatpush.bf16.msra.mxu2 %v2579_v22  ;;  %v219_v56 = vadd.s32 %v2674_v55, %v2671_v54 }
  0x1e   :  { %264 = vmatpush.bf16.msra.mxu3 %v2581_v23 }
  0x1f   :  { %v220_v57 = vshrl.u32 %v219_v56, 16 }
  0x21   :  { %168 = vmatpush.bf16.xpose.msra.mxu0 %v2571_v16  ;;  %252 = vmatpush.bf16.msra.mxu2 %v2585_v28  ;;  %v221_v58 = vxor.u32 %v220_v57, %v219_v56 }
  0x22   :  { %181 = vmatpush.bf16.xpose.msra.mxu1 %v2573_v17  ;;  %265 = vmatpush.bf16.msra.mxu3 %v2587_v29 }
  0x23   :  { %v222_v59 = vmul.u32 2146121005, %v221_v58 }
  0x25   :  { %253 = vmatpush.bf16.msra.mxu2 %v2593_v34  ;;  %v223_v60 = vshrl.u32 %v222_v59, 15 }
  0x26   :  { %266 = vmatpush.bf16.msra.mxu3 %v2595_v35 }
  0x27   :  { %v224_v61 = vxor.u32 %v223_v60, %v222_v59 }
  0x29   :  { %169 = vmatpush.bf16.xpose.msra.mxu0 %v2579_v22  ;;  %254 = vmatpush.bf16.msra.mxu2 %v2599_v40  ;;  %v225_v62 = vmul.u32 2221713035, %v224_v61 }
  0x2a   :  { %182 = vmatpush.bf16.xpose.msra.mxu1 %v2581_v23  ;;  %267 = vmatpush.bf16.msra.mxu3 %v2601_v41 }
  0x2b   :  { %v226_v63 = vshrl.u32 %v225_v62, 16 }
  0x2d   :  { %255 = vmatpush.bf16.msra.mxu2 %v2607_v46  ;;  %v227_v0 = vxor.u32 %v226_v63, %v225_v62 }
  0x2e   :  { %268 = vmatpush.bf16.msra.mxu3 %v2609_v47 }
  0x2f   :  { %v228_v1 = vshrl.u32 %v227_v0, 16 }
  0x31   :  { %365 = vmatpush.bf16.xpose.msrb.mxu2 %v2557_v3  ;;  %170 = vmatpush.bf16.xpose.msra.mxu0 %v2585_v28  ;;  %v229_v2 = vxor.u32 %v228_v1, %v227_v0 }
  0x32   :  { %378 = vmatpush.bf16.xpose.msrb.mxu3 %v2559_v5  ;;  %183 = vmatpush.bf16.xpose.msra.mxu1 %v2587_v29 }
  0x33   :  { %v230_v6 = vmul.u32 2146121005, %v229_v2 }
  0x35   :  { %v231_v12 = vshrl.u32 %v230_v6, 15 }
  0x37   :  { %v232_v15 = vxor.u32 %v231_v12, %v230_v6 }
  0x39   :  { %366 = vmatpush.bf16.xpose.msrb.mxu2 %v2565_v10  ;;  %171 = vmatpush.bf16.xpose.msra.mxu0 %v2593_v34  ;;  %v233_v20 = vmul.u32 2221713035, %v232_v15 }
  0x3a   :  { %379 = vmatpush.bf16.xpose.msrb.mxu3 %v2567_v11  ;;  %184 = vmatpush.bf16.xpose.msra.mxu1 %v2595_v35 }
  0x3b   :  { %v234_v24 = vshrl.u32 %v233_v20, 16 }
  0x3d   :  { %v235_v26 = vxor.u32 %v234_v24, %v233_v20 }
  0x3f   :  { %v236_v27 = vshrl.u32 %v235_v26, 8 }
  0x41   :  { %367 = vmatpush.bf16.xpose.msrb.mxu2 %v2571_v16  ;;  %172 = vmatpush.bf16.xpose.msra.mxu0 %v2599_v40  ;;  %v237_v33 = vcvt.s32.f32 %v236_v27 }
  0x42   :  { %380 = vmatpush.bf16.xpose.msrb.mxu3 %v2573_v17  ;;  %185 = vmatpush.bf16.xpose.msra.mxu1 %v2601_v41 }
  0x43   :  { %v238_v42 = vmul.f32 5.9604645e-08, %v237_v33 }
  0x49   :  { %368 = vmatpush.bf16.xpose.msrb.mxu2 %v2579_v22  ;;  %173 = vmatpush.bf16.xpose.msra.mxu0 %v2607_v46 }
  0x4a   :  { %381 = vmatpush.bf16.xpose.msrb.mxu3 %v2581_v23  ;;  %186 = vmatpush.bf16.xpose.msra.mxu1 %v2609_v47 }
  0x50   :  { %174 = vmatmul.bf16.vlgmr.msra.gmra.mxu0 %v81_v50  ;;  %v316_v50 = vadd.s32 2048, %v2700_v49 }
  0x51   :  { %437 = vmatpush.bf16.msrb.mxu0 %v2557_v3  ;;  %369 = vmatpush.bf16.xpose.msrb.mxu2 %v2585_v28 }
  0x52   :  { %450 = vmatpush.bf16.msrb.mxu1 %v2559_v5  ;;  %382 = vmatpush.bf16.xpose.msrb.mxu3 %v2587_v29  ;;  %v317_v52 = vadd.s32 %v316_v50, %v2671_v54 }
  0x53   :  { %187 = vmatmul.bf16.vlgmr.msra.gmra.mxu1 %v82_v51  ;;  %v2704_v51 = vadd.s32 128, %v2671_v54 }
  0x54   :  { %v319_v57 = vshrl.u32 %v317_v52, 16 }
  0x55   :  { %438 = vmatpush.bf16.msrb.mxu0 %v2565_v10  ;;  %v318_v56 = vadd.s32 %v316_v50, %v2704_v51 }
  0x56   :  { %451 = vmatpush.bf16.msrb.mxu1 %v2567_v11  ;;  %v321_v59 = vxor.u32 %v319_v57, %v317_v52 }
  0x57   :  { %v320_v58 = vshrl.u32 %v318_v56, 16 }
  0x58   :  { %v323_v61 = vmul.u32 2146121005, %v321_v59 }
  0x59   :  { %439 = vmatpush.bf16.msrb.mxu0 %v2571_v16  ;;  %370 = vmatpush.bf16.xpose.msrb.mxu2 %v2593_v34  ;;  %v322_v60 = vxor.u32 %v320_v58, %v318_v56 }
  0x5a   :  { %452 = vmatpush.bf16.msrb.mxu1 %v2573_v17  ;;  %383 = vmatpush.bf16.xpose.msrb.mxu3 %v2595_v35  ;;  %v325_v63 = vshrl.u32 %v323_v61, 15 }
  0x5b   :  { %v324_v62 = vmul.u32 2146121005, %v322_v60 }
  0x5c   :  { %v327_v1 = vxor.u32 %v325_v63, %v323_v61 }
  0x5d   :  { %440 = vmatpush.bf16.msrb.mxu0 %v2579_v22  ;;  %v326_v0 = vshrl.u32 %v324_v62, 15 }
  0x5e   :  { %453 = vmatpush.bf16.msrb.mxu1 %v2581_v23  ;;  %v329_v2 = vmul.u32 2221713035, %v327_v1 }
  0x5f   :  { %v328_v53 = vxor.u32 %v326_v0, %v324_v62 }
  0x61   :  { %441 = vmatpush.bf16.msrb.mxu0 %v2585_v28  ;;  %371 = vmatpush.bf16.xpose.msrb.mxu2 %v2599_v40  ;;  %v330_v6 = vmul.u32 2221713035, %v328_v53 }
  0x62   :  { %454 = vmatpush.bf16.msrb.mxu1 %v2587_v29  ;;  %384 = vmatpush.bf16.xpose.msrb.mxu3 %v2601_v41 }
  0x65   :  { %442 = vmatpush.bf16.msrb.mxu0 %v2593_v34 }
  0x66   :  { %455 = vmatpush.bf16.msrb.mxu1 %v2595_v35 }
  0x69   :  { %443 = vmatpush.bf16.msrb.mxu0 %v2599_v40  ;;  %372 = vmatpush.bf16.xpose.msrb.mxu2 %v2607_v46 }
  0x6a   :  { %456 = vmatpush.bf16.msrb.mxu1 %v2601_v41  ;;  %385 = vmatpush.bf16.xpose.msrb.mxu3 %v2609_v47 }
  0x6d   :  { %444 = vmatpush.bf16.msrb.mxu0 %v2607_v46 }
  0x6e   :  { %457 = vmatpush.bf16.msrb.mxu1 %v2609_v47 }
  0x71   :  { %552 = vmatpush.bf16.xpose.msra.mxu0 %v2557_v3 }
  0x72   :  { %565 = vmatpush.bf16.xpose.msra.mxu1 %v2559_v5 }
  0x79   :  { %553 = vmatpush.bf16.xpose.msra.mxu0 %v2565_v10 }
  0x7a   :  { %566 = vmatpush.bf16.xpose.msra.mxu1 %v2567_v11 }
  0x81   :  { %554 = vmatpush.bf16.xpose.msra.mxu0 %v2571_v16 }
  0x82   :  { %567 = vmatpush.bf16.xpose.msra.mxu1 %v2573_v17 }
  0x89   :  { %555 = vmatpush.bf16.xpose.msra.mxu0 %v2579_v22 }
  0x8a   :  { %568 = vmatpush.bf16.xpose.msra.mxu1 %v2581_v23 }
  0x91   :  { %556 = vmatpush.bf16.xpose.msra.mxu0 %v2585_v28 }
  0x92   :  { %569 = vmatpush.bf16.xpose.msra.mxu1 %v2587_v29 }
  0x99   :  { %557 = vmatpush.bf16.xpose.msra.mxu0 %v2593_v34 }
  0x9a   :  { %570 = vmatpush.bf16.xpose.msra.mxu1 %v2595_v35 }
  0xa1   :  { %558 = vmatpush.bf16.xpose.msra.mxu0 %v2599_v40 }
  0xa2   :  { %571 = vmatpush.bf16.xpose.msra.mxu1 %v2601_v41 }
  0xa9   :  { %559 = vmatpush.bf16.xpose.msra.mxu0 %v2607_v46 }
  0xaa   :  { %572 = vmatpush.bf16.xpose.msra.mxu1 %v2609_v47 }
  0xcd   :  { %v175_v7 = vpop.f32.mrf.mxu0 }
  0xce   :  { %v176_v8 = vadd.f32 %v2678_v4, %v175_v7  ;;  %v331_v7 = vshrl.u32 %v329_v2, 16 }
  0xd0   :  { %v188_v9 = vpop.f32.mrf.mxu1 }
  0xd1   :  { %v189_v13 = vadd.f32 %v188_v9, %v176_v8  ;;  %v332_v8 = vshrl.u32 %v330_v6, 16  ;;  %v333_v9 = vxor.u32 %v331_v7, %v329_v2 }
  0xd3   :  { %v2130_v14 = vmul.f32 -1.442695, %v189_v13  ;;  %v334_v12 = vxor.u32 %v332_v8, %v330_v6  ;;  %v335_v13 = vshrl.u32 %v333_v9, 16 }
  0xd5   :  { %2291 = vpow2.f32 %v2130_v14  ;;  %v177_v18 = vpop.f32.mrf.mxu0  ;;  %v336_v14 = vshrl.u32 %v334_v12, 16  ;;  %v337_v15 = vxor.u32 %v335_v13, %v333_v9 }
  0xd7   :  { %v338_v18 = vxor.u32 %v336_v14, %v334_v12  ;;  %v339_v20 = vmul.u32 2146121005, %v337_v15 }
  0xd8   :  { %v190_v19 = vpop.f32.mrf.mxu1 }
  0xd9   :  { %v78_v19 = vld [vmem:[%s3059_s3] sm:$0x3]  ;;  %v341_v26 = vshrl.u32 %v339_v20, 15  ;;  %s2521_s3 = smov [#allocation8]  }
  0xda   :  { %v2711_v24 = vperm.slane %v78_v19, 0  ;;  %s2053_s5 = sshll.u32 %s2521_s3, 4  ;;  %s2054_s5 = int_to_ptr.vmem [resolvable:$true] %s2053_s5 }
  0xdb   :  { %v2292_v21 = vpop.eup %2291 }
  0xdc   :  { %v195_v25 = vadd.f32 1.0, %v2292_v21  ;;  %v340_v21 = vmul.u32 2146121005, %v338_v18 }
  0xde   :  { %2293 = vrcp.f32 %v195_v25  ;;  %v207_v36 = vand.u32 2147483648, %v195_v25  ;;  %v205_v38 = vand.u32 2147483647, %v195_v25  ;;  %vm201_vm1 = vweird.f32 %v195_v25 }
  0xe0   :  { %v208_v43 = vor.u32 1.1754944e-38, %v207_v36  ;;  %vm206_vm3 = vcmp.eq.f32.partialorder %v205_v38, 8.507059e+37  ;;  %v343_v38 = vxor.u32 %v341_v26, %v339_v20 }
  0xe4   :  { %v2294_v30 = vpop.eup %2293 }
  0xe5   :  { %v197_v31 = vmul.f32 %v2294_v30, %v195_v25  ;;  %vm202_vm0 = vweird.f32 %v2294_v30  ;;  %v2713_v25 = vperm.slane %v78_v19, 1 }
  0xe6   :  { %vm203_vm2 = vmor %vm201_vm1, %vm202_vm0 }
  0xe7   :  { %v198_v32 = vsub.f32 1.0, %v197_v31  ;;  %v342_v31 = vshrl.u32 %v340_v21, 15 }
  0xe9   :  { %v199_v37 = vmul.f32 %v2294_v30, %v198_v32 }
  0xeb   :  { %v200_v39 = vadd.f32 %v2294_v30, %v199_v37 }
  0xed   :  { %v204_v44 = vsel %vm203_vm2, %v2294_v30, %v200_v39  ;;  %v344_v39 = vxor.u32 %v342_v31, %v340_v21 }
  0xee   :  { %v209_v45 = vsel %vm206_vm3, %v208_v43, %v204_v44 }
  0xef   :  { %vm239_vm4 = vcmp.lt.f32.partialorder %v238_v42, %v209_v45  ;;  %v345_v42 = vmul.u32 2221713035, %v343_v38  ;;  %v346_v45 = vmul.u32 2221713035, %v344_v39  ;;  %v412_v38 = vadd.s32 4096, %v2674_v55 }
  0xf0   :  { %vm2132_vm5 = vmpackc.low %vm239_vm4, %vm239_vm4 }
  0xf1   :  { %2133 = vmatmul.msk.bf16.vlgmr.msra.gmra.mxu2 %vm2132_vm5, %v2520_v48  ;;  %2135 = vmatmul.msk.bf16.vlgmr.msra.gmra.mxu3 %vm2132_vm5, %v2520_v48  ;;  %v347_v52 = vshrl.u32 %v345_v42, 16  ;;  %v348_v58 = vshrl.u32 %v346_v45, 16  ;;  %v413_v39 = vadd.s32 %v412_v38, %v2671_v54  ;;  %v503_v38 = vadd.s32 6144, %v2700_v49 }
  0xf2   :  { %624 = vmatpush.bf16.msra.mxu2 %v2557_v3  ;;  %637 = vmatpush.bf16.msra.mxu3 %v2559_v5 }
  0xf3   :  { %v349_v60 = vxor.u32 %v347_v52, %v345_v42  ;;  %v350_v61 = vxor.u32 %v348_v58, %v346_v45  ;;  %v414_v42 = vshrl.u32 %v413_v39, 16 }
  0xf5   :  { %v351_v62 = vshrl.u32 %v349_v60, 8  ;;  %v352_v0 = vshrl.u32 %v350_v61, 8 }
  0xf6   :  { %625 = vmatpush.bf16.msra.mxu2 %v2565_v10  ;;  %638 = vmatpush.bf16.msra.mxu3 %v2567_v11 }
  0xf7   :  { %v353_v7 = vcvt.s32.f32 %v351_v62  ;;  %v354_v12 = vcvt.s32.f32 %v352_v0 }
  0xf9   :  { %v355_v21 = vmul.f32 5.9604645e-08, %v353_v7 }
  0xfa   :  { %626 = vmatpush.bf16.msra.mxu2 %v2571_v16  ;;  %639 = vmatpush.bf16.msra.mxu3 %v2573_v17 }
  0xfe   :  { %627 = vmatpush.bf16.msra.mxu2 %v2579_v22  ;;  %640 = vmatpush.bf16.msra.mxu3 %v2581_v23 }
 0x102   :  { %628 = vmatpush.bf16.msra.mxu2 %v2585_v28  ;;  %641 = vmatpush.bf16.msra.mxu3 %v2587_v29 }
 0x106   :  { %629 = vmatpush.bf16.msra.mxu2 %v2593_v34  ;;  %642 = vmatpush.bf16.msra.mxu3 %v2595_v35 }
 0x10a   :  { %630 = vmatpush.bf16.msra.mxu2 %v2599_v40  ;;  %643 = vmatpush.bf16.msra.mxu3 %v2601_v41 }
 0x10e   :  { %631 = vmatpush.bf16.msra.mxu2 %v2607_v46  ;;  %644 = vmatpush.bf16.msra.mxu3 %v2609_v47 }
 0x174   :  { %v257_v27 = vpop.f32.mrf.mxu2  ;;  %v270_v30 = vpop.f32.mrf.mxu3 }
 0x175   :  { %v258_v32 = vadd.f32 %v257_v27, %v2711_v24  ;;  %v271_v33 = vadd.f32 %v270_v30, %v2713_v25  ;;  %v356_v30 = vmul.f32 5.9604645e-08, %v354_v12 }
 0x177   :  { %v2136_v36 = vmul.f32 -1.442695, %v258_v32  ;;  %v2137_v37 = vmul.f32 -1.442695, %v271_v33 }
 0x179   :  { %2295 = vpow2.f32 %v2136_v36 }
 0x17a   :  { %2297 = vpow2.f32 %v2137_v37 }
 0x17c   :  { %v259_v43 = vpop.f32.mrf.mxu2  ;;  %v272_v44 = vpop.f32.mrf.mxu3 }
 0x17d   :  { %v415_v43 = vxor.u32 %v414_v42, %v413_v39  ;;  %v504_v39 = vadd.s32 %v503_v38, %v2671_v54  ;;  %v505_v42 = vadd.s32 %v503_v38, %v2704_v51 }
 0x17f   :  { %v2296_v50 = vpop.eup %2295  ;;  %v416_v44 = vmul.u32 2146121005, %v415_v43  ;;  %v506_v43 = vshrl.u32 %v504_v39, 16 }
 0x180   :  { %v2298_v56 = vpop.eup %2297  ;;  %v280_v57 = vadd.f32 1.0, %v2296_v50 }
 0x181   :  { %v281_v59 = vadd.f32 1.0, %v2298_v56  ;;  %v417_v45 = vshrl.u32 %v416_v44, 15 }
 0x182   :  { %2299 = vrcp.f32 %v280_v57  ;;  %v293_v8 = vand.u32 2147483648, %v280_v57  ;;  %v291_v14 = vand.u32 2147483647, %v280_v57  ;;  %vm287_vm8 = vweird.f32 %v280_v57 }
 0x183   :  { %2301 = vrcp.f32 %v281_v59  ;;  %v308_v15 = vand.u32 2147483648, %v281_v59  ;;  %v306_v19 = vand.u32 2147483647, %v281_v59  ;;  %vm302_vm10 = vweird.f32 %v281_v59 }
 0x184   :  { %v294_v26 = vor.u32 1.1754944e-38, %v293_v8  ;;  %vm292_vm11 = vcmp.eq.f32.partialorder %v291_v14, 8.507059e+37  ;;  %v418_v50 = vxor.u32 %v417_v45, %v416_v44  ;;  %v507_v44 = vshrl.u32 %v505_v42, 16 }
 0x185   :  { %v309_v32 = vor.u32 1.1754944e-38, %v308_v15  ;;  %vm307_vm13 = vcmp.eq.f32.partialorder %v306_v19, 8.507059e+37  ;;  %v508_v45 = vxor.u32 %v506_v43, %v504_v39 }
 0x186   :  { %v419_v52 = vmul.u32 2221713035, %v418_v50  ;;  %v509_v50 = vxor.u32 %v507_v44, %v505_v42 }
 0x188   :  { %v2300_v63 = vpop.eup %2299  ;;  %v420_v56 = vshrl.u32 %v419_v52, 16 }
 0x189   :  { %v2302_v1 = vpop.eup %2301  ;;  %v283_v53 = vmul.f32 %v2300_v63, %v280_v57  ;;  %vm288_vm6 = vweird.f32 %v2300_v63 }
 0x18a   :  { %v298_v2 = vmul.f32 %v2302_v1, %v281_v59  ;;  %vm303_vm7 = vweird.f32 %v2302_v1  ;;  %vm289_vm9 = vmor %vm287_vm8, %vm288_vm6  ;;  %v421_v57 = vxor.u32 %v420_v56, %v419_v52  ;;  %v510_v52 = vmul.u32 2146121005, %v508_v45 }
 0x18b   :  { %v284_v6 = vsub.f32 1.0, %v283_v53  ;;  %vm304_vm12 = vmor %vm302_vm10, %vm303_vm7  ;;  %v511_v56 = vmul.u32 2146121005, %v509_v50 }
 0x18c   :  { %v299_v9 = vsub.f32 1.0, %v298_v2  ;;  %v422_v58 = vshrl.u32 %v421_v57, 16 }
 0x18d   :  { %v285_v13 = vmul.f32 %v2300_v63, %v284_v6 }
 0x18e   :  { %v300_v18 = vmul.f32 %v2302_v1, %v299_v9  ;;  %v423_v59 = vxor.u32 %v422_v58, %v421_v57  ;;  %v512_v57 = vshrl.u32 %v510_v52, 15  ;;  %v513_v58 = vshrl.u32 %v511_v56, 15 }
 0x18f   :  { %v286_v20 = vadd.f32 %v2300_v63, %v285_v13 }
 0x190   :  { %v301_v27 = vadd.f32 %v2302_v1, %v300_v18  ;;  %v424_v60 = vmul.u32 2146121005, %v423_v59  ;;  %v514_v59 = vxor.u32 %v512_v57, %v510_v52 }
 0x191   :  { %v290_v31 = vsel %vm289_vm9, %v2300_v63, %v286_v20 }
 0x192   :  { %v295_v33 = vsel %vm292_vm11, %v294_v26, %v290_v31  ;;  %v305_v36 = vsel %vm304_vm12, %v2302_v1, %v301_v27  ;;  %v425_v0 = vshrl.u32 %v424_v60, 15 }
 0x193   :  { %vm357_vm14 = vcmp.lt.f32.partialorder %v355_v21, %v295_v33  ;;  %v310_v37 = vsel %vm307_vm13, %v309_v32, %v305_v36 }
 0x194   :  { %vm2140_vm15 = vmpackc.low %vm357_vm14, %vm357_vm14  ;;  %vm358_vm0 = vcmp.lt.f32.partialorder %v356_v30, %v310_v37  ;;  %v426_v2 = vxor.u32 %v425_v0, %v424_v60  ;;  %v515_v60 = vxor.u32 %v513_v58, %v511_v56 }
 0x195   :  { %2141 = vmatmul.msk.bf16.vlgmr.msrb.gmra.mxu2 %vm2140_vm15, %v2520_v48  ;;  %vm2142_vm1 = vmpackc.low %vm358_vm0, %vm358_vm0 }
 0x196   :  { %2143 = vmatmul.msk.bf16.vlgmr.msrb.gmra.mxu3 %vm2142_vm1, %v2520_v48  ;;  %739 = vmatpush.bf16.xpose.msrb.mxu2 %v2557_v3  ;;  %v427_v8 = vmul.u32 2221713035, %v426_v2 }
 0x197   :  { %752 = vmatpush.bf16.xpose.msrb.mxu3 %v2559_v5 }
 0x198   :  { %v428_v12 = vshrl.u32 %v427_v8, 16 }
 0x19a   :  { %v429_v14 = vxor.u32 %v428_v12, %v427_v8 }
 0x19c   :  { %v430_v15 = vshrl.u32 %v429_v14, 8 }
 0x19e   :  { %740 = vmatpush.bf16.xpose.msrb.mxu2 %v2565_v10  ;;  %v431_v21 = vcvt.s32.f32 %v430_v15 }
 0x19f   :  { %753 = vmatpush.bf16.xpose.msrb.mxu3 %v2567_v11 }
 0x1a0   :  { %v432_v32 = vmul.f32 5.9604645e-08, %v431_v21 }
 0x1a6   :  { %741 = vmatpush.bf16.xpose.msrb.mxu2 %v2571_v16 }
 0x1a7   :  { %754 = vmatpush.bf16.xpose.msrb.mxu3 %v2573_v17 }
 0x1ae   :  { %742 = vmatpush.bf16.xpose.msrb.mxu2 %v2579_v22 }
 0x1af   :  { %755 = vmatpush.bf16.xpose.msrb.mxu3 %v2581_v23 }
 0x1b6   :  { %743 = vmatpush.bf16.xpose.msrb.mxu2 %v2585_v28 }
 0x1b7   :  { %756 = vmatpush.bf16.xpose.msrb.mxu3 %v2587_v29 }
 0x1be   :  { %744 = vmatpush.bf16.xpose.msrb.mxu2 %v2593_v34 }
 0x1bf   :  { %757 = vmatpush.bf16.xpose.msrb.mxu3 %v2595_v35 }
 0x1c6   :  { %745 = vmatpush.bf16.xpose.msrb.mxu2 %v2599_v40 }
 0x1c7   :  { %758 = vmatpush.bf16.xpose.msrb.mxu3 %v2601_v41 }
 0x1ce   :  { %746 = vmatpush.bf16.xpose.msrb.mxu2 %v2607_v46 }
 0x1cf   :  { %759 = vmatpush.bf16.xpose.msrb.mxu3 %v2609_v47 }
 0x218   :  { %v374_v61 = vpop.f32.mrf.mxu2 }
 0x219   :  { %v375_v62 = vadd.f32 %v2678_v4, %v374_v61  ;;  %v387_v63 = vpop.f32.mrf.mxu3  ;;  %v516_v61 = vmul.u32 2221713035, %v514_v59 }
 0x21b   :  { %v388_v1 = vadd.f32 %v387_v63, %v375_v62  ;;  %v517_v62 = vmul.u32 2221713035, %v515_v60  ;;  %v518_v63 = vshrl.u32 %v516_v61, 16 }
 0x21d   :  { %v2144_v53 = vmul.f32 -1.442695, %v388_v1  ;;  %v519_v0 = vshrl.u32 %v517_v62, 16  ;;  %v520_v1 = vxor.u32 %v518_v63, %v516_v61 }
 0x21f   :  { %2303 = vpow2.f32 %v2144_v53  ;;  %v521_v53 = vxor.u32 %v519_v0, %v517_v62  ;;  %v522_v2 = vshrl.u32 %v520_v1, 16 }
 0x220   :  { %v376_v6 = vpop.f32.mrf.mxu2 }
 0x221   :  { %v389_v7 = vpop.f32.mrf.mxu3  ;;  %v523_v6 = vshrl.u32 %v521_v53, 16 }
 0x222   :  { %v524_v7 = vxor.u32 %v522_v2, %v520_v1 }
 0x223   :  { %v525_v8 = vxor.u32 %v523_v6, %v521_v53 }
 0x225   :  { %v2304_v9 = vpop.eup %2303  ;;  %v527_v12 = vmul.u32 2146121005, %v525_v8 }
 0x226   :  { %v394_v13 = vadd.f32 1.0, %v2304_v9  ;;  %v526_v9 = vmul.u32 2146121005, %v524_v7 }
 0x228   :  { %2305 = vrcp.f32 %v394_v13  ;;  %v406_v26 = vand.u32 2147483648, %v394_v13  ;;  %v404_v30 = vand.u32 2147483647, %v394_v13  ;;  %vm400_vm3 = vweird.f32 %v394_v13 }
 0x22a   :  { %v407_v33 = vor.u32 1.1754944e-38, %v406_v26  ;;  %vm405_vm5 = vcmp.eq.f32.partialorder %v404_v30, 8.507059e+37 }
 0x22e   :  { %v2306_v18 = vpop.eup %2305 }
 0x22f   :  { %v396_v19 = vmul.f32 %v2306_v18, %v394_v13  ;;  %vm401_vm2 = vweird.f32 %v2306_v18  ;;  %v528_v13 = vshrl.u32 %v526_v9, 15 }
 0x230   :  { %vm402_vm4 = vmor %vm400_vm3, %vm401_vm2 }
 0x231   :  { %v397_v20 = vsub.f32 1.0, %v396_v19 }
 0x233   :  { %v398_v27 = vmul.f32 %v2306_v18, %v397_v20 }
 0x235   :  { %v399_v31 = vadd.f32 %v2306_v18, %v398_v27  ;;  %v530_v27 = vxor.u32 %v528_v13, %v526_v9 }
 0x237   :  { %v403_v36 = vsel %vm402_vm4, %v2306_v18, %v399_v31  ;;  %v529_v18 = vshrl.u32 %v527_v12, 15  ;;  %v532_v31 = vmul.u32 2221713035, %v530_v27  ;;  %v599_v27 = vadd.s32 8192, %v2674_v55 }
 0x238   :  { %v408_v37 = vsel %vm405_vm5, %v407_v33, %v403_v36 }
 0x239   :  { %vm433_vm6 = vcmp.lt.f32.partialorder %v432_v32, %v408_v37  ;;  %v531_v30 = vxor.u32 %v529_v18, %v527_v12  ;;  %v534_v38 = vshrl.u32 %v532_v31, 16 }
 0x23a   :  { %vm2146_vm7 = vmpackc.low %vm433_vm6, %vm433_vm6 }
 0x23b   :  { %2147 = vmatmul.msk.bf16.vlgmr.msrb.gmra.mxu0 %vm2146_vm7, %v2520_v48  ;;  %2149 = vmatmul.msk.bf16.vlgmr.msrb.gmra.mxu1 %vm2146_vm7, %v2520_v48  ;;  %v533_v36 = vmul.u32 2221713035, %v531_v30  ;;  %v536_v45 = vxor.u32 %v534_v38, %v532_v31  ;;  %v600_v30 = vadd.s32 %v599_v27, %v2671_v54 }
 0x23c   :  { %811 = vmatpush.bf16.msrb.mxu0 %v2557_v3  ;;  %824 = vmatpush.bf16.msrb.mxu1 %v2559_v5 }
 0x23d   :  { %v535_v43 = vshrl.u32 %v533_v36, 16  ;;  %v538_v52 = vshrl.u32 %v536_v45, 8  ;;  %v601_v31 = vshrl.u32 %v600_v30, 16 }
 0x23f   :  { %v537_v50 = vxor.u32 %v535_v43, %v533_v36  ;;  %v540_v62 = vcvt.s32.f32 %v538_v52 }
 0x240   :  { %812 = vmatpush.bf16.msrb.mxu0 %v2565_v10  ;;  %825 = vmatpush.bf16.msrb.mxu1 %v2567_v11 }
 0x241   :  { %v539_v57 = vshrl.u32 %v537_v50, 8  ;;  %v542_v12 = vmul.f32 5.9604645e-08, %v540_v62 }
 0x243   :  { %v541_v1 = vcvt.s32.f32 %v539_v57 }
 0x244   :  { %813 = vmatpush.bf16.msrb.mxu0 %v2571_v16  ;;  %826 = vmatpush.bf16.msrb.mxu1 %v2573_v17 }
 0x248   :  { %814 = vmatpush.bf16.msrb.mxu0 %v2579_v22  ;;  %827 = vmatpush.bf16.msrb.mxu1 %v2581_v23 }
 0x24c   :  { %815 = vmatpush.bf16.msrb.mxu0 %v2585_v28  ;;  %828 = vmatpush.bf16.msrb.mxu1 %v2587_v29 }
 0x250   :  { %816 = vmatpush.bf16.msrb.mxu0 %v2593_v34  ;;  %829 = vmatpush.bf16.msrb.mxu1 %v2595_v35 }
 0x254   :  { %817 = vmatpush.bf16.msrb.mxu0 %v2599_v40  ;;  %830 = vmatpush.bf16.msrb.mxu1 %v2601_v41 }
 0x258   :  { %818 = vmatpush.bf16.msrb.mxu0 %v2607_v46  ;;  %831 = vmatpush.bf16.msrb.mxu1 %v2609_v47 }
 0x2b8   :  { %v446_v14 = vpop.f32.mrf.mxu0  ;;  %v459_v15 = vpop.f32.mrf.mxu1 }
 0x2b9   :  { %v447_v19 = vadd.f32 %v446_v14, %v2711_v24  ;;  %v460_v20 = vadd.f32 %v459_v15, %v2713_v25  ;;  %v543_v15 = vmul.f32 5.9604645e-08, %v541_v1 }
 0x2bb   :  { %v2150_v21 = vmul.f32 -1.442695, %v447_v19  ;;  %v2151_v26 = vmul.f32 -1.442695, %v460_v20 }
 0x2bd   :  { %2307 = vpow2.f32 %v2150_v21 }
 0x2be   :  { %2309 = vpow2.f32 %v2151_v26 }
 0x2c0   :  { %v448_v32 = vpop.f32.mrf.mxu0  ;;  %v461_v33 = vpop.f32.mrf.mxu1 }
 0x2c1   :  { %v602_v32 = vxor.u32 %v601_v31, %v600_v30 }
 0x2c3   :  { %v2308_v37 = vpop.eup %2307  ;;  %v603_v33 = vmul.u32 2146121005, %v602_v32 }
 0x2c4   :  { %v2310_v39 = vpop.eup %2309  ;;  %v469_v42 = vadd.f32 1.0, %v2308_v37 }
 0x2c5   :  { %v470_v44 = vadd.f32 1.0, %v2310_v39  ;;  %v604_v36 = vshrl.u32 %v603_v33, 15 }
 0x2c6   :  { %2311 = vrcp.f32 %v469_v42  ;;  %v482_v0 = vand.u32 2147483648, %v469_v42  ;;  %v480_v2 = vand.u32 2147483647, %v469_v42  ;;  %vm476_vm10 = vweird.f32 %v469_v42 }
 0x2c7   :  { %2313 = vrcp.f32 %v470_v44  ;;  %v497_v6 = vand.u32 2147483648, %v470_v44  ;;  %v495_v8 = vand.u32 2147483647, %v470_v44  ;;  %vm491_vm12 = vweird.f32 %v470_v44 }
 0x2c8   :  { %v483_v13 = vor.u32 1.1754944e-38, %v482_v0  ;;  %vm481_vm13 = vcmp.eq.f32.partialorder %v480_v2, 8.507059e+37  ;;  %v605_v37 = vxor.u32 %v604_v36, %v603_v33 }
 0x2c9   :  { %v498_v19 = vor.u32 1.1754944e-38, %v497_v6  ;;  %vm496_vm15 = vcmp.eq.f32.partialorder %v495_v8, 8.507059e+37 }
 0x2ca   :  { %v606_v38 = vmul.u32 2221713035, %v605_v37 }
 0x2cc   :  { %v2312_v56 = vpop.eup %2311  ;;  %v607_v39 = vshrl.u32 %v606_v38, 16 }
 0x2cd   :  { %v2314_v58 = vpop.eup %2313  ;;  %v472_v59 = vmul.f32 %v2312_v56, %v469_v42  ;;  %vm477_vm8 = vweird.f32 %v2312_v56 }
 0x2ce   :  { %v487_v60 = vmul.f32 %v2314_v58, %v470_v44  ;;  %vm492_vm9 = vweird.f32 %v2314_v58  ;;  %vm478_vm11 = vmor %vm476_vm10, %vm477_vm8  ;;  %v608_v42 = vxor.u32 %v607_v39, %v606_v38 }
 0x2cf   :  { %v473_v61 = vsub.f32 1.0, %v472_v59  ;;  %vm493_vm14 = vmor %vm491_vm12, %vm492_vm9 }
 0x2d0   :  { %v488_v63 = vsub.f32 1.0, %v487_v60  ;;  %v609_v43 = vshrl.u32 %v608_v42, 16 }
 0x2d1   :  { %v474_v53 = vmul.f32 %v2312_v56, %v473_v61 }
 0x2d2   :  { %v489_v7 = vmul.f32 %v2314_v58, %v488_v63  ;;  %v610_v44 = vxor.u32 %v609_v43, %v608_v42 }
 0x2d3   :  { %v475_v9 = vadd.f32 %v2312_v56, %v474_v53 }
 0x2d4   :  { %v490_v14 = vadd.f32 %v2314_v58, %v489_v7  ;;  %v611_v45 = vmul.u32 2146121005, %v610_v44 }
 0x2d5   :  { %v479_v18 = vsel %vm478_vm11, %v2312_v56, %v475_v9 }
 0x2d6   :  { %v484_v20 = vsel %vm481_vm13, %v483_v13, %v479_v18  ;;  %v494_v21 = vsel %vm493_vm14, %v2314_v58, %v490_v14  ;;  %v612_v57 = vshrl.u32 %v611_v45, 15 }
 0x2d7   :  { %vm544_vm0 = vcmp.lt.f32.partialorder %v542_v12, %v484_v20  ;;  %v499_v26 = vsel %vm496_vm15, %v498_v19, %v494_v21 }
 0x2d8   :  { %vm2154_vm1 = vmpackc.low %vm544_vm0, %vm544_vm0  ;;  %vm545_vm2 = vcmp.lt.f32.partialorder %v543_v15, %v499_v26  ;;  %v613_v60 = vxor.u32 %v612_v57, %v611_v45  ;;  %v690_v26 = vadd.s32 10240, %v2700_v49 }
 0x2d9   :  { %2155 = vmatmul.msk.bf16.vlgmr.msra.gmra.mxu0 %vm2154_vm1, %v2520_v48  ;;  %vm2156_vm3 = vmpackc.low %vm545_vm2, %vm545_vm2 }
 0x2da   :  { %2157 = vmatmul.msk.bf16.vlgmr.msra.gmra.mxu1 %vm2156_vm3, %v2520_v48  ;;  %926 = vmatpush.bf16.xpose.msra.mxu0 %v2557_v3  ;;  %v614_v63 = vmul.u32 2221713035, %v613_v60  ;;  %v691_v27 = vadd.s32 %v690_v26, %v2671_v54  ;;  %v692_v30 = vadd.s32 %v690_v26, %v2704_v51 }
 0x2db   :  { %939 = vmatpush.bf16.xpose.msra.mxu1 %v2559_v5 }
 0x2dc   :  { %v615_v1 = vshrl.u32 %v614_v63, 16  ;;  %v693_v31 = vshrl.u32 %v691_v27, 16  ;;  %v694_v32 = vshrl.u32 %v692_v30, 16 }
 0x2de   :  { %v616_v2 = vxor.u32 %v615_v1, %v614_v63  ;;  %v695_v33 = vxor.u32 %v693_v31, %v691_v27  ;;  %v696_v36 = vxor.u32 %v694_v32, %v692_v30 }
 0x2e0   :  { %v617_v6 = vshrl.u32 %v616_v2, 8  ;;  %v697_v37 = vmul.u32 2146121005, %v695_v33  ;;  %v698_v38 = vmul.u32 2146121005, %v696_v36 }
 0x2e2   :  { %927 = vmatpush.bf16.xpose.msra.mxu0 %v2565_v10  ;;  %v618_v12 = vcvt.s32.f32 %v617_v6  ;;  %v699_v39 = vshrl.u32 %v697_v37, 15  ;;  %v700_v42 = vshrl.u32 %v698_v38, 15 }
 0x2e3   :  { %940 = vmatpush.bf16.xpose.msra.mxu1 %v2567_v11 }
 0x2e4   :  { %v619_v18 = vmul.f32 5.9604645e-08, %v618_v12  ;;  %v701_v43 = vxor.u32 %v699_v39, %v697_v37  ;;  %v702_v44 = vxor.u32 %v700_v42, %v698_v38 }
 0x2e6   :  { %v703_v45 = vmul.u32 2221713035, %v701_v43 }
 0x2ea   :  { %928 = vmatpush.bf16.xpose.msra.mxu0 %v2571_v16 }
 0x2eb   :  { %941 = vmatpush.bf16.xpose.msra.mxu1 %v2573_v17 }
 0x2f2   :  { %929 = vmatpush.bf16.xpose.msra.mxu0 %v2579_v22 }
 0x2f3   :  { %942 = vmatpush.bf16.xpose.msra.mxu1 %v2581_v23 }
 0x2fa   :  { %930 = vmatpush.bf16.xpose.msra.mxu0 %v2585_v28 }
 0x2fb   :  { %943 = vmatpush.bf16.xpose.msra.mxu1 %v2587_v29 }
 0x302   :  { %931 = vmatpush.bf16.xpose.msra.mxu0 %v2593_v34 }
 0x303   :  { %944 = vmatpush.bf16.xpose.msra.mxu1 %v2595_v35 }
 0x30a   :  { %932 = vmatpush.bf16.xpose.msra.mxu0 %v2599_v40 }
 0x30b   :  { %945 = vmatpush.bf16.xpose.msra.mxu1 %v2601_v41 }
 0x312   :  { %933 = vmatpush.bf16.xpose.msra.mxu0 %v2607_v46 }
 0x313   :  { %946 = vmatpush.bf16.xpose.msra.mxu1 %v2609_v47 }
 0x356   :  { %v561_v50 = vpop.f32.mrf.mxu0 }
 0x357   :  { %v562_v52 = vadd.f32 %v2678_v4, %v561_v50  ;;  %v574_v56 = vpop.f32.mrf.mxu1  ;;  %v704_v50 = vmul.u32 2221713035, %v702_v44 }
 0x359   :  { %v575_v58 = vadd.f32 %v574_v56, %v562_v52  ;;  %v705_v52 = vshrl.u32 %v703_v45, 16  ;;  %v706_v56 = vshrl.u32 %v704_v50, 16 }
 0x35b   :  { %v2158_v59 = vmul.f32 -1.442695, %v575_v58  ;;  %v707_v57 = vxor.u32 %v705_v52, %v703_v45  ;;  %v708_v58 = vxor.u32 %v706_v56, %v704_v50 }
 0x35d   :  { %2315 = vpow2.f32 %v2158_v59  ;;  %v709_v59 = vshrl.u32 %v707_v57, 16  ;;  %v710_v60 = vshrl.u32 %v708_v58, 16 }
 0x35e   :  { %v563_v61 = vpop.f32.mrf.mxu0 }
 0x35f   :  { %v576_v62 = vpop.f32.mrf.mxu1  ;;  %v711_v61 = vxor.u32 %v709_v59, %v707_v57 }
 0x360   :  { %v712_v62 = vxor.u32 %v710_v60, %v708_v58 }
 0x361   :  { %v713_v63 = vmul.u32 2146121005, %v711_v61 }
 0x363   :  { %v2316_v0 = vpop.eup %2315  ;;  %v715_v1 = vshrl.u32 %v713_v63, 15 }
 0x364   :  { %v581_v53 = vadd.f32 1.0, %v2316_v0  ;;  %v714_v0 = vmul.u32 2146121005, %v712_v62 }
 0x366   :  { %2317 = vrcp.f32 %v581_v53  ;;  %v593_v4 = vand.u32 2147483648, %v581_v53  ;;  %v591_v14 = vand.u32 2147483647, %v581_v53  ;;  %vm587_vm5 = vweird.f32 %v581_v53 }
 0x367   :  { %v716_v6 = vshrl.u32 %v714_v0, 15 }
 0x368   :  { %v594_v19 = vor.u32 1.1754944e-38, %v593_v4  ;;  %vm592_vm7 = vcmp.eq.f32.partialorder %v591_v14, 8.507059e+37  ;;  %v717_v4 = vxor.u32 %v715_v1, %v713_v63 }
 0x36a   :  { %v719_v14 = vmul.u32 2221713035, %v717_v4 }
 0x36c   :  { %v2318_v7 = vpop.eup %2317 }
 0x36d   :  { %v583_v8 = vmul.f32 %v2318_v7, %v581_v53  ;;  %vm588_vm4 = vweird.f32 %v2318_v7 }
 0x36e   :  { %vm589_vm6 = vmor %vm587_vm5, %vm588_vm4 }
 0x36f   :  { %v584_v9 = vsub.f32 1.0, %v583_v8 }
 0x371   :  { %v585_v13 = vmul.f32 %v2318_v7, %v584_v9 }
 0x373   :  { %v586_v15 = vadd.f32 %v2318_v7, %v585_v13  ;;  %v718_v13 = vxor.u32 %v716_v6, %v714_v0 }
 0x375   :  { %v590_v20 = vsel %vm589_vm6, %v2318_v7, %v586_v15 }
 0x376   :  { %v595_v21 = vsel %vm592_vm7, %v594_v19, %v590_v20  ;;  %v720_v19 = vmul.u32 2221713035, %v718_v13 }
 0x377   :  { %vm620_vm8 = vcmp.lt.f32.partialorder %v619_v18, %v595_v21  ;;  %v721_v21 = vshrl.u32 %v719_v14, 16 }
 0x378   :  { %vm2160_vm9 = vmpackc.low %vm620_vm8, %vm620_vm8  ;;  %v722_v30 = vshrl.u32 %v720_v19, 16 }
 0x379   :  { %2161 = vmatmul.msk.bf16.vlgmr.msra.gmra.mxu2 %vm2160_vm9, %v2520_v48  ;;  %2163 = vmatmul.msk.bf16.vlgmr.msra.gmra.mxu3 %vm2160_vm9, %v2520_v48  ;;  %v723_v32 = vxor.u32 %v721_v21, %v719_v14 }
 0x37a   :  { %998 = vmatpush.bf16.msra.mxu2 %v2557_v3  ;;  %1011 = vmatpush.bf16.msra.mxu3 %v2559_v5  ;;  %v724_v33 = vxor.u32 %v722_v30, %v720_v19 }
 0x37b   :  { %v725_v36 = vshrl.u32 %v723_v32, 8 }
 0x37c   :  { %v726_v38 = vshrl.u32 %v724_v33, 8  ;;  %v2825_v33 = vld [vmem:[#allocation7] ss:$0 sm:$0xff] }
 0x37d   :  { %v727_v45 = vcvt.s32.f32 %v725_v36 }
 0x37e   :  { %999 = vmatpush.bf16.msra.mxu2 %v2565_v10  ;;  %1012 = vmatpush.bf16.msra.mxu3 %v2567_v11  ;;  %v728_v56 = vcvt.s32.f32 %v726_v38 }
 0x37f   :  { %v729_v63 = vmul.f32 5.9604645e-08, %v727_v45 }
 0x382   :  { %1000 = vmatpush.bf16.msra.mxu2 %v2571_v16  ;;  %1013 = vmatpush.bf16.msra.mxu3 %v2573_v17 }
 0x386   :  { %1001 = vmatpush.bf16.msra.mxu2 %v2579_v22  ;;  %1014 = vmatpush.bf16.msra.mxu3 %v2581_v23 }
 0x38a   :  { %1002 = vmatpush.bf16.msra.mxu2 %v2585_v28  ;;  %1015 = vmatpush.bf16.msra.mxu3 %v2587_v29 }
 0x38e   :  { %1003 = vmatpush.bf16.msra.mxu2 %v2593_v34  ;;  %1016 = vmatpush.bf16.msra.mxu3 %v2595_v35 }
 0x392   :  { %1004 = vmatpush.bf16.msra.mxu2 %v2599_v40  ;;  %1017 = vmatpush.bf16.msra.mxu3 %v2601_v41 }
 0x396   :  { %1005 = vmatpush.bf16.msra.mxu2 %v2607_v46  ;;  %1018 = vmatpush.bf16.msra.mxu3 %v2609_v47 }
 0x3fc   :  { %v633_v53 = vpop.f32.mrf.mxu2  ;;  %v646_v2 = vpop.f32.mrf.mxu3 }
 0x3fd   :  { %v634_v7 = vadd.f32 %v633_v53, %v2711_v24  ;;  %v647_v8 = vadd.f32 %v646_v2, %v2713_v25  ;;  %v730_v53 = vmul.f32 5.9604645e-08, %v728_v56 }
 0x3ff   :  { %v2164_v9 = vmul.f32 -1.442695, %v634_v7  ;;  %v2165_v12 = vmul.f32 -1.442695, %v647_v8 }
 0x401   :  { %2319 = vpow2.f32 %v2164_v9 }
 0x402   :  { %2321 = vpow2.f32 %v2165_v12  ;;  %v786_v12 = vadd.s32 12288, %v2674_v55 }
 0x404   :  { %v635_v15 = vpop.f32.mrf.mxu2  ;;  %v648_v18 = vpop.f32.mrf.mxu3  ;;  %v787_v4 = vadd.s32 %v786_v12, %v2671_v54  ;;  %v877_v12 = vadd.s32 14336, %v2700_v49 }
 0x406   :  { %v788_v13 = vshrl.u32 %v787_v4, 16 }
 0x407   :  { %v2320_v20 = vpop.eup %2319 }
 0x408   :  { %v2322_v26 = vpop.eup %2321  ;;  %v656_v27 = vadd.f32 1.0, %v2320_v20  ;;  %v789_v14 = vxor.u32 %v788_v13, %v787_v4  ;;  %v878_v4 = vadd.s32 %v877_v12, %v2671_v54  ;;  %v879_v13 = vadd.s32 %v877_v12, %v2704_v51 }
 0x409   :  { %v657_v31 = vadd.f32 1.0, %v2322_v26 }
 0x40a   :  { %2323 = vrcp.f32 %v656_v27  ;;  %v669_v52 = vand.u32 2147483648, %v656_v27  ;;  %v667_v58 = vand.u32 2147483647, %v656_v27  ;;  %vm663_vm12 = vweird.f32 %v656_v27 }
 0x40b   :  { %2325 = vrcp.f32 %v657_v31  ;;  %v684_v59 = vand.u32 2147483648, %v657_v31  ;;  %v682_v61 = vand.u32 2147483647, %v657_v31  ;;  %vm678_vm14 = vweird.f32 %v657_v31 }
 0x40c   :  { %v670_v0 = vor.u32 1.1754944e-38, %v669_v52  ;;  %vm668_vm15 = vcmp.eq.f32.partialorder %v667_v58, 8.507059e+37  ;;  %v790_v15 = vmul.u32 2146121005, %v789_v14  ;;  %v880_v14 = vshrl.u32 %v878_v4, 16 }
 0x40d   :  { %v685_v6 = vor.u32 1.1754944e-38, %v684_v59  ;;  %vm683_vm1 = vcmp.eq.f32.partialorder %v682_v61, 8.507059e+37 }
 0x40e   :  { %v791_v18 = vshrl.u32 %v790_v15, 15 }
 0x410   :  { %v2324_v37 = vpop.eup %2323  ;;  %v792_v19 = vxor.u32 %v791_v18, %v790_v15  ;;  %v881_v15 = vshrl.u32 %v879_v13, 16  ;;  %v882_v18 = vxor.u32 %v880_v14, %v878_v4 }
 0x411   :  { %v2326_v39 = vpop.eup %2325  ;;  %v659_v42 = vmul.f32 %v2324_v37, %v656_v27  ;;  %vm664_vm10 = vweird.f32 %v2324_v37 }
 0x412   :  { %v674_v43 = vmul.f32 %v2326_v39, %v657_v31  ;;  %vm679_vm11 = vweird.f32 %v2326_v39  ;;  %vm665_vm13 = vmor %vm663_vm12, %vm664_vm10  ;;  %v793_v20 = vmul.u32 2221713035, %v792_v19  ;;  %v883_v19 = vxor.u32 %v881_v15, %v879_v13 }
 0x413   :  { %v660_v44 = vsub.f32 1.0, %v659_v42  ;;  %vm680_vm0 = vmor %vm678_vm14, %vm679_vm11 }
 0x414   :  { %v675_v50 = vsub.f32 1.0, %v674_v43  ;;  %v794_v21 = vshrl.u32 %v793_v20, 16 }
 0x415   :  { %v661_v57 = vmul.f32 %v2324_v37, %v660_v44 }
 0x416   :  { %v676_v60 = vmul.f32 %v2326_v39, %v675_v50  ;;  %v795_v26 = vxor.u32 %v794_v21, %v793_v20  ;;  %v884_v20 = vmul.u32 2146121005, %v882_v18  ;;  %v885_v21 = vmul.u32 2146121005, %v883_v19 }
 0x417   :  { %v662_v62 = vadd.f32 %v2324_v37, %v661_v57 }
 0x418   :  { %v677_v1 = vadd.f32 %v2326_v39, %v676_v60  ;;  %v796_v27 = vshrl.u32 %v795_v26, 16 }
 0x419   :  { %v666_v2 = vsel %vm665_vm13, %v2324_v37, %v662_v62 }
 0x41a   :  { %v671_v7 = vsel %vm668_vm15, %v670_v0, %v666_v2  ;;  %v681_v8 = vsel %vm680_vm0, %v2326_v39, %v677_v1  ;;  %v797_v30 = vxor.u32 %v796_v27, %v795_v26  ;;  %v886_v26 = vshrl.u32 %v884_v20, 15 }
 0x41b   :  { %vm731_vm2 = vcmp.lt.f32.partialorder %v729_v63, %v671_v7  ;;  %v686_v9 = vsel %vm683_vm1, %v685_v6, %v681_v8  ;;  %v887_v27 = vshrl.u32 %v885_v21, 15 }
 0x41c   :  { %vm2168_vm3 = vmpackc.low %vm731_vm2, %vm731_vm2  ;;  %vm732_vm4 = vcmp.lt.f32.partialorder %v730_v53, %v686_v9  ;;  %v798_v31 = vmul.u32 2146121005, %v797_v30  ;;  %v888_v30 = vxor.u32 %v886_v26, %v884_v20 }
 0x41d   :  { %2169 = vmatmul.msk.bf16.vlgmr.msrb.gmra.mxu2 %vm2168_vm3, %v2520_v48  ;;  %vm2170_vm5 = vmpackc.low %vm732_vm4, %vm732_vm4 }
 0x41e   :  { %2171 = vmatmul.msk.bf16.vlgmr.msrb.gmra.mxu3 %vm2170_vm5, %v2520_v48  ;;  %1113 = vmatpush.bf16.xpose.msrb.mxu2 %v2557_v3  ;;  %v799_v38 = vshrl.u32 %v798_v31, 15 }
 0x41f   :  { %1126 = vmatpush.bf16.xpose.msrb.mxu3 %v2559_v5 }
 0x420   :  { %v800_v43 = vxor.u32 %v799_v38, %v798_v31  ;;  %v889_v31 = vxor.u32 %v887_v27, %v885_v21 }
 0x422   :  { %v801_v50 = vmul.u32 2221713035, %v800_v43 }
 0x424   :  { %v802_v56 = vshrl.u32 %v801_v50, 16 }
 0x426   :  { %1114 = vmatpush.bf16.xpose.msrb.mxu2 %v2565_v10  ;;  %v803_v58 = vxor.u32 %v802_v56, %v801_v50 }
 0x427   :  { %1127 = vmatpush.bf16.xpose.msrb.mxu3 %v2567_v11 }
 0x428   :  { %v804_v59 = vshrl.u32 %v803_v58, 8 }
 0x42a   :  { %v805_v63 = vcvt.s32.f32 %v804_v59 }
 0x42c   :  { %v806_v6 = vmul.f32 5.9604645e-08, %v805_v63 }
 0x42e   :  { %1115 = vmatpush.bf16.xpose.msrb.mxu2 %v2571_v16 }
 0x42f   :  { %1128 = vmatpush.bf16.xpose.msrb.mxu3 %v2573_v17 }
 0x436   :  { %1116 = vmatpush.bf16.xpose.msrb.mxu2 %v2579_v22 }
 0x437   :  { %1129 = vmatpush.bf16.xpose.msrb.mxu3 %v2581_v23 }
 0x43e   :  { %1117 = vmatpush.bf16.xpose.msrb.mxu2 %v2585_v28 }
 0x43f   :  { %1130 = vmatpush.bf16.xpose.msrb.mxu3 %v2587_v29 }
 0x446   :  { %1118 = vmatpush.bf16.xpose.msrb.mxu2 %v2593_v34 }
 0x447   :  { %1131 = vmatpush.bf16.xpose.msrb.mxu3 %v2595_v35 }
 0x44e   :  { %1119 = vmatpush.bf16.xpose.msrb.mxu2 %v2599_v40 }
 0x44f   :  { %1132 = vmatpush.bf16.xpose.msrb.mxu3 %v2601_v41 }
 0x456   :  { %1120 = vmatpush.bf16.xpose.msrb.mxu2 %v2607_v46 }
 0x457   :  { %1133 = vmatpush.bf16.xpose.msrb.mxu3 %v2609_v47 }
 0x4a0   :  { %v748_v32 = vpop.f32.mrf.mxu2 }
 0x4a1   :  { %v749_v36 = vadd.f32 %v2825_v33, %v748_v32  ;;  %v761_v37 = vpop.f32.mrf.mxu3  ;;  %v890_v32 = vmul.u32 2221713035, %v888_v30 }
 0x4a3   :  { %v762_v39 = vadd.f32 %v761_v37, %v749_v36  ;;  %v891_v36 = vmul.u32 2221713035, %v889_v31  ;;  %v892_v37 = vshrl.u32 %v890_v32, 16 }
 0x4a5   :  { %v2172_v42 = vmul.f32 -1.442695, %v762_v39  ;;  %v893_v38 = vshrl.u32 %v891_v36, 16  ;;  %v894_v39 = vxor.u32 %v892_v37, %v890_v32 }
 0x4a7   :  { %2327 = vpow2.f32 %v2172_v42  ;;  %v895_v42 = vxor.u32 %v893_v38, %v891_v36  ;;  %v896_v43 = vshrl.u32 %v894_v39, 16 }
 0x4a8   :  { %v750_v44 = vpop.f32.mrf.mxu2 }
 0x4a9   :  { %v763_v45 = vpop.f32.mrf.mxu3  ;;  %v897_v44 = vshrl.u32 %v895_v42, 16 }
 0x4aa   :  { %v898_v45 = vxor.u32 %v896_v43, %v894_v39 }
 0x4ab   :  { %v899_v50 = vxor.u32 %v897_v44, %v895_v42 }
 0x4ad   :  { %v2328_v52 = vpop.eup %2327  ;;  %v901_v56 = vmul.u32 2146121005, %v899_v50 }
 0x4ae   :  { %v768_v57 = vadd.f32 1.0, %v2328_v52  ;;  %v900_v52 = vmul.u32 2146121005, %v898_v45 }
 0x4b0   :  { %2329 = vrcp.f32 %v768_v57  ;;  %v780_v0 = vand.u32 2147483648, %v768_v57  ;;  %v778_v53 = vand.u32 2147483647, %v768_v57  ;;  %vm774_vm7 = vweird.f32 %v768_v57 }
 0x4b2   :  { %v781_v7 = vor.u32 1.1754944e-38, %v780_v0  ;;  %vm779_vm9 = vcmp.eq.f32.partialorder %v778_v53, 8.507059e+37 }
 0x4b6   :  { %v2330_v60 = vpop.eup %2329 }
 0x4b7   :  { %v770_v61 = vmul.f32 %v2330_v60, %v768_v57  ;;  %vm775_vm6 = vweird.f32 %v2330_v60  ;;  %v902_v57 = vshrl.u32 %v900_v52, 15 }
 0x4b8   :  { %vm776_vm8 = vmor %vm774_vm7, %vm775_vm6 }
 0x4b9   :  { %v771_v62 = vsub.f32 1.0, %v770_v61 }
 0x4bb   :  { %v772_v1 = vmul.f32 %v2330_v60, %v771_v62 }
 0x4bd   :  { %v773_v2 = vadd.f32 %v2330_v60, %v772_v1  ;;  %v904_v1 = vxor.u32 %v902_v57, %v900_v52 }
 0x4bf   :  { %v777_v8 = vsel %vm776_vm8, %v2330_v60, %v773_v2  ;;  %v903_v60 = vshrl.u32 %v901_v56, 15  ;;  %v906_v2 = vmul.u32 2221713035, %v904_v1  ;;  %v973_v1 = vadd.s32 16384, %v2674_v55 }
 0x4c0   :  { %v782_v9 = vsel %vm779_vm9, %v781_v7, %v777_v8 }
 0x4c1   :  { %vm807_vm10 = vcmp.lt.f32.partialorder %v806_v6, %v782_v9  ;;  %v905_v53 = vxor.u32 %v903_v60, %v901_v56  ;;  %v908_v12 = vshrl.u32 %v906_v2, 16 }
 0x4c2   :  { %vm2174_vm11 = vmpackc.low %vm807_vm10, %vm807_vm10 }
 0x4c3   :  { %2175 = vmatmul.msk.bf16.vlgmr.msrb.gmra.mxu0 %vm2174_vm11, %v2520_v48  ;;  %2177 = vmatmul.msk.bf16.vlgmr.msrb.gmra.mxu1 %vm2174_vm11, %v2520_v48  ;;  %v907_v8 = vmul.u32 2221713035, %v905_v53  ;;  %v910_v18 = vxor.u32 %v908_v12, %v906_v2  ;;  %v974_v53 = vadd.s32 %v973_v1, %v2671_v54  ;;  %v1064_v1 = vadd.s32 18432, %v2700_v49 }
 0x4c4   :  { %1185 = vmatpush.bf16.msrb.mxu0 %v2557_v3  ;;  %1198 = vmatpush.bf16.msrb.mxu1 %v2559_v5 }
 0x4c5   :  { %v909_v14 = vshrl.u32 %v907_v8, 16  ;;  %v912_v20 = vshrl.u32 %v910_v18, 8  ;;  %v975_v2 = vshrl.u32 %v974_v53, 16 }
 0x4c7   :  { %v911_v19 = vxor.u32 %v909_v14, %v907_v8  ;;  %v914_v36 = vcvt.s32.f32 %v912_v20 }
 0x4c8   :  { %1186 = vmatpush.bf16.msrb.mxu0 %v2565_v10  ;;  %1199 = vmatpush.bf16.msrb.mxu1 %v2567_v11 }
 0x4c9   :  { %v913_v26 = vshrl.u32 %v911_v19, 8  ;;  %v916_v56 = vmul.f32 5.9604645e-08, %v914_v36 }
 0x4cb   :  { %v915_v39 = vcvt.s32.f32 %v913_v26 }
 0x4cc   :  { %1187 = vmatpush.bf16.msrb.mxu0 %v2571_v16  ;;  %1200 = vmatpush.bf16.msrb.mxu1 %v2573_v17 }
 0x4d0   :  { %1188 = vmatpush.bf16.msrb.mxu0 %v2579_v22  ;;  %1201 = vmatpush.bf16.msrb.mxu1 %v2581_v23 }
 0x4d4   :  { %1189 = vmatpush.bf16.msrb.mxu0 %v2585_v28  ;;  %1202 = vmatpush.bf16.msrb.mxu1 %v2587_v29 }
 0x4d8   :  { %1190 = vmatpush.bf16.msrb.mxu0 %v2593_v34  ;;  %1203 = vmatpush.bf16.msrb.mxu1 %v2595_v35 }
 0x4dc   :  { %1191 = vmatpush.bf16.msrb.mxu0 %v2599_v40  ;;  %1204 = vmatpush.bf16.msrb.mxu1 %v2601_v41 }
 0x4e0   :  { %1192 = vmatpush.bf16.msrb.mxu0 %v2607_v46  ;;  %1205 = vmatpush.bf16.msrb.mxu1 %v2609_v47 }
 0x540   :  { %v820_v58 = vpop.f32.mrf.mxu0  ;;  %v833_v59 = vpop.f32.mrf.mxu1 }
 0x541   :  { %v821_v61 = vadd.f32 %v820_v58, %v2711_v24  ;;  %v834_v62 = vadd.f32 %v833_v59, %v2713_v25  ;;  %v917_v59 = vmul.f32 5.9604645e-08, %v915_v39 }
 0x543   :  { %v2178_v63 = vmul.f32 -1.442695, %v821_v61  ;;  %v2179_v0 = vmul.f32 -1.442695, %v834_v62 }
 0x545   :  { %2331 = vpow2.f32 %v2178_v63 }
 0x546   :  { %2333 = vpow2.f32 %v2179_v0 }
 0x548   :  { %v822_v6 = vpop.f32.mrf.mxu0  ;;  %v835_v7 = vpop.f32.mrf.mxu1 }
 0x549   :  { %v976_v6 = vxor.u32 %v975_v2, %v974_v53  ;;  %v1065_v53 = vadd.s32 %v1064_v1, %v2671_v54  ;;  %v1066_v2 = vadd.s32 %v1064_v1, %v2704_v51 }
 0x54b   :  { %v2332_v9 = vpop.eup %2331  ;;  %v977_v7 = vmul.u32 2146121005, %v976_v6  ;;  %v1067_v6 = vshrl.u32 %v1065_v53, 16 }
 0x54c   :  { %v2334_v4 = vpop.eup %2333  ;;  %v843_v13 = vadd.f32 1.0, %v2332_v9 }
 0x54d   :  { %v844_v15 = vadd.f32 1.0, %v2334_v4  ;;  %v978_v8 = vshrl.u32 %v977_v7, 15 }
 0x54e   :  { %2335 = vrcp.f32 %v843_v13  ;;  %v856_v38 = vand.u32 2147483648, %v843_v13  ;;  %v854_v43 = vand.u32 2147483647, %v843_v13  ;;  %vm850_vm14 = vweird.f32 %v843_v13 }
 0x54f   :  { %2337 = vrcp.f32 %v844_v15  ;;  %v871_v44 = vand.u32 2147483648, %v844_v15  ;;  %v869_v50 = vand.u32 2147483647, %v844_v15  ;;  %vm865_vm0 = vweird.f32 %v844_v15 }
 0x550   :  { %v857_v57 = vor.u32 1.1754944e-38, %v856_v38  ;;  %vm855_vm1 = vcmp.eq.f32.partialorder %v854_v43, 8.507059e+37  ;;  %v979_v9 = vxor.u32 %v978_v8, %v977_v7  ;;  %v1068_v7 = vshrl.u32 %v1066_v2, 16 }
 0x551   :  { %v872_v61 = vor.u32 1.1754944e-38, %v871_v44  ;;  %vm870_vm3 = vcmp.eq.f32.partialorder %v869_v50, 8.507059e+37  ;;  %v1069_v8 = vxor.u32 %v1067_v6, %v1065_v53 }
 0x552   :  { %v980_v12 = vmul.u32 2221713035, %v979_v9  ;;  %v1070_v9 = vxor.u32 %v1068_v7, %v1066_v2 }
 0x554   :  { %v2336_v21 = vpop.eup %2335  ;;  %v981_v4 = vshrl.u32 %v980_v12, 16 }
 0x555   :  { %v2338_v27 = vpop.eup %2337  ;;  %v846_v30 = vmul.f32 %v2336_v21, %v843_v13  ;;  %vm851_vm12 = vweird.f32 %v2336_v21 }
 0x556   :  { %v861_v31 = vmul.f32 %v2338_v27, %v844_v15  ;;  %vm866_vm13 = vweird.f32 %v2338_v27  ;;  %vm852_vm15 = vmor %vm850_vm14, %vm851_vm12  ;;  %v982_v13 = vxor.u32 %v981_v4, %v980_v12  ;;  %v1071_v12 = vmul.u32 2146121005, %v1069_v8 }
 0x557   :  { %v847_v32 = vsub.f32 1.0, %v846_v30  ;;  %vm867_vm2 = vmor %vm865_vm0, %vm866_vm13  ;;  %v1072_v4 = vmul.u32 2146121005, %v1070_v9 }
 0x558   :  { %v862_v37 = vsub.f32 1.0, %v861_v31  ;;  %v983_v14 = vshrl.u32 %v982_v13, 16 }
 0x559   :  { %v848_v42 = vmul.f32 %v2336_v21, %v847_v32 }
 0x55a   :  { %v863_v45 = vmul.f32 %v2338_v27, %v862_v37  ;;  %v984_v15 = vxor.u32 %v983_v14, %v982_v13  ;;  %v1073_v13 = vshrl.u32 %v1071_v12, 15  ;;  %v1074_v14 = vshrl.u32 %v1072_v4, 15 }
 0x55b   :  { %v849_v52 = vadd.f32 %v2336_v21, %v848_v42 }
 0x55c   :  { %v864_v58 = vadd.f32 %v2338_v27, %v863_v45  ;;  %v985_v18 = vmul.u32 2146121005, %v984_v15  ;;  %v1075_v15 = vxor.u32 %v1073_v13, %v1071_v12 }
 0x55d   :  { %v853_v60 = vsel %vm852_vm15, %v2336_v21, %v849_v52 }
 0x55e   :  { %v858_v62 = vsel %vm855_vm1, %v857_v57, %v853_v60  ;;  %v868_v63 = vsel %vm867_vm2, %v2338_v27, %v864_v58  ;;  %v986_v26 = vshrl.u32 %v985_v18, 15 }
 0x55f   :  { %vm918_vm4 = vcmp.lt.f32.partialorder %v916_v56, %v858_v62  ;;  %v873_v0 = vsel %vm870_vm3, %v872_v61, %v868_v63 }
 0x560   :  { %vm2182_vm5 = vmpackc.low %vm918_vm4, %vm918_vm4  ;;  %vm919_vm6 = vcmp.lt.f32.partialorder %v917_v59, %v873_v0  ;;  %v987_v31 = vxor.u32 %v986_v26, %v985_v18  ;;  %v1076_v18 = vxor.u32 %v1074_v14, %v1072_v4 }
 0x561   :  { %2183 = vmatmul.msk.bf16.vlgmr.msra.gmra.mxu0 %vm2182_vm5, %v2520_v48  ;;  %vm2184_vm7 = vmpackc.low %vm919_vm6, %vm919_vm6 }
 0x562   :  { %2185 = vmatmul.msk.bf16.vlgmr.msra.gmra.mxu1 %vm2184_vm7, %v2520_v48  ;;  %1300 = vmatpush.bf16.xpose.msra.mxu0 %v2557_v3  ;;  %v988_v37 = vmul.u32 2221713035, %v987_v31 }
 0x563   :  { %1313 = vmatpush.bf16.xpose.msra.mxu1 %v2559_v5 }
 0x564   :  { %v989_v39 = vshrl.u32 %v988_v37, 16 }
 0x566   :  { %v990_v43 = vxor.u32 %v989_v39, %v988_v37 }
 0x568   :  { %v991_v44 = vshrl.u32 %v990_v43, 8 }
 0x56a   :  { %1301 = vmatpush.bf16.xpose.msra.mxu0 %v2565_v10  ;;  %v992_v56 = vcvt.s32.f32 %v991_v44 }
 0x56b   :  { %1314 = vmatpush.bf16.xpose.msra.mxu1 %v2567_v11 }
 0x56c   :  { %v993_v61 = vmul.f32 5.9604645e-08, %v992_v56 }
 0x572   :  { %1302 = vmatpush.bf16.xpose.msra.mxu0 %v2571_v16 }
 0x573   :  { %1315 = vmatpush.bf16.xpose.msra.mxu1 %v2573_v17 }
 0x57a   :  { %1303 = vmatpush.bf16.xpose.msra.mxu0 %v2579_v22 }
 0x57b   :  { %1316 = vmatpush.bf16.xpose.msra.mxu1 %v2581_v23 }
 0x582   :  { %1304 = vmatpush.bf16.xpose.msra.mxu0 %v2585_v28 }
 0x583   :  { %1317 = vmatpush.bf16.xpose.msra.mxu1 %v2587_v29 }
 0x58a   :  { %1305 = vmatpush.bf16.xpose.msra.mxu0 %v2593_v34 }
 0x58b   :  { %1318 = vmatpush.bf16.xpose.msra.mxu1 %v2595_v35 }
 0x592   :  { %1306 = vmatpush.bf16.xpose.msra.mxu0 %v2599_v40 }
 0x593   :  { %1319 = vmatpush.bf16.xpose.msra.mxu1 %v2601_v41 }
 0x59a   :  { %1307 = vmatpush.bf16.xpose.msra.mxu0 %v2607_v46 }
 0x59b   :  { %1320 = vmatpush.bf16.xpose.msra.mxu1 %v2609_v47 }
 0x5de   :  { %v935_v19 = vpop.f32.mrf.mxu0 }
 0x5df   :  { %v936_v20 = vadd.f32 %v2825_v33, %v935_v19  ;;  %v948_v21 = vpop.f32.mrf.mxu1  ;;  %v1077_v19 = vmul.u32 2221713035, %v1075_v15 }
 0x5e1   :  { %v949_v27 = vadd.f32 %v948_v21, %v936_v20  ;;  %v1078_v20 = vmul.u32 2221713035, %v1076_v18  ;;  %v1079_v21 = vshrl.u32 %v1077_v19, 16 }
 0x5e3   :  { %v2186_v30 = vmul.f32 -1.442695, %v949_v27  ;;  %v1080_v26 = vshrl.u32 %v1078_v20, 16  ;;  %v1081_v27 = vxor.u32 %v1079_v21, %v1077_v19 }
 0x5e5   :  { %2339 = vpow2.f32 %v2186_v30  ;;  %v1082_v30 = vxor.u32 %v1080_v26, %v1078_v20  ;;  %v1083_v31 = vshrl.u32 %v1081_v27, 16 }
 0x5e6   :  { %v937_v32 = vpop.f32.mrf.mxu0 }
 0x5e7   :  { %v950_v36 = vpop.f32.mrf.mxu1  ;;  %v1084_v32 = vshrl.u32 %v1082_v30, 16 }
 0x5e8   :  { %v1085_v36 = vxor.u32 %v1083_v31, %v1081_v27 }
 0x5e9   :  { %v1086_v37 = vxor.u32 %v1084_v32, %v1082_v30 }
 0x5eb   :  { %v2340_v38 = vpop.eup %2339  ;;  %v1088_v39 = vmul.u32 2146121005, %v1086_v37 }
 0x5ec   :  { %v955_v42 = vadd.f32 1.0, %v2340_v38  ;;  %v1087_v38 = vmul.u32 2146121005, %v1085_v36 }
 0x5ee   :  { %2341 = vrcp.f32 %v955_v42  ;;  %v967_v57 = vand.u32 2147483648, %v955_v42  ;;  %v965_v59 = vand.u32 2147483647, %v955_v42  ;;  %vm961_vm9 = vweird.f32 %v955_v42 }
 0x5f0   :  { %v968_v62 = vor.u32 1.1754944e-38, %v967_v57  ;;  %vm966_vm11 = vcmp.eq.f32.partialorder %v965_v59, 8.507059e+37 }
 0x5f4   :  { %v2342_v45 = vpop.eup %2341 }
 0x5f5   :  { %v957_v50 = vmul.f32 %v2342_v45, %v955_v42  ;;  %vm962_vm8 = vweird.f32 %v2342_v45  ;;  %v1089_v42 = vshrl.u32 %v1087_v38, 15 }
 0x5f6   :  { %vm963_vm10 = vmor %vm961_vm9, %vm962_vm8 }
 0x5f7   :  { %v958_v52 = vsub.f32 1.0, %v957_v50 }
 0x5f9   :  { %v959_v58 = vmul.f32 %v2342_v45, %v958_v52 }
 0x5fb   :  { %v960_v60 = vadd.f32 %v2342_v45, %v959_v58  ;;  %v1091_v58 = vxor.u32 %v1089_v42, %v1087_v38 }
 0x5fd   :  { %v964_v63 = vsel %vm963_vm10, %v2342_v45, %v960_v60  ;;  %v1090_v45 = vshrl.u32 %v1088_v39, 15  ;;  %v1093_v60 = vmul.u32 2221713035, %v1091_v58  ;;  %v1160_v58 = vadd.s32 20480, %v2674_v55 }
 0x5fe   :  { %v969_v0 = vsel %vm966_vm11, %v968_v62, %v964_v63 }
 0x5ff   :  { %vm994_vm12 = vcmp.lt.f32.partialorder %v993_v61, %v969_v0  ;;  %v1092_v59 = vxor.u32 %v1090_v45, %v1088_v39  ;;  %v1095_v1 = vshrl.u32 %v1093_v60, 16 }
 0x600   :  { %vm2188_vm13 = vmpackc.low %vm994_vm12, %vm994_vm12 }
 0x601   :  { %2189 = vmatmul.msk.bf16.vlgmr.msra.gmra.mxu2 %vm2188_vm13, %v2520_v48  ;;  %2191 = vmatmul.msk.bf16.vlgmr.msra.gmra.mxu3 %vm2188_vm13, %v2520_v48  ;;  %v1094_v63 = vmul.u32 2221713035, %v1092_v59  ;;  %v1097_v8 = vxor.u32 %v1095_v1, %v1093_v60  ;;  %v1161_v59 = vadd.s32 %v1160_v58, %v2671_v54 }
 0x602   :  { %1372 = vmatpush.bf16.msra.mxu2 %v2557_v3  ;;  %1385 = vmatpush.bf16.msra.mxu3 %v2559_v5 }
 0x603   :  { %v1096_v6 = vshrl.u32 %v1094_v63, 16  ;;  %v1099_v12 = vshrl.u32 %v1097_v8, 8  ;;  %v1162_v60 = vshrl.u32 %v1161_v59, 16 }
 0x605   :  { %v1098_v9 = vxor.u32 %v1096_v6, %v1094_v63  ;;  %v1101_v20 = vcvt.s32.f32 %v1099_v12 }
 0x606   :  { %1373 = vmatpush.bf16.msra.mxu2 %v2565_v10  ;;  %1386 = vmatpush.bf16.msra.mxu3 %v2567_v11 }
 0x607   :  { %v1100_v13 = vshrl.u32 %v1098_v9, 8  ;;  %v1103_v39 = vmul.f32 5.9604645e-08, %v1101_v20 }
 0x609   :  { %v1102_v27 = vcvt.s32.f32 %v1100_v13 }
 0x60a   :  { %1374 = vmatpush.bf16.msra.mxu2 %v2571_v16  ;;  %1387 = vmatpush.bf16.msra.mxu3 %v2573_v17 }
 0x60e   :  { %1375 = vmatpush.bf16.msra.mxu2 %v2579_v22  ;;  %1388 = vmatpush.bf16.msra.mxu3 %v2581_v23 }
 0x612   :  { %1376 = vmatpush.bf16.msra.mxu2 %v2585_v28  ;;  %1389 = vmatpush.bf16.msra.mxu3 %v2587_v29 }
 0x616   :  { %1377 = vmatpush.bf16.msra.mxu2 %v2593_v34  ;;  %1390 = vmatpush.bf16.msra.mxu3 %v2595_v35 }
 0x61a   :  { %1378 = vmatpush.bf16.msra.mxu2 %v2599_v40  ;;  %1391 = vmatpush.bf16.msra.mxu3 %v2601_v41 }
 0x61e   :  { %1379 = vmatpush.bf16.msra.mxu2 %v2607_v46  ;;  %1392 = vmatpush.bf16.msra.mxu3 %v2609_v47 }
 0x684   :  { %v1007_v43 = vpop.f32.mrf.mxu2  ;;  %v1020_v44 = vpop.f32.mrf.mxu3 }
 0x685   :  { %v1008_v50 = vadd.f32 %v1007_v43, %v2711_v24  ;;  %v1021_v52 = vadd.f32 %v1020_v44, %v2713_v25  ;;  %v1104_v44 = vmul.f32 5.9604645e-08, %v1102_v27 }
 0x687   :  { %v2192_v56 = vmul.f32 -1.442695, %v1008_v50  ;;  %v2193_v57 = vmul.f32 -1.442695, %v1021_v52 }
 0x689   :  { %2343 = vpow2.f32 %v2192_v56 }
 0x68a   :  { %2345 = vpow2.f32 %v2193_v57 }
 0x68c   :  { %v1009_v61 = vpop.f32.mrf.mxu2  ;;  %v1022_v62 = vpop.f32.mrf.mxu3 }
 0x68d   :  { %v1163_v61 = vxor.u32 %v1162_v60, %v1161_v59 }
 0x68f   :  { %v2344_v0 = vpop.eup %2343  ;;  %v1164_v62 = vmul.u32 2146121005, %v1163_v61 }
 0x690   :  { %v2346_v53 = vpop.eup %2345  ;;  %v1030_v2 = vadd.f32 1.0, %v2344_v0 }
 0x691   :  { %v1031_v7 = vadd.f32 1.0, %v2346_v53  ;;  %v1165_v63 = vshrl.u32 %v1164_v62, 15 }
 0x692   :  { %2347 = vrcp.f32 %v1030_v2  ;;  %v1043_v26 = vand.u32 2147483648, %v1030_v2  ;;  %v1041_v31 = vand.u32 2147483647, %v1030_v2  ;;  %vm1037_vm0 = vweird.f32 %v1030_v2 }
 0x693   :  { %2349 = vrcp.f32 %v1031_v7  ;;  %v1058_v32 = vand.u32 2147483648, %v1031_v7  ;;  %v1056_v37 = vand.u32 2147483647, %v1031_v7  ;;  %vm1052_vm2 = vweird.f32 %v1031_v7 }
 0x694   :  { %v1044_v42 = vor.u32 1.1754944e-38, %v1043_v26  ;;  %vm1042_vm3 = vcmp.eq.f32.partialorder %v1041_v31, 8.507059e+37  ;;  %v1166_v0 = vxor.u32 %v1165_v63, %v1164_v62 }
 0x695   :  { %v1059_v50 = vor.u32 1.1754944e-38, %v1058_v32  ;;  %vm1057_vm5 = vcmp.eq.f32.partialorder %v1056_v37, 8.507059e+37 }
 0x696   :  { %v1167_v1 = vmul.u32 2221713035, %v1166_v0 }
 0x698   :  { %v2348_v4 = vpop.eup %2347  ;;  %v1168_v53 = vshrl.u32 %v1167_v1, 16 }
 0x699   :  { %v2350_v14 = vpop.eup %2349  ;;  %v1033_v15 = vmul.f32 %v2348_v4, %v1030_v2  ;;  %vm1038_vm14 = vweird.f32 %v2348_v4 }
 0x69a   :  { %v1048_v18 = vmul.f32 %v2350_v14, %v1031_v7  ;;  %vm1053_vm15 = vweird.f32 %v2350_v14  ;;  %vm1039_vm1 = vmor %vm1037_vm0, %vm1038_vm14  ;;  %v1169_v2 = vxor.u32 %v1168_v53, %v1167_v1 }
 0x69b   :  { %v1034_v19 = vsub.f32 1.0, %v1033_v15  ;;  %vm1054_vm4 = vmor %vm1052_vm2, %vm1053_vm15 }
 0x69c   :  { %v1049_v21 = vsub.f32 1.0, %v1048_v18  ;;  %v1170_v6 = vshrl.u32 %v1169_v2, 16 }
 0x69d   :  { %v1035_v30 = vmul.f32 %v2348_v4, %v1034_v19 }
 0x69e   :  { %v1050_v36 = vmul.f32 %v2350_v14, %v1049_v21  ;;  %v1171_v7 = vxor.u32 %v1170_v6, %v1169_v2 }
 0x69f   :  { %v1036_v38 = vadd.f32 %v2348_v4, %v1035_v30 }
 0x6a0   :  { %v1051_v43 = vadd.f32 %v2350_v14, %v1050_v36  ;;  %v1172_v8 = vmul.u32 2146121005, %v1171_v7 }
 0x6a1   :  { %v1040_v45 = vsel %vm1039_vm1, %v2348_v4, %v1036_v38 }
 0x6a2   :  { %v1045_v52 = vsel %vm1042_vm3, %v1044_v42, %v1040_v45  ;;  %v1055_v56 = vsel %vm1054_vm4, %v2350_v14, %v1051_v43  ;;  %v1173_v13 = vshrl.u32 %v1172_v8, 15 }
 0x6a3   :  { %vm1105_vm6 = vcmp.lt.f32.partialorder %v1103_v39, %v1045_v52  ;;  %v1060_v57 = vsel %vm1057_vm5, %v1059_v50, %v1055_v56 }
 0x6a4   :  { %vm2196_vm7 = vmpackc.low %vm1105_vm6, %vm1105_vm6  ;;  %vm1106_vm8 = vcmp.lt.f32.partialorder %v1104_v44, %v1060_v57  ;;  %v1174_v18 = vxor.u32 %v1173_v13, %v1172_v8  ;;  %v1251_v57 = vadd.s32 22528, %v2700_v49 }
 0x6a5   :  { %2197 = vmatmul.msk.bf16.vlgmr.msrb.gmra.mxu2 %vm2196_vm7, %v2520_v48  ;;  %vm2198_vm9 = vmpackc.low %vm1106_vm8, %vm1106_vm8 }
 0x6a6   :  { %2199 = vmatmul.msk.bf16.vlgmr.msrb.gmra.mxu3 %vm2198_vm9, %v2520_v48  ;;  %1487 = vmatpush.bf16.xpose.msrb.mxu2 %v2557_v3  ;;  %v1175_v21 = vmul.u32 2221713035, %v1174_v18  ;;  %v1252_v58 = vadd.s32 %v1251_v57, %v2671_v54  ;;  %v1253_v59 = vadd.s32 %v1251_v57, %v2704_v51 }
 0x6a7   :  { %1500 = vmatpush.bf16.xpose.msrb.mxu3 %v2559_v5 }
 0x6a8   :  { %v1176_v27 = vshrl.u32 %v1175_v21, 16  ;;  %v1254_v60 = vshrl.u32 %v1252_v58, 16  ;;  %v1255_v61 = vshrl.u32 %v1253_v59, 16 }
 0x6aa   :  { %v1177_v31 = vxor.u32 %v1176_v27, %v1175_v21  ;;  %v1256_v62 = vxor.u32 %v1254_v60, %v1252_v58  ;;  %v1257_v63 = vxor.u32 %v1255_v61, %v1253_v59 }
 0x6ac   :  { %v1178_v32 = vshrl.u32 %v1177_v31, 8  ;;  %v1258_v0 = vmul.u32 2146121005, %v1256_v62  ;;  %v1259_v1 = vmul.u32 2146121005, %v1257_v63 }
 0x6ae   :  { %1488 = vmatpush.bf16.xpose.msrb.mxu2 %v2565_v10  ;;  %v1179_v39 = vcvt.s32.f32 %v1178_v32  ;;  %v1260_v53 = vshrl.u32 %v1258_v0, 15  ;;  %v1261_v2 = vshrl.u32 %v1259_v1, 15 }
 0x6af   :  { %1501 = vmatpush.bf16.xpose.msrb.mxu3 %v2567_v11 }
 0x6b0   :  { %v1180_v45 = vmul.f32 5.9604645e-08, %v1179_v39  ;;  %v1262_v6 = vxor.u32 %v1260_v53, %v1258_v0  ;;  %v1263_v7 = vxor.u32 %v1261_v2, %v1259_v1 }
 0x6b2   :  { %v1264_v8 = vmul.u32 2221713035, %v1262_v6 }
 0x6b6   :  { %1489 = vmatpush.bf16.xpose.msrb.mxu2 %v2571_v16 }
 0x6b7   :  { %1502 = vmatpush.bf16.xpose.msrb.mxu3 %v2573_v17 }
 0x6be   :  { %1490 = vmatpush.bf16.xpose.msrb.mxu2 %v2579_v22 }
 0x6bf   :  { %1503 = vmatpush.bf16.xpose.msrb.mxu3 %v2581_v23 }
 0x6c6   :  { %1491 = vmatpush.bf16.xpose.msrb.mxu2 %v2585_v28 }
 0x6c7   :  { %1504 = vmatpush.bf16.xpose.msrb.mxu3 %v2587_v29 }
 0x6ce   :  { %1492 = vmatpush.bf16.xpose.msrb.mxu2 %v2593_v34 }
 0x6cf   :  { %1505 = vmatpush.bf16.xpose.msrb.mxu3 %v2595_v35 }
 0x6d6   :  { %1493 = vmatpush.bf16.xpose.msrb.mxu2 %v2599_v40 }
 0x6d7   :  { %1506 = vmatpush.bf16.xpose.msrb.mxu3 %v2601_v41 }
 0x6de   :  { %1494 = vmatpush.bf16.xpose.msrb.mxu2 %v2607_v46 }
 0x6df   :  { %1507 = vmatpush.bf16.xpose.msrb.mxu3 %v2609_v47 }
 0x728   :  { %v1122_v9 = vpop.f32.mrf.mxu2 }
 0x729   :  { %v1123_v12 = vadd.f32 %v2825_v33, %v1122_v9  ;;  %v1135_v4 = vpop.f32.mrf.mxu3  ;;  %v1265_v9 = vmul.u32 2221713035, %v1263_v7 }
 0x72b   :  { %v1136_v14 = vadd.f32 %v1135_v4, %v1123_v12  ;;  %v1266_v12 = vshrl.u32 %v1264_v8, 16  ;;  %v1267_v4 = vshrl.u32 %v1265_v9, 16 }
 0x72d   :  { %v2200_v15 = vmul.f32 -1.442695, %v1136_v14  ;;  %v1268_v13 = vxor.u32 %v1266_v12, %v1264_v8  ;;  %v1269_v14 = vxor.u32 %v1267_v4, %v1265_v9 }
 0x72f   :  { %2351 = vpow2.f32 %v2200_v15  ;;  %v1270_v15 = vshrl.u32 %v1268_v13, 16  ;;  %v1271_v18 = vshrl.u32 %v1269_v14, 16 }
 0x730   :  { %v1124_v19 = vpop.f32.mrf.mxu2 }
 0x731   :  { %v1137_v20 = vpop.f32.mrf.mxu3  ;;  %v1272_v19 = vxor.u32 %v1270_v15, %v1268_v13 }
 0x732   :  { %v1273_v20 = vxor.u32 %v1271_v18, %v1269_v14 }
 0x733   :  { %v1274_v21 = vmul.u32 2146121005, %v1272_v19 }
 0x735   :  { %v2352_v26 = vpop.eup %2351  ;;  %v1276_v27 = vshrl.u32 %v1274_v21, 15 }
 0x736   :  { %v1142_v30 = vadd.f32 1.0, %v2352_v26  ;;  %v1275_v26 = vmul.u32 2146121005, %v1273_v20 }
 0x738   :  { %2353 = vrcp.f32 %v1142_v30  ;;  %v1154_v33 = vand.u32 2147483648, %v1142_v30  ;;  %v1152_v43 = vand.u32 2147483647, %v1142_v30  ;;  %vm1148_vm11 = vweird.f32 %v1142_v30 }
 0x739   :  { %v1277_v32 = vshrl.u32 %v1275_v26, 15 }
 0x73a   :  { %v1155_v50 = vor.u32 1.1754944e-38, %v1154_v33  ;;  %vm1153_vm13 = vcmp.eq.f32.partialorder %v1152_v43, 8.507059e+37  ;;  %v1278_v33 = vxor.u32 %v1276_v27, %v1274_v21 }
 0x73c   :  { %v1280_v43 = vmul.u32 2221713035, %v1278_v33 }
 0x73e   :  { %v2354_v36 = vpop.eup %2353 }
 0x73f   :  { %v1144_v37 = vmul.f32 %v2354_v36, %v1142_v30  ;;  %vm1149_vm10 = vweird.f32 %v2354_v36 }
 0x740   :  { %vm1150_vm12 = vmor %vm1148_vm11, %vm1149_vm10 }
 0x741   :  { %v1145_v38 = vsub.f32 1.0, %v1144_v37 }
 0x743   :  { %v1146_v42 = vmul.f32 %v2354_v36, %v1145_v38 }
 0x745   :  { %v1147_v44 = vadd.f32 %v2354_v36, %v1146_v42  ;;  %v1279_v42 = vxor.u32 %v1277_v32, %v1275_v26 }
 0x747   :  { %v1151_v52 = vsel %vm1150_vm12, %v2354_v36, %v1147_v44 }
 0x748   :  { %v1156_v56 = vsel %vm1153_vm13, %v1155_v50, %v1151_v52  ;;  %v1281_v50 = vmul.u32 2221713035, %v1279_v42 }
 0x749   :  { %vm1181_vm14 = vcmp.lt.f32.partialorder %v1180_v45, %v1156_v56  ;;  %v1282_v56 = vshrl.u32 %v1280_v43, 16 }
 0x74a   :  { %vm2202_vm15 = vmpackc.low %vm1181_vm14, %vm1181_vm14  ;;  %v1283_v59 = vshrl.u32 %v1281_v50, 16 }
 0x74b   :  { %2203 = vmatmul.msk.bf16.vlgmr.msrb.gmra.mxu0 %vm2202_vm15, %v2520_v48  ;;  %2205 = vmatmul.msk.bf16.vlgmr.msrb.gmra.mxu1 %vm2202_vm15, %v2520_v48  ;;  %v1284_v61 = vxor.u32 %v1282_v56, %v1280_v43 }
 0x74c   :  { %1559 = vmatpush.bf16.msrb.mxu0 %v2557_v3  ;;  %1572 = vmatpush.bf16.msrb.mxu1 %v2559_v5  ;;  %v1285_v62 = vxor.u32 %v1283_v59, %v1281_v50 }
 0x74d   :  { %v1286_v63 = vshrl.u32 %v1284_v61, 8 }
 0x74e   :  { %v1287_v1 = vshrl.u32 %v1285_v62, 8  ;;  %v2959_v62 = vld [vmem:[#allocation7] ss:$0 sm:$0xff] }
 0x74f   :  { %v1288_v8 = vcvt.s32.f32 %v1286_v63 }
 0x750   :  { %1560 = vmatpush.bf16.msrb.mxu0 %v2565_v10  ;;  %1573 = vmatpush.bf16.msrb.mxu1 %v2567_v11  ;;  %v1289_v4 = vcvt.s32.f32 %v1287_v1 }
 0x751   :  { %v1290_v21 = vmul.f32 5.9604645e-08, %v1288_v8 }
 0x754   :  { %1561 = vmatpush.bf16.msrb.mxu0 %v2571_v16  ;;  %1574 = vmatpush.bf16.msrb.mxu1 %v2573_v17 }
 0x758   :  { %1562 = vmatpush.bf16.msrb.mxu0 %v2579_v22  ;;  %1575 = vmatpush.bf16.msrb.mxu1 %v2581_v23 }
 0x75c   :  { %1563 = vmatpush.bf16.msrb.mxu0 %v2585_v28  ;;  %1576 = vmatpush.bf16.msrb.mxu1 %v2587_v29 }
 0x760   :  { %1564 = vmatpush.bf16.msrb.mxu0 %v2593_v34  ;;  %1577 = vmatpush.bf16.msrb.mxu1 %v2595_v35 }
 0x764   :  { %1565 = vmatpush.bf16.msrb.mxu0 %v2599_v40  ;;  %1578 = vmatpush.bf16.msrb.mxu1 %v2601_v41 }
 0x768   :  { %1566 = vmatpush.bf16.msrb.mxu0 %v2607_v46  ;;  %1579 = vmatpush.bf16.msrb.mxu1 %v2609_v47 }
 0x7c8   :  { %v1194_v30 = vpop.f32.mrf.mxu0  ;;  %v1207_v31 = vpop.f32.mrf.mxu1 }
 0x7c9   :  { %v1195_v36 = vadd.f32 %v1194_v30, %v2711_v24  ;;  %v1208_v37 = vadd.f32 %v1207_v31, %v2713_v25  ;;  %v1291_v30 = vmul.f32 5.9604645e-08, %v1289_v4 }
 0x7cb   :  { %v2206_v38 = vmul.f32 -1.442695, %v1195_v36  ;;  %v2207_v39 = vmul.f32 -1.442695, %v1208_v37 }
 0x7cd   :  { %2355 = vpow2.f32 %v2206_v38 }
 0x7ce   :  { %2357 = vpow2.f32 %v2207_v39  ;;  %v1347_v39 = vadd.s32 24576, %v2674_v55 }
 0x7d0   :  { %v1196_v44 = vpop.f32.mrf.mxu0  ;;  %v1209_v45 = vpop.f32.mrf.mxu1  ;;  %v1348_v33 = vadd.s32 %v1347_v39, %v2671_v54  ;;  %v1438_v39 = vadd.s32 26624, %v2700_v49 }
 0x7d2   :  { %v1349_v42 = vshrl.u32 %v1348_v33, 16 }
 0x7d3   :  { %v2356_v52 = vpop.eup %2355 }
 0x7d4   :  { %v2358_v57 = vpop.eup %2357  ;;  %v1217_v58 = vadd.f32 1.0, %v2356_v52  ;;  %v1350_v43 = vxor.u32 %v1349_v42, %v1348_v33  ;;  %v1439_v33 = vadd.s32 %v1438_v39, %v2671_v54  ;;  %v1440_v42 = vadd.s32 %v1438_v39, %v2704_v51 }
 0x7d5   :  { %v1218_v60 = vadd.f32 1.0, %v2358_v57 }
 0x7d6   :  { %2359 = vrcp.f32 %v1217_v58  ;;  %v1230_v12 = vand.u32 2147483648, %v1217_v58  ;;  %v1228_v14 = vand.u32 2147483647, %v1217_v58  ;;  %vm1224_vm2 = vweird.f32 %v1217_v58 }
 0x7d7   :  { %2361 = vrcp.f32 %v1218_v60  ;;  %v1245_v15 = vand.u32 2147483648, %v1218_v60  ;;  %v1243_v19 = vand.u32 2147483647, %v1218_v60  ;;  %vm1239_vm4 = vweird.f32 %v1218_v60 }
 0x7d8   :  { %v1231_v26 = vor.u32 1.1754944e-38, %v1230_v12  ;;  %vm1229_vm5 = vcmp.eq.f32.partialorder %v1228_v14, 8.507059e+37  ;;  %v1351_v44 = vmul.u32 2146121005, %v1350_v43  ;;  %v1441_v43 = vshrl.u32 %v1439_v33, 16 }
 0x7d9   :  { %v1246_v32 = vor.u32 1.1754944e-38, %v1245_v15  ;;  %vm1244_vm7 = vcmp.eq.f32.partialorder %v1243_v19, 8.507059e+37 }
 0x7da   :  { %v1352_v45 = vshrl.u32 %v1351_v44, 15 }
 0x7dc   :  { %v2360_v0 = vpop.eup %2359  ;;  %v1353_v50 = vxor.u32 %v1352_v45, %v1351_v44  ;;  %v1442_v44 = vshrl.u32 %v1440_v42, 16  ;;  %v1443_v45 = vxor.u32 %v1441_v43, %v1439_v33 }
 0x7dd   :  { %v2362_v53 = vpop.eup %2361  ;;  %v1220_v2 = vmul.f32 %v2360_v0, %v1217_v58  ;;  %vm1225_vm0 = vweird.f32 %v2360_v0 }
 0x7de   :  { %v1235_v6 = vmul.f32 %v2362_v53, %v1218_v60  ;;  %vm1240_vm1 = vweird.f32 %v2362_v53  ;;  %vm1226_vm3 = vmor %vm1224_vm2, %vm1225_vm0  ;;  %v1354_v52 = vmul.u32 2221713035, %v1353_v50  ;;  %v1444_v50 = vxor.u32 %v1442_v44, %v1440_v42 }
 0x7df   :  { %v1221_v7 = vsub.f32 1.0, %v1220_v2  ;;  %vm1241_vm6 = vmor %vm1239_vm4, %vm1240_vm1 }
 0x7e0   :  { %v1236_v9 = vsub.f32 1.0, %v1235_v6  ;;  %v1355_v56 = vshrl.u32 %v1354_v52, 16 }
 0x7e1   :  { %v1222_v13 = vmul.f32 %v2360_v0, %v1221_v7 }
 0x7e2   :  { %v1237_v18 = vmul.f32 %v2362_v53, %v1236_v9  ;;  %v1356_v57 = vxor.u32 %v1355_v56, %v1354_v52  ;;  %v1445_v52 = vmul.u32 2146121005, %v1443_v45  ;;  %v1446_v56 = vmul.u32 2146121005, %v1444_v50 }
 0x7e3   :  { %v1223_v20 = vadd.f32 %v2360_v0, %v1222_v13 }
 0x7e4   :  { %v1238_v27 = vadd.f32 %v2362_v53, %v1237_v18  ;;  %v1357_v58 = vshrl.u32 %v1356_v57, 16 }
 0x7e5   :  { %v1227_v31 = vsel %vm1226_vm3, %v2360_v0, %v1223_v20 }
 0x7e6   :  { %v1232_v36 = vsel %vm1229_vm5, %v1231_v26, %v1227_v31  ;;  %v1242_v37 = vsel %vm1241_vm6, %v2362_v53, %v1238_v27  ;;  %v1358_v59 = vxor.u32 %v1357_v58, %v1356_v57  ;;  %v1447_v57 = vshrl.u32 %v1445_v52, 15 }
 0x7e7   :  { %vm1292_vm8 = vcmp.lt.f32.partialorder %v1290_v21, %v1232_v36  ;;  %v1247_v38 = vsel %vm1244_vm7, %v1246_v32, %v1242_v37  ;;  %v1448_v58 = vshrl.u32 %v1446_v56, 15 }
 0x7e8   :  { %vm2210_vm9 = vmpackc.low %vm1292_vm8, %vm1292_vm8  ;;  %vm1293_vm10 = vcmp.lt.f32.partialorder %v1291_v30, %v1247_v38  ;;  %v1359_v60 = vmul.u32 2146121005, %v1358_v59  ;;  %v1449_v59 = vxor.u32 %v1447_v57, %v1445_v52 }
 0x7e9   :  { %2211 = vmatmul.msk.bf16.vlgmr.msra.gmra.mxu0 %vm2210_vm9, %v2520_v48  ;;  %vm2212_vm11 = vmpackc.low %vm1293_vm10, %vm1293_vm10 }
 0x7ea   :  { %2213 = vmatmul.msk.bf16.vlgmr.msra.gmra.mxu1 %vm2212_vm11, %v2520_v48  ;;  %1674 = vmatpush.bf16.xpose.msra.mxu0 %v2557_v3  ;;  %v1360_v1 = vshrl.u32 %v1359_v60, 15 }
 0x7eb   :  { %1687 = vmatpush.bf16.xpose.msra.mxu1 %v2559_v5 }
 0x7ec   :  { %v1361_v6 = vxor.u32 %v1360_v1, %v1359_v60  ;;  %v1450_v60 = vxor.u32 %v1448_v58, %v1446_v56 }
 0x7ee   :  { %v1362_v9 = vmul.u32 2221713035, %v1361_v6 }
 0x7f0   :  { %v1363_v4 = vshrl.u32 %v1362_v9, 16 }
 0x7f2   :  { %1675 = vmatpush.bf16.xpose.msra.mxu0 %v2565_v10  ;;  %v1364_v14 = vxor.u32 %v1363_v4, %v1362_v9 }
 0x7f3   :  { %1688 = vmatpush.bf16.xpose.msra.mxu1 %v2567_v11 }
 0x7f4   :  { %v1365_v15 = vshrl.u32 %v1364_v14, 8 }
 0x7f6   :  { %v1366_v21 = vcvt.s32.f32 %v1365_v15 }
 0x7f8   :  { %v1367_v32 = vmul.f32 5.9604645e-08, %v1366_v21 }
 0x7fa   :  { %1676 = vmatpush.bf16.xpose.msra.mxu0 %v2571_v16 }
 0x7fb   :  { %1689 = vmatpush.bf16.xpose.msra.mxu1 %v2573_v17 }
 0x802   :  { %1677 = vmatpush.bf16.xpose.msra.mxu0 %v2579_v22 }
 0x803   :  { %1690 = vmatpush.bf16.xpose.msra.mxu1 %v2581_v23 }
 0x80a   :  { %1678 = vmatpush.bf16.xpose.msra.mxu0 %v2585_v28 }
 0x80b   :  { %1691 = vmatpush.bf16.xpose.msra.mxu1 %v2587_v29 }
 0x812   :  { %1679 = vmatpush.bf16.xpose.msra.mxu0 %v2593_v34 }
 0x813   :  { %1692 = vmatpush.bf16.xpose.msra.mxu1 %v2595_v35 }
 0x81a   :  { %1680 = vmatpush.bf16.xpose.msra.mxu0 %v2599_v40 }
 0x81b   :  { %1693 = vmatpush.bf16.xpose.msra.mxu1 %v2601_v41 }
 0x822   :  { %1681 = vmatpush.bf16.xpose.msra.mxu0 %v2607_v46 }
 0x823   :  { %1694 = vmatpush.bf16.xpose.msra.mxu1 %v2609_v47 }
 0x866   :  { %v1309_v61 = vpop.f32.mrf.mxu0 }
 0x867   :  { %v1310_v63 = vadd.f32 %v2959_v62, %v1309_v61  ;;  %v1322_v0 = vpop.f32.mrf.mxu1  ;;  %v1451_v61 = vmul.u32 2221713035, %v1449_v59 }
 0x869   :  { %v1323_v53 = vadd.f32 %v1322_v0, %v1310_v63  ;;  %v1452_v63 = vmul.u32 2221713035, %v1450_v60  ;;  %v1453_v0 = vshrl.u32 %v1451_v61, 16 }
 0x86b   :  { %v2214_v2 = vmul.f32 -1.442695, %v1323_v53  ;;  %v1454_v1 = vshrl.u32 %v1452_v63, 16  ;;  %v1455_v53 = vxor.u32 %v1453_v0, %v1451_v61 }
 0x86d   :  { %2363 = vpow2.f32 %v2214_v2  ;;  %v1456_v2 = vxor.u32 %v1454_v1, %v1452_v63  ;;  %v1457_v6 = vshrl.u32 %v1455_v53, 16 }
 0x86e   :  { %v1311_v7 = vpop.f32.mrf.mxu0 }
 0x86f   :  { %v1324_v8 = vpop.f32.mrf.mxu1  ;;  %v1458_v7 = vshrl.u32 %v1456_v2, 16 }
 0x870   :  { %v1459_v8 = vxor.u32 %v1457_v6, %v1455_v53 }
 0x871   :  { %v1460_v9 = vxor.u32 %v1458_v7, %v1456_v2 }
 0x873   :  { %v2364_v12 = vpop.eup %2363  ;;  %v1462_v4 = vmul.u32 2146121005, %v1460_v9 }
 0x874   :  { %v1329_v13 = vadd.f32 1.0, %v2364_v12  ;;  %v1461_v12 = vmul.u32 2146121005, %v1459_v8 }
 0x876   :  { %2365 = vrcp.f32 %v1329_v13  ;;  %v1341_v26 = vand.u32 2147483648, %v1329_v13  ;;  %v1339_v30 = vand.u32 2147483647, %v1329_v13  ;;  %vm1335_vm13 = vweird.f32 %v1329_v13 }
 0x878   :  { %v1342_v36 = vor.u32 1.1754944e-38, %v1341_v26  ;;  %vm1340_vm15 = vcmp.eq.f32.partialorder %v1339_v30, 8.507059e+37 }
 0x87c   :  { %v2366_v18 = vpop.eup %2365 }
 0x87d   :  { %v1331_v19 = vmul.f32 %v2366_v18, %v1329_v13  ;;  %vm1336_vm12 = vweird.f32 %v2366_v18  ;;  %v1463_v13 = vshrl.u32 %v1461_v12, 15 }
 0x87e   :  { %vm1337_vm14 = vmor %vm1335_vm13, %vm1336_vm12 }
 0x87f   :  { %v1332_v20 = vsub.f32 1.0, %v1331_v19 }
 0x881   :  { %v1333_v27 = vmul.f32 %v2366_v18, %v1332_v20 }
 0x883   :  { %v1334_v31 = vadd.f32 %v2366_v18, %v1333_v27  ;;  %v1465_v27 = vxor.u32 %v1463_v13, %v1461_v12 }
 0x885   :  { %v1338_v37 = vsel %vm1337_vm14, %v2366_v18, %v1334_v31  ;;  %v1464_v18 = vshrl.u32 %v1462_v4, 15  ;;  %v1467_v31 = vmul.u32 2221713035, %v1465_v27  ;;  %v1534_v27 = vadd.s32 28672, %v2674_v55 }
 0x886   :  { %v1343_v38 = vsel %vm1340_vm15, %v1342_v36, %v1338_v37 }
 0x887   :  { %vm1368_vm0 = vcmp.lt.f32.partialorder %v1367_v32, %v1343_v38  ;;  %v1466_v30 = vxor.u32 %v1464_v18, %v1462_v4  ;;  %v1469_v39 = vshrl.u32 %v1467_v31, 16 }
 0x888   :  { %vm2216_vm1 = vmpackc.low %vm1368_vm0, %vm1368_vm0 }
 0x889   :  { %2217 = vmatmul.msk.bf16.vlgmr.msra.gmra.mxu2 %vm2216_vm1, %v2520_v48  ;;  %2219 = vmatmul.msk.bf16.vlgmr.msra.gmra.mxu3 %vm2216_vm1, %v2520_v48  ;;  %v1468_v37 = vmul.u32 2221713035, %v1466_v30  ;;  %v1471_v45 = vxor.u32 %v1469_v39, %v1467_v31  ;;  %v1535_v30 = vadd.s32 %v1534_v27, %v2671_v54 }
 0x88a   :  { %1746 = vmatpush.bf16.msra.mxu2 %v2557_v3  ;;  %1759 = vmatpush.bf16.msra.mxu3 %v2559_v5 }
 0x88b   :  { %v1470_v43 = vshrl.u32 %v1468_v37, 16  ;;  %v1473_v52 = vshrl.u32 %v1471_v45, 8  ;;  %v1536_v31 = vshrl.u32 %v1535_v30, 16 }
 0x88d   :  { %v1472_v50 = vxor.u32 %v1470_v43, %v1468_v37  ;;  %v1475_v63 = vcvt.s32.f32 %v1473_v52 }
 0x88e   :  { %1747 = vmatpush.bf16.msra.mxu2 %v2565_v10  ;;  %1760 = vmatpush.bf16.msra.mxu3 %v2567_v11 }
 0x88f   :  { %v1474_v57 = vshrl.u32 %v1472_v50, 8  ;;  %v1477_v4 = vmul.f32 5.9604645e-08, %v1475_v63 }
 0x891   :  { %v1476_v53 = vcvt.s32.f32 %v1474_v57 }
 0x892   :  { %1748 = vmatpush.bf16.msra.mxu2 %v2571_v16  ;;  %1761 = vmatpush.bf16.msra.mxu3 %v2573_v17 }
 0x896   :  { %1749 = vmatpush.bf16.msra.mxu2 %v2579_v22  ;;  %1762 = vmatpush.bf16.msra.mxu3 %v2581_v23 }
 0x89a   :  { %1750 = vmatpush.bf16.msra.mxu2 %v2585_v28  ;;  %1763 = vmatpush.bf16.msra.mxu3 %v2587_v29 }
 0x89e   :  { %1751 = vmatpush.bf16.msra.mxu2 %v2593_v34  ;;  %1764 = vmatpush.bf16.msra.mxu3 %v2595_v35 }
 0x8a2   :  { %1752 = vmatpush.bf16.msra.mxu2 %v2599_v40  ;;  %1765 = vmatpush.bf16.msra.mxu3 %v2601_v41 }
 0x8a6   :  { %1753 = vmatpush.bf16.msra.mxu2 %v2607_v46  ;;  %1766 = vmatpush.bf16.msra.mxu3 %v2609_v47 }
 0x90c   :  { %v1381_v14 = vpop.f32.mrf.mxu2  ;;  %v1394_v15 = vpop.f32.mrf.mxu3 }
 0x90d   :  { %v1382_v19 = vadd.f32 %v1381_v14, %v2711_v24  ;;  %v1395_v20 = vadd.f32 %v1394_v15, %v2713_v25  ;;  %v1478_v15 = vmul.f32 5.9604645e-08, %v1476_v53 }
 0x90f   :  { %v2220_v21 = vmul.f32 -1.442695, %v1382_v19  ;;  %v2221_v26 = vmul.f32 -1.442695, %v1395_v20 }
 0x911   :  { %2367 = vpow2.f32 %v2220_v21 }
 0x912   :  { %2369 = vpow2.f32 %v2221_v26 }
 0x914   :  { %v1383_v32 = vpop.f32.mrf.mxu2  ;;  %v1396_v36 = vpop.f32.mrf.mxu3 }
 0x915   :  { %v1537_v32 = vxor.u32 %v1536_v31, %v1535_v30 }
 0x917   :  { %v2368_v38 = vpop.eup %2367  ;;  %v1538_v36 = vmul.u32 2146121005, %v1537_v32 }
 0x918   :  { %v2370_v33 = vpop.eup %2369  ;;  %v1404_v42 = vadd.f32 1.0, %v2368_v38 }
 0x919   :  { %v1405_v44 = vadd.f32 1.0, %v2370_v33  ;;  %v1539_v37 = vshrl.u32 %v1538_v36, 15 }
 0x91a   :  { %2371 = vrcp.f32 %v1404_v42  ;;  %v1417_v1 = vand.u32 2147483648, %v1404_v42  ;;  %v1415_v6 = vand.u32 2147483647, %v1404_v42  ;;  %vm1411_vm4 = vweird.f32 %v1404_v42 }
 0x91b   :  { %2373 = vrcp.f32 %v1405_v44  ;;  %v1432_v7 = vand.u32 2147483648, %v1405_v44  ;;  %v1430_v9 = vand.u32 2147483647, %v1405_v44  ;;  %vm1426_vm6 = vweird.f32 %v1405_v44 }
 0x91c   :  { %v1418_v13 = vor.u32 1.1754944e-38, %v1417_v1  ;;  %vm1416_vm7 = vcmp.eq.f32.partialorder %v1415_v6, 8.507059e+37  ;;  %v1540_v38 = vxor.u32 %v1539_v37, %v1538_v36 }
 0x91d   :  { %v1433_v19 = vor.u32 1.1754944e-38, %v1432_v7  ;;  %vm1431_vm9 = vcmp.eq.f32.partialorder %v1430_v9, 8.507059e+37 }
 0x91e   :  { %v1541_v39 = vmul.u32 2221713035, %v1540_v38 }
 0x920   :  { %v2372_v56 = vpop.eup %2371  ;;  %v1542_v33 = vshrl.u32 %v1541_v39, 16 }
 0x921   :  { %v2374_v58 = vpop.eup %2373  ;;  %v1407_v59 = vmul.f32 %v2372_v56, %v1404_v42  ;;  %vm1412_vm2 = vweird.f32 %v2372_v56 }
 0x922   :  { %v1422_v60 = vmul.f32 %v2374_v58, %v1405_v44  ;;  %vm1427_vm3 = vweird.f32 %v2374_v58  ;;  %vm1413_vm5 = vmor %vm1411_vm4, %vm1412_vm2  ;;  %v1543_v42 = vxor.u32 %v1542_v33, %v1541_v39 }
 0x923   :  { %v1408_v61 = vsub.f32 1.0, %v1407_v59  ;;  %vm1428_vm8 = vmor %vm1426_vm6, %vm1427_vm3 }
 0x924   :  { %v1423_v0 = vsub.f32 1.0, %v1422_v60  ;;  %v1544_v43 = vshrl.u32 %v1543_v42, 16 }
 0x925   :  { %v1409_v2 = vmul.f32 %v2372_v56, %v1408_v61 }
 0x926   :  { %v1424_v8 = vmul.f32 %v2374_v58, %v1423_v0  ;;  %v1545_v44 = vxor.u32 %v1544_v43, %v1543_v42 }
 0x927   :  { %v1410_v12 = vadd.f32 %v2372_v56, %v1409_v2 }
 0x928   :  { %v1425_v14 = vadd.f32 %v2374_v58, %v1424_v8  ;;  %v1546_v45 = vmul.u32 2146121005, %v1545_v44 }
 0x929   :  { %v1414_v18 = vsel %vm1413_vm5, %v2372_v56, %v1410_v12 }
 0x92a   :  { %v1419_v20 = vsel %vm1416_vm7, %v1418_v13, %v1414_v18  ;;  %v1429_v21 = vsel %vm1428_vm8, %v2374_v58, %v1425_v14  ;;  %v1547_v57 = vshrl.u32 %v1546_v45, 15 }
 0x92b   :  { %vm1479_vm10 = vcmp.lt.f32.partialorder %v1477_v4, %v1419_v20  ;;  %v1434_v26 = vsel %vm1431_vm9, %v1433_v19, %v1429_v21 }
 0x92c   :  { %vm2224_vm11 = vmpackc.low %vm1479_vm10, %vm1479_vm10  ;;  %vm1480_vm12 = vcmp.lt.f32.partialorder %v1478_v15, %v1434_v26  ;;  %v1548_v60 = vxor.u32 %v1547_v57, %v1546_v45 }
 0x92d   :  { %2225 = vmatmul.msk.bf16.vlgmr.msrb.gmra.mxu2 %vm2224_vm11, %v2520_v48  ;;  %vm2226_vm13 = vmpackc.low %vm1480_vm12, %vm1480_vm12 }
 0x92e   :  { %2227 = vmatmul.msk.bf16.vlgmr.msrb.gmra.mxu3 %vm2226_vm13, %v2520_v48  ;;  %1861 = vmatpush.bf16.xpose.msrb.mxu2 %v2557_v3  ;;  %v1549_v0 = vmul.u32 2221713035, %v1548_v60 }
 0x92f   :  { %1874 = vmatpush.bf16.xpose.msrb.mxu3 %v2559_v5 }
 0x930   :  { %v1550_v53 = vshrl.u32 %v1549_v0, 16 }
 0x932   :  { %v1551_v6 = vxor.u32 %v1550_v53, %v1549_v0 }
 0x934   :  { %v1552_v7 = vshrl.u32 %v1551_v6, 8 }
 0x936   :  { %1862 = vmatpush.bf16.xpose.msrb.mxu2 %v2565_v10  ;;  %v1553_v4 = vcvt.s32.f32 %v1552_v7 }
 0x937   :  { %1875 = vmatpush.bf16.xpose.msrb.mxu3 %v2567_v11 }
 0x938   :  { %v1554_v19 = vmul.f32 5.9604645e-08, %v1553_v4 }
 0x93e   :  { %1863 = vmatpush.bf16.xpose.msrb.mxu2 %v2571_v16 }
 0x93f   :  { %1876 = vmatpush.bf16.xpose.msrb.mxu3 %v2573_v17 }
 0x946   :  { %1864 = vmatpush.bf16.xpose.msrb.mxu2 %v2579_v22 }
 0x947   :  { %1877 = vmatpush.bf16.xpose.msrb.mxu3 %v2581_v23 }
 0x94e   :  { %1865 = vmatpush.bf16.xpose.msrb.mxu2 %v2585_v28 }
 0x94f   :  { %1878 = vmatpush.bf16.xpose.msrb.mxu3 %v2587_v29 }
 0x956   :  { %1866 = vmatpush.bf16.xpose.msrb.mxu2 %v2593_v34 }
 0x957   :  { %1879 = vmatpush.bf16.xpose.msrb.mxu3 %v2595_v35 }
 0x95e   :  { %1867 = vmatpush.bf16.xpose.msrb.mxu2 %v2599_v40 }
 0x95f   :  { %1880 = vmatpush.bf16.xpose.msrb.mxu3 %v2601_v41 }
 0x966   :  { %1868 = vmatpush.bf16.xpose.msrb.mxu2 %v2607_v46 }
 0x967   :  { %1881 = vmatpush.bf16.xpose.msrb.mxu3 %v2609_v47 }
 0x9b0   :  { %v1496_v50 = vpop.f32.mrf.mxu2 }
 0x9b1   :  { %v1497_v52 = vadd.f32 %v2959_v62, %v1496_v50  ;;  %v1509_v56 = vpop.f32.mrf.mxu3 }
 0x9b3   :  { %v1510_v58 = vadd.f32 %v1509_v56, %v1497_v52 }
 0x9b5   :  { %v2228_v59 = vmul.f32 -1.442695, %v1510_v58 }
 0x9b7   :  { %2375 = vpow2.f32 %v2228_v59 }
 0x9b8   :  { %v1498_v61 = vpop.f32.mrf.mxu2 }
 0x9b9   :  { %v1511_v63 = vpop.f32.mrf.mxu3 }
 0x9bd   :  { %v2376_v1 = vpop.eup %2375 }
 0x9be   :  { %v1516_v2 = vadd.f32 1.0, %v2376_v1 }
 0x9c0   :  { %2377 = vrcp.f32 %v1516_v2  ;;  %v1528_v13 = vand.u32 2147483648, %v1516_v2  ;;  %v1526_v15 = vand.u32 2147483647, %v1516_v2  ;;  %vm1522_vm15 = vweird.f32 %v1516_v2 }
 0x9c2   :  { %v1529_v20 = vor.u32 1.1754944e-38, %v1528_v13  ;;  %vm1527_vm1 = vcmp.eq.f32.partialorder %v1526_v15, 8.507059e+37 }
 0x9c6   :  { %v2378_v8 = vpop.eup %2377 }
 0x9c7   :  { %v1518_v9 = vmul.f32 %v2378_v8, %v1516_v2  ;;  %vm1523_vm14 = vweird.f32 %v2378_v8 }
 0x9c8   :  { %vm1524_vm0 = vmor %vm1522_vm15, %vm1523_vm14 }
 0x9c9   :  { %v1519_v12 = vsub.f32 1.0, %v1518_v9 }
 0x9cb   :  { %v1520_v14 = vmul.f32 %v2378_v8, %v1519_v12 }
 0x9cd   :  { %v1521_v18 = vadd.f32 %v2378_v8, %v1520_v14 }
 0x9cf   :  { %v1525_v21 = vsel %vm1524_vm0, %v2378_v8, %v1521_v18 }
 0x9d0   :  { %v1530_v26 = vsel %vm1527_vm1, %v1529_v20, %v1525_v21 }
 0x9d1   :  { %vm1555_vm2 = vcmp.lt.f32.partialorder %v1554_v19, %v1530_v26 }
 0x9d2   :  { %vm2230_vm3 = vmpackc.low %vm1555_vm2, %vm1555_vm2 }
 0x9d3   :  { %2231 = vmatmul.msk.bf16.vlgmr.msrb.gmra.mxu0 %vm2230_vm3, %v2520_v48  ;;  %2233 = vmatmul.msk.bf16.vlgmr.msrb.gmra.mxu1 %vm2230_vm3, %v2520_v48 }
 0x9d4   :  { %1933 = vmatpush.bf16.msrb.mxu0 %v2557_v3  ;;  %1946 = vmatpush.bf16.msrb.mxu1 %v2559_v5  ;;  %v1625_v3 = vadd.s32 30720, %v2700_v49 }
 0x9d6   :  { %v1626_v5 = vadd.s32 %v1625_v3, %v2671_v54 }
 0x9d8   :  { %1934 = vmatpush.bf16.msrb.mxu0 %v2565_v10  ;;  %1947 = vmatpush.bf16.msrb.mxu1 %v2567_v11  ;;  %v1627_v10 = vadd.s32 %v1625_v3, %v2704_v51  ;;  %v1628_v11 = vshrl.u32 %v1626_v5, 16 }
 0x9dc   :  { %1935 = vmatpush.bf16.msrb.mxu0 %v2571_v16  ;;  %1948 = vmatpush.bf16.msrb.mxu1 %v2573_v17  ;;  %v1629_v16 = vshrl.u32 %v1627_v10, 16  ;;  %v1630_v17 = vxor.u32 %v1628_v11, %v1626_v5 }
 0x9e0   :  { %1936 = vmatpush.bf16.msrb.mxu0 %v2579_v22  ;;  %1949 = vmatpush.bf16.msrb.mxu1 %v2581_v23  ;;  %v1631_v22 = vxor.u32 %v1629_v16, %v1627_v10  ;;  %v1632_v23 = vmul.u32 2146121005, %v1630_v17 }
 0x9e4   :  { %1937 = vmatpush.bf16.msrb.mxu0 %v2585_v28  ;;  %1950 = vmatpush.bf16.msrb.mxu1 %v2587_v29  ;;  %v1633_v28 = vmul.u32 2146121005, %v1631_v22  ;;  %v1634_v29 = vshrl.u32 %v1632_v23, 15 }
 0x9e8   :  { %1938 = vmatpush.bf16.msrb.mxu0 %v2593_v34  ;;  %1951 = vmatpush.bf16.msrb.mxu1 %v2595_v35  ;;  %v1635_v34 = vshrl.u32 %v1633_v28, 15  ;;  %v1636_v35 = vxor.u32 %v1634_v29, %v1632_v23 }
 0x9ec   :  { %1939 = vmatpush.bf16.msrb.mxu0 %v2599_v40  ;;  %1952 = vmatpush.bf16.msrb.mxu1 %v2601_v41  ;;  %v1637_v40 = vxor.u32 %v1635_v34, %v1633_v28  ;;  %v1638_v41 = vmul.u32 2221713035, %v1636_v35 }
 0x9ee   :  { %v1640_v27 = vshrl.u32 %v1638_v41, 16 }
 0x9f0   :  { %1940 = vmatpush.bf16.msrb.mxu0 %v2607_v46  ;;  %1953 = vmatpush.bf16.msrb.mxu1 %v2609_v47  ;;  %v1639_v46 = vmul.u32 2221713035, %v1637_v40  ;;  %v1642_v30 = vxor.u32 %v1640_v27, %v1638_v41 }
 0x9f2   :  { %v1641_v47 = vshrl.u32 %v1639_v46, 16  ;;  %v1644_v32 = vshrl.u32 %v1642_v30, 16 }
 0x9f4   :  { %v1643_v31 = vxor.u32 %v1641_v47, %v1639_v46  ;;  %v1646_v37 = vxor.u32 %v1644_v32, %v1642_v30  ;;  %v1721_v30 = vadd.s32 32768, %v2674_v55 }
 0x9f6   :  { %v1645_v36 = vshrl.u32 %v1643_v31, 16  ;;  %v1648_v39 = vmul.u32 2146121005, %v1646_v37 }
 0x9f8   :  { %v1647_v38 = vxor.u32 %v1645_v36, %v1643_v31  ;;  %v1650_v42 = vshrl.u32 %v1648_v39, 15  ;;  %v1722_v31 = vadd.s32 %v1721_v30, %v2671_v54 }
 0x9fa   :  { %v1649_v33 = vmul.u32 2146121005, %v1647_v38  ;;  %v1652_v58 = vxor.u32 %v1650_v42, %v1648_v39  ;;  %v1723_v32 = vshrl.u32 %v1722_v31, 16 }
 0x9fc   :  { %v1651_v45 = vshrl.u32 %v1649_v33, 15  ;;  %v1654_v60 = vmul.u32 2221713035, %v1652_v58  ;;  %v1724_v36 = vxor.u32 %v1723_v32, %v1722_v31 }
 0x9fe   :  { %v1653_v59 = vxor.u32 %v1651_v45, %v1649_v33  ;;  %v1656_v53 = vshrl.u32 %v1654_v60, 16  ;;  %v1725_v37 = vmul.u32 2146121005, %v1724_v36 }
 0xa00   :  { %v1655_v0 = vmul.u32 2221713035, %v1653_v59  ;;  %v1658_v9 = vxor.u32 %v1656_v53, %v1654_v60  ;;  %v1726_v38 = vshrl.u32 %v1725_v37, 15 }
 0xa02   :  { %v1657_v7 = vshrl.u32 %v1655_v0, 16  ;;  %v1660_v4 = vshrl.u32 %v1658_v9, 8  ;;  %v1727_v39 = vxor.u32 %v1726_v38, %v1725_v37 }
 0xa04   :  { %v1659_v12 = vxor.u32 %v1657_v7, %v1655_v0  ;;  %v1662_v21 = vcvt.s32.f32 %v1660_v4  ;;  %v1728_v33 = vmul.u32 2221713035, %v1727_v39 }
 0xa06   :  { %v1661_v14 = vshrl.u32 %v1659_v12, 8  ;;  %v1664_v28 = vmul.f32 5.9604645e-08, %v1662_v21  ;;  %v1729_v42 = vshrl.u32 %v1728_v33, 16 }
 0xa08   :  { %v1663_v5 = vcvt.s32.f32 %v1661_v14 }
 0xa0a   :  { %v1665_v35 = vmul.f32 5.9604645e-08, %v1663_v5  ;;  %v1812_v5 = vadd.s32 34816, %v2700_v49 }
 0xa50   :  { %v1568_v43 = vpop.f32.mrf.mxu0  ;;  %v1581_v44 = vpop.f32.mrf.mxu1 }
 0xa51   :  { %v1569_v50 = vadd.f32 %v1568_v43, %v2711_v24  ;;  %v1582_v52 = vadd.f32 %v1581_v44, %v2713_v25  ;;  %v1730_v43 = vxor.u32 %v1729_v42, %v1728_v33 }
 0xa53   :  { %v2234_v56 = vmul.f32 -1.442695, %v1569_v50  ;;  %v2235_v57 = vmul.f32 -1.442695, %v1582_v52  ;;  %v1731_v44 = vshrl.u32 %v1730_v43, 16 }
 0xa55   :  { %2379 = vpow2.f32 %v2234_v56  ;;  %v1732_v45 = vxor.u32 %v1731_v44, %v1730_v43 }
 0xa56   :  { %2381 = vpow2.f32 %v2235_v57 }
 0xa57   :  { %v1733_v50 = vmul.u32 2146121005, %v1732_v45 }
 0xa58   :  { %v1570_v61 = vpop.f32.mrf.mxu0  ;;  %v1583_v63 = vpop.f32.mrf.mxu1 }
 0xa59   :  { %v1734_v58 = vshrl.u32 %v1733_v50, 15 }
 0xa5b   :  { %v2380_v1 = vpop.eup %2379  ;;  %v1735_v61 = vxor.u32 %v1734_v58, %v1733_v50 }
 0xa5c   :  { %v2382_v2 = vpop.eup %2381  ;;  %v1591_v6 = vadd.f32 1.0, %v2380_v1 }
 0xa5d   :  { %v1592_v8 = vadd.f32 1.0, %v2382_v2  ;;  %v1736_v1 = vmul.u32 2221713035, %v1735_v61 }
 0xa5e   :  { %2383 = vrcp.f32 %v1591_v6  ;;  %v1604_v3 = vand.u32 2147483648, %v1591_v6  ;;  %v1602_v11 = vand.u32 2147483647, %v1591_v6  ;;  %vm1598_vm6 = vweird.f32 %v1591_v6 }
 0xa5f   :  { %2385 = vrcp.f32 %v1592_v8  ;;  %v1619_v16 = vand.u32 2147483648, %v1592_v8  ;;  %v1617_v22 = vand.u32 2147483647, %v1592_v8  ;;  %vm1613_vm8 = vweird.f32 %v1592_v8 }
 0xa60   :  { %v1605_v29 = vor.u32 1.1754944e-38, %v1604_v3  ;;  %vm1603_vm9 = vcmp.eq.f32.partialorder %v1602_v11, 8.507059e+37  ;;  %v1737_v2 = vshrl.u32 %v1736_v1, 16  ;;  %v1814_v11 = vadd.s32 %v1812_v5, %v2704_v51 }
 0xa61   :  { %v1620_v41 = vor.u32 1.1754944e-38, %v1619_v16  ;;  %vm1618_vm11 = vcmp.eq.f32.partialorder %v1617_v22, 8.507059e+37 }
 0xa62   :  { %v1738_v7 = vxor.u32 %v1737_v2, %v1736_v1 }
 0xa64   :  { %v2384_v13 = vpop.eup %2383 }
 0xa65   :  { %v2386_v15 = vpop.eup %2385  ;;  %v1594_v18 = vmul.f32 %v2384_v13, %v1591_v6  ;;  %vm1599_vm4 = vweird.f32 %v2384_v13 }
 0xa66   :  { %v1609_v19 = vmul.f32 %v2386_v15, %v1592_v8  ;;  %vm1614_vm5 = vweird.f32 %v2386_v15  ;;  %vm1600_vm7 = vmor %vm1598_vm6, %vm1599_vm4  ;;  %v1739_v8 = vshrl.u32 %v1738_v7, 8 }
 0xa67   :  { %v1595_v20 = vsub.f32 1.0, %v1594_v18  ;;  %vm1615_vm10 = vmor %vm1613_vm8, %vm1614_vm5 }
 0xa68   :  { %v1610_v26 = vsub.f32 1.0, %v1609_v19 }
 0xa69   :  { %v1596_v10 = vmul.f32 %v2384_v13, %v1595_v20 }
 0xa6a   :  { %v1611_v17 = vmul.f32 %v2386_v15, %v1610_v26 }
 0xa6b   :  { %v1597_v23 = vadd.f32 %v2384_v13, %v1596_v10  ;;  %v1813_v10 = vadd.s32 %v1812_v5, %v2671_v54 }
 0xa6c   :  { %v1612_v34 = vadd.f32 %v2386_v15, %v1611_v17  ;;  %v1816_v17 = vshrl.u32 %v1814_v11, 16 }
 0xa6d   :  { %v1601_v40 = vsel %vm1600_vm7, %v2384_v13, %v1597_v23  ;;  %v1740_v13 = vcvt.s32.f32 %v1739_v8  ;;  %v1815_v16 = vshrl.u32 %v1813_v10, 16 }
 0xa6e   :  { %v1606_v46 = vsel %vm1603_vm9, %v1605_v29, %v1601_v40  ;;  %v1616_v27 = vsel %vm1615_vm10, %v2386_v15, %v1612_v34  ;;  %v1818_v23 = vxor.u32 %v1816_v17, %v1814_v11 }
 0xa6f   :  { %vm1666_vm12 = vcmp.lt.f32.partialorder %v1664_v28, %v1606_v46  ;;  %v1621_v47 = vsel %vm1618_vm11, %v1620_v41, %v1616_v27  ;;  %v1741_v20 = vmul.f32 5.9604645e-08, %v1740_v13  ;;  %v1817_v22 = vxor.u32 %v1815_v16, %v1813_v10 }
 0xa70   :  { %vm2238_vm13 = vmpackc.low %vm1666_vm12, %vm1666_vm12  ;;  %vm1667_vm14 = vcmp.lt.f32.partialorder %v1665_v35, %v1621_v47  ;;  %v1820_v29 = vmul.u32 2146121005, %v1818_v23 }
 0xa71   :  { %2239 = vmatmul.msk.bf16.vlgmr.msra.gmra.mxu0 %vm2238_vm13, %v2520_v48  ;;  %vm2240_vm15 = vmpackc.low %vm1667_vm14, %vm1667_vm14  ;;  %v1819_v28 = vmul.u32 2146121005, %v1817_v22 }
 0xa72   :  { %2241 = vmatmul.msk.bf16.vlgmr.msra.gmra.mxu1 %vm2240_vm15, %v2520_v48  ;;  %v1822_v35 = vshrl.u32 %v1820_v29, 15 }
 0xa73   :  { %v1821_v34 = vshrl.u32 %v1819_v28, 15 }
 0xa74   :  { %v1824_v41 = vxor.u32 %v1822_v35, %v1820_v29 }
 0xa75   :  { %v1823_v40 = vxor.u32 %v1821_v34, %v1819_v28 }
 0xa76   :  { %v1826_v27 = vmul.u32 2221713035, %v1824_v41 }
 0xa77   :  { %v1825_v46 = vmul.u32 2221713035, %v1823_v40 }
 0xa78   :  { %v1828_v30 = vshrl.u32 %v1826_v27, 16 }
 0xa79   :  { %v1827_v47 = vshrl.u32 %v1825_v46, 16 }
 0xa7a   :  { %v1830_v32 = vxor.u32 %v1828_v30, %v1826_v27 }
 0xa7b   :  { %v1829_v31 = vxor.u32 %v1827_v47, %v1825_v46 }
 0xa7c   :  { %v1832_v37 = vshrl.u32 %v1830_v32, 16 }
 0xa7d   :  { %v1831_v36 = vshrl.u32 %v1829_v31, 16 }
 0xa7e   :  { %v1834_v39 = vxor.u32 %v1832_v37, %v1830_v32 }
 0xa7f   :  { %v1833_v38 = vxor.u32 %v1831_v36, %v1829_v31  ;;  %v1908_v31 = vadd.s32 36864, %v2674_v55 }
 0xa80   :  { %v1836_v42 = vmul.u32 2146121005, %v1834_v39 }
 0xa81   :  { %v1835_v33 = vmul.u32 2146121005, %v1833_v38  ;;  %v1909_v32 = vadd.s32 %v1908_v31, %v2671_v54 }
 0xa82   :  { %v1838_v50 = vshrl.u32 %v1836_v42, 15 }
 0xa83   :  { %v1837_v43 = vshrl.u32 %v1835_v33, 15  ;;  %v1910_v36 = vshrl.u32 %v1909_v32, 16 }
 0xa85   :  { %v1911_v37 = vxor.u32 %v1910_v36, %v1909_v32 }
 0xa87   :  { %v1912_v38 = vmul.u32 2146121005, %v1911_v37 }
 0xa89   :  { %v1913_v39 = vshrl.u32 %v1912_v38, 15 }
 0xaee   :  { %v1683_v52 = vpop.f32.mrf.mxu0 }
 0xaef   :  { %v1684_v56 = vadd.f32 %v2959_v62, %v1683_v52  ;;  %v1696_v57 = vpop.f32.mrf.mxu1 }
 0xaf1   :  { %v1697_v59 = vadd.f32 %v1696_v57, %v1684_v56 }
 0xaf3   :  { %v2242_v60 = vmul.f32 -1.442695, %v1697_v59  ;;  %v1839_v59 = vxor.u32 %v1837_v43, %v1835_v33  ;;  %v1914_v33 = vxor.u32 %v1913_v39, %v1912_v38 }
 0xaf5   :  { %2387 = vpow2.f32 %v2242_v60  ;;  %v1840_v60 = vxor.u32 %v1838_v50, %v1836_v42  ;;  %v1841_v61 = vmul.u32 2221713035, %v1839_v59  ;;  %v1915_v42 = vmul.u32 2221713035, %v1914_v33 }
 0xaf6   :  { %v1685_v63 = vpop.f32.mrf.mxu0 }
 0xaf7   :  { %v1698_v0 = vpop.f32.mrf.mxu1  ;;  %v1842_v1 = vmul.u32 2221713035, %v1840_v60  ;;  %v1843_v2 = vshrl.u32 %v1841_v61, 16  ;;  %v1916_v43 = vshrl.u32 %v1915_v42, 16 }
 0xaf9   :  { %v1844_v8 = vshrl.u32 %v1842_v1, 16 }
 0xafb   :  { %v2388_v53 = vpop.eup %2387 }
 0xafc   :  { %v1703_v6 = vadd.f32 1.0, %v2388_v53 }
 0xafe   :  { %2389 = vrcp.f32 %v1703_v6  ;;  %v1715_v14 = vand.u32 2147483648, %v1703_v6  ;;  %v1713_v18 = vand.u32 2147483647, %v1703_v6  ;;  %vm1709_vm1 = vweird.f32 %v1703_v6 }
 0xb00   :  { %v1716_v21 = vor.u32 1.1754944e-38, %v1715_v14  ;;  %vm1714_vm3 = vcmp.eq.f32.partialorder %v1713_v18, 8.507059e+37 }
 0xb04   :  { %v2390_v9 = vpop.eup %2389 }
 0xb05   :  { %v1705_v12 = vmul.f32 %v2390_v9, %v1703_v6  ;;  %vm1710_vm0 = vweird.f32 %v2390_v9 }
 0xb06   :  { %vm1711_vm2 = vmor %vm1709_vm1, %vm1710_vm0 }
 0xb07   :  { %v1706_v4 = vsub.f32 1.0, %v1705_v12  ;;  %v1845_v12 = vxor.u32 %v1843_v2, %v1841_v61 }
 0xb09   :  { %v1707_v15 = vmul.f32 %v2390_v9, %v1706_v4  ;;  %v1846_v4 = vxor.u32 %v1844_v8, %v1842_v1  ;;  %v1847_v13 = vshrl.u32 %v1845_v12, 8 }
 0xb0b   :  { %v1708_v19 = vadd.f32 %v2390_v9, %v1707_v15  ;;  %v1848_v15 = vshrl.u32 %v1846_v4, 8 }
 0xb0d   :  { %v1712_v26 = vsel %vm1711_vm2, %v2390_v9, %v1708_v19  ;;  %v1850_v10 = vcvt.s32.f32 %v1848_v15 }
 0xb0e   :  { %v1717_v3 = vsel %vm1714_vm3, %v1716_v21, %v1712_v26  ;;  %v1849_v26 = vcvt.s32.f32 %v1847_v13 }
 0xb0f   :  { %vm1742_vm4 = vcmp.lt.f32.partialorder %v1741_v20, %v1717_v3  ;;  %v1852_v40 = vmul.f32 5.9604645e-08, %v1850_v10 }
 0xb10   :  { %vm2244_vm5 = vmpackc.low %vm1742_vm4, %vm1742_vm4  ;;  %v1851_v29 = vmul.f32 5.9604645e-08, %v1849_v26 }
 0xb11   :  { %2245 = vmatmul.msk.bf16.vlgmr.msra.gmra.mxu2 %vm2244_vm5, %v2520_v48  ;;  %2247 = vmatmul.msk.bf16.vlgmr.msra.gmra.mxu3 %vm2244_vm5, %v2520_v48 }
 0xb94   :  { %v1755_v44 = vpop.f32.mrf.mxu2  ;;  %v1768_v45 = vpop.f32.mrf.mxu3 }
 0xb95   :  { %v1756_v52 = vadd.f32 %v1755_v44, %v2711_v24  ;;  %v1769_v56 = vadd.f32 %v1768_v45, %v2713_v25  ;;  %v1917_v44 = vxor.u32 %v1916_v43, %v1915_v42 }
 0xb97   :  { %v2248_v57 = vmul.f32 -1.442695, %v1756_v52  ;;  %v2249_v58 = vmul.f32 -1.442695, %v1769_v56  ;;  %v1918_v45 = vshrl.u32 %v1917_v44, 16 }
 0xb99   :  { %2391 = vpow2.f32 %v2248_v57  ;;  %v1919_v50 = vxor.u32 %v1918_v45, %v1917_v44 }
 0xb9a   :  { %2393 = vpow2.f32 %v2249_v58 }
 0xb9b   :  { %v1920_v52 = vmul.u32 2146121005, %v1919_v50 }
 0xb9c   :  { %v1757_v63 = vpop.f32.mrf.mxu2  ;;  %v1770_v0 = vpop.f32.mrf.mxu3 }
 0xb9d   :  { %v1921_v59 = vshrl.u32 %v1920_v52, 15 }
 0xb9f   :  { %v2392_v53 = vpop.eup %2391  ;;  %v1922_v61 = vxor.u32 %v1921_v59, %v1920_v52 }
 0xba0   :  { %v2394_v6 = vpop.eup %2393  ;;  %v1778_v7 = vadd.f32 1.0, %v2392_v53 }
 0xba1   :  { %v1779_v9 = vadd.f32 1.0, %v2394_v6  ;;  %v1923_v1 = vmul.u32 2221713035, %v1922_v61 }
 0xba2   :  { %2395 = vrcp.f32 %v1778_v7  ;;  %v1791_v5 = vand.u32 2147483648, %v1778_v7  ;;  %v1789_v16 = vand.u32 2147483647, %v1778_v7  ;;  %vm1785_vm8 = vweird.f32 %v1778_v7 }
 0xba3   :  { %2397 = vrcp.f32 %v1779_v9  ;;  %v1806_v17 = vand.u32 2147483648, %v1779_v9  ;;  %v1804_v23 = vand.u32 2147483647, %v1779_v9  ;;  %vm1800_vm10 = vweird.f32 %v1779_v9 }
 0xba4   :  { %v1792_v34 = vor.u32 1.1754944e-38, %v1791_v5  ;;  %vm1790_vm11 = vcmp.eq.f32.partialorder %v1789_v16, 8.507059e+37  ;;  %v1924_v2 = vshrl.u32 %v1923_v1, 16 }
 0xba5   :  { %v1807_v46 = vor.u32 1.1754944e-38, %v1806_v17  ;;  %vm1805_vm13 = vcmp.eq.f32.partialorder %v1804_v23, 8.507059e+37 }
 0xba8   :  { %v2396_v14 = vpop.eup %2395 }
 0xba9   :  { %v2398_v18 = vpop.eup %2397  ;;  %v1781_v19 = vmul.f32 %v2396_v14, %v1778_v7  ;;  %vm1786_vm6 = vweird.f32 %v2396_v14  ;;  %v1925_v7 = vxor.u32 %v1924_v2, %v1923_v1 }
 0xbaa   :  { %v1796_v20 = vmul.f32 %v2398_v18, %v1779_v9  ;;  %vm1801_vm7 = vweird.f32 %v2398_v18  ;;  %vm1787_vm9 = vmor %vm1785_vm8, %vm1786_vm6 }
 0xbab   :  { %v1782_v21 = vsub.f32 1.0, %v1781_v19  ;;  %vm1802_vm12 = vmor %vm1800_vm10, %vm1801_vm7  ;;  %v1926_v8 = vshrl.u32 %v1925_v7, 8 }
 0xbac   :  { %v1797_v3 = vsub.f32 1.0, %v1796_v20 }
 0xbad   :  { %v1783_v11 = vmul.f32 %v2396_v14, %v1782_v21  ;;  %v1927_v13 = vcvt.s32.f32 %v1926_v8 }
 0xbae   :  { %v1798_v22 = vmul.f32 %v2398_v18, %v1797_v3  ;;  %v1999_v3 = vadd.s32 38912, %v2700_v49 }
 0xbaf   :  { %v1784_v28 = vadd.f32 %v2396_v14, %v1783_v11  ;;  %v1928_v19 = vmul.f32 5.9604645e-08, %v1927_v13 }
 0xbb0   :  { %v1799_v35 = vadd.f32 %v2398_v18, %v1798_v22  ;;  %v2000_v5 = vadd.s32 %v1999_v3, %v2671_v54  ;;  %v2001_v10 = vadd.s32 %v1999_v3, %v2704_v51 }
 0xbb1   :  { %v1788_v41 = vsel %vm1787_vm9, %v2396_v14, %v1784_v28 }
 0xbb2   :  { %v1793_v27 = vsel %vm1790_vm11, %v1792_v34, %v1788_v41  ;;  %v1803_v47 = vsel %vm1802_vm12, %v2398_v18, %v1799_v35  ;;  %v2002_v11 = vshrl.u32 %v2000_v5, 16  ;;  %v2003_v16 = vshrl.u32 %v2001_v10, 16 }
 0xbb3   :  { %vm1853_vm14 = vcmp.lt.f32.partialorder %v1851_v29, %v1793_v27  ;;  %v1808_v30 = vsel %vm1805_vm13, %v1807_v46, %v1803_v47 }
 0xbb4   :  { %vm2252_vm15 = vmpackc.low %vm1853_vm14, %vm1853_vm14  ;;  %vm1854_vm0 = vcmp.lt.f32.partialorder %v1852_v40, %v1808_v30  ;;  %v2004_v17 = vxor.u32 %v2002_v11, %v2000_v5  ;;  %v2005_v22 = vxor.u32 %v2003_v16, %v2001_v10 }
 0xbb5   :  { %2253 = vmatmul.msk.bf16.vlgmr.msrb.gmra.mxu2 %vm2252_vm15, %v2520_v48  ;;  %vm2254_vm1 = vmpackc.low %vm1854_vm0, %vm1854_vm0 }
 0xbb6   :  { %2255 = vmatmul.msk.bf16.vlgmr.msrb.gmra.mxu3 %vm2254_vm1, %v2520_v48  ;;  %v2006_v23 = vmul.u32 2146121005, %v2004_v17  ;;  %v2007_v28 = vmul.u32 2146121005, %v2005_v22 }
 0xbb8   :  { %v2008_v29 = vshrl.u32 %v2006_v23, 15  ;;  %v2009_v34 = vshrl.u32 %v2007_v28, 15 }
 0xbba   :  { %v2010_v35 = vxor.u32 %v2008_v29, %v2006_v23  ;;  %v2011_v40 = vxor.u32 %v2009_v34, %v2007_v28  ;;  %v2522_v29 = vmov 0.0  }
 0xbbc   :  { %v2012_v41 = vmul.u32 2221713035, %v2010_v35  ;;  %v2013_v46 = vmul.u32 2221713035, %v2011_v40 }
 0xbbe   :  { %v2014_v27 = vshrl.u32 %v2012_v41, 16 }
 0xbc0   :  { %v2016_v47 = vxor.u32 %v2014_v27, %v2012_v41 }
 0xbc2   :  { %v2018_v30 = vshrl.u32 %v2016_v47, 16 }
 0xbc4   :  { %v2020_v31 = vxor.u32 %v2018_v30, %v2016_v47 }
 0xbc6   :  { %v2022_v32 = vmul.u32 2146121005, %v2020_v31 }
 0xbc8   :  { %v2024_v37 = vshrl.u32 %v2022_v32, 15 }
 0xbca   :  { %v2026_v50 = vxor.u32 %v2024_v37, %v2022_v32 }
 0xc38   :  { %v1870_v56 = vpop.f32.mrf.mxu2 }
 0xc39   :  { %v1871_v57 = vadd.f32 %v2959_v62, %v1870_v56  ;;  %v1883_v58 = vpop.f32.mrf.mxu3  ;;  %v2028_v56 = vmul.u32 2221713035, %v2026_v50 }
 0xc3b   :  { %v1884_v60 = vadd.f32 %v1883_v58, %v1871_v57 }
 0xc3d   :  { %v2256_v55 = vmul.f32 -1.442695, %v1884_v60 }
 0xc3f   :  { %2399 = vpow2.f32 %v2256_v55  ;;  %v2030_v55 = vshrl.u32 %v2028_v56, 16 }
 0xc40   :  { %v1872_v63 = vpop.f32.mrf.mxu2 }
 0xc41   :  { %v1885_v0 = vpop.f32.mrf.mxu3 }
 0xc45   :  { %v2400_v53 = vpop.eup %2399 }
 0xc46   :  { %v1890_v6 = vadd.f32 1.0, %v2400_v53 }
 0xc48   :  { %2401 = vrcp.f32 %v1890_v6  ;;  %v1902_v62 = vand.u32 2147483648, %v1890_v6  ;;  %v1900_v15 = vand.u32 2147483647, %v1890_v6  ;;  %vm1896_vm3 = vweird.f32 %v1890_v6 }
 0xc4a   :  { %v1903_v20 = vor.u32 1.1754944e-38, %v1902_v62  ;;  %vm1901_vm5 = vcmp.eq.f32.partialorder %v1900_v15, 8.507059e+37 }
 0xc4e   :  { %v2402_v9 = vpop.eup %2401 }
 0xc4f   :  { %v1892_v12 = vmul.f32 %v2402_v9, %v1890_v6  ;;  %vm1897_vm2 = vweird.f32 %v2402_v9 }
 0xc50   :  { %vm1898_vm4 = vmor %vm1896_vm3, %vm1897_vm2 }
 0xc51   :  { %v1893_v4 = vsub.f32 1.0, %v1892_v12 }
 0xc53   :  { %v1894_v14 = vmul.f32 %v2402_v9, %v1893_v4 }
 0xc55   :  { %v1895_v18 = vadd.f32 %v2402_v9, %v1894_v14 }
 0xc57   :  { %v1899_v21 = vsel %vm1898_vm4, %v2402_v9, %v1895_v18 }
 0xc58   :  { %v1904_v26 = vsel %vm1901_vm5, %v1903_v20, %v1899_v21 }
 0xc59   :  { %vm1929_vm6 = vcmp.lt.f32.partialorder %v1928_v19, %v1904_v26 }
 0xc5a   :  { %vm2258_vm7 = vmpackc.low %vm1929_vm6, %vm1929_vm6 }
 0xc5b   :  { %2259 = vmatmul.msk.bf16.vlgmr.msrb.gmra.mxu0 %vm2258_vm7, %v2520_v48  ;;  %2261 = vmatmul.msk.bf16.vlgmr.msrb.gmra.mxu1 %vm2258_vm7, %v2520_v48  ;;  %v2015_v48 = vshrl.u32 %v2013_v46, 16 }
 0xc5d   :  { %v2017_v49 = vxor.u32 %v2015_v48, %v2013_v46 }
 0xc5f   :  { %v2019_v54 = vshrl.u32 %v2017_v49, 16 }
 0xc61   :  { %v2021_v51 = vxor.u32 %v2019_v54, %v2017_v49 }
 0xc63   :  { %v2023_v36 = vmul.u32 2146121005, %v2021_v51 }
 0xc65   :  { %v2025_v33 = vshrl.u32 %v2023_v36, 15 }
 0xc67   :  { %v2027_v52 = vxor.u32 %v2025_v33, %v2023_v36 }
 0xc69   :  { %v2029_v59 = vmul.u32 2221713035, %v2027_v52 }
 0xc6b   :  { %v2031_v0 = vshrl.u32 %v2029_v59, 16 }
 0xcd8   :  { %v1942_v38 = vpop.f32.mrf.mxu0  ;;  %v1955_v39 = vpop.f32.mrf.mxu1 }
 0xcd9   :  { %v1943_v42 = vadd.f32 %v1942_v38, %v2711_v24  ;;  %v1956_v43 = vadd.f32 %v1955_v39, %v2713_v25  ;;  %v2032_v24 = vxor.u32 %v2030_v55, %v2028_v56  ;;  %v2033_v25 = vxor.u32 %v2031_v0, %v2029_v59 }
 0xcdb   :  { %v2262_v44 = vmul.f32 -1.442695, %v1943_v42  ;;  %v2263_v45 = vmul.f32 -1.442695, %v1956_v43  ;;  %v2034_v53 = vshrl.u32 %v2032_v24, 8  ;;  %v2035_v6 = vshrl.u32 %v2033_v25, 8 }
 0xcdd   :  { %2403 = vpow2.f32 %v2262_v44  ;;  %v2036_v4 = vcvt.s32.f32 %v2034_v53  ;;  %v2037_v14 = vcvt.s32.f32 %v2035_v6 }
 0xcde   :  { %2405 = vpow2.f32 %v2263_v45 }
 0xcdf   :  { %v2038_v3 = vmul.f32 5.9604645e-08, %v2036_v4  ;;  %v2039_v11 = vmul.f32 5.9604645e-08, %v2037_v14 }
 0xce0   :  { %v1944_v57 = vpop.f32.mrf.mxu0  ;;  %v1957_v58 = vpop.f32.mrf.mxu1 }
 0xce3   :  { %v2404_v60 = vpop.eup %2403 }
 0xce4   :  { %v2406_v61 = vpop.eup %2405  ;;  %v1965_v63 = vadd.f32 1.0, %v2404_v60 }
 0xce5   :  { %v1966_v1 = vadd.f32 1.0, %v2406_v61 }
 0xce6   :  { %2407 = vrcp.f32 %v1965_v63  ;;  %v1978_v62 = vand.u32 2147483648, %v1965_v63  ;;  %v1976_v18 = vand.u32 2147483647, %v1965_v63  ;;  %vm1972_vm10 = vweird.f32 %v1965_v63 }
 0xce7   :  { %2409 = vrcp.f32 %v1966_v1  ;;  %v1993_v19 = vand.u32 2147483648, %v1966_v1  ;;  %v1991_v21 = vand.u32 2147483647, %v1966_v1  ;;  %vm1987_vm12 = vweird.f32 %v1966_v1 }
 0xce8   :  { %v1979_v5 = vor.u32 1.1754944e-38, %v1978_v62  ;;  %vm1977_vm13 = vcmp.eq.f32.partialorder %v1976_v18, 8.507059e+37 }
 0xce9   :  { %v1994_v17 = vor.u32 1.1754944e-38, %v1993_v19  ;;  %vm1992_vm15 = vcmp.eq.f32.partialorder %v1991_v21, 8.507059e+37 }
 0xcec   :  { %v2408_v2 = vpop.eup %2407 }
 0xced   :  { %v2410_v7 = vpop.eup %2409  ;;  %v1968_v8 = vmul.f32 %v2408_v2, %v1965_v63  ;;  %vm1973_vm8 = vweird.f32 %v2408_v2 }
 0xcee   :  { %v1983_v9 = vmul.f32 %v2410_v7, %v1966_v1  ;;  %vm1988_vm9 = vweird.f32 %v2410_v7  ;;  %vm1974_vm11 = vmor %vm1972_vm10, %vm1973_vm8 }
 0xcef   :  { %v1969_v12 = vsub.f32 1.0, %v1968_v8  ;;  %vm1989_vm14 = vmor %vm1987_vm12, %vm1988_vm9 }
 0xcf0   :  { %v1984_v13 = vsub.f32 1.0, %v1983_v9 }
 0xcf1   :  { %v1970_v15 = vmul.f32 %v2408_v2, %v1969_v12 }
 0xcf2   :  { %v1985_v20 = vmul.f32 %v2410_v7, %v1984_v13 }
 0xcf3   :  { %v1971_v26 = vadd.f32 %v2408_v2, %v1970_v15 }
 0xcf4   :  { %v1986_v10 = vadd.f32 %v2410_v7, %v1985_v20 }
 0xcf5   :  { %v1975_v16 = vsel %vm1974_vm11, %v2408_v2, %v1971_v26 }
 0xcf6   :  { %v1980_v22 = vsel %vm1977_vm13, %v1979_v5, %v1975_v16  ;;  %v1990_v23 = vsel %vm1989_vm14, %v2410_v7, %v1986_v10 }
 0xcf7   :  { %v1995_v28 = vsel %vm1992_vm15, %v1994_v17, %v1990_v23  ;;  %vm2040_vm0 = vcmp.lt.f32.partialorder %v2038_v3, %v1980_v22 }
 0xcf8   :  { %vm2041_vm1 = vcmp.lt.f32.partialorder %v2039_v11, %v1995_v28  ;;  %v2264_v34 = vsel %vm2040_vm0, 1.0, %v2522_v29 }
 0xcf9   :  { %v2265_v35 = vsel %vm2041_vm1, 1.0, %v2522_v29  ;;  %2046 = vst [vmem:[#allocation8] sm:$0xff] %v2264_v34 }
 0xcfa   :  { %2047 = vst [vmem:[#allocation8 + $0x8] sm:$0xff] %v2265_v35 }
 0xcfb   :  { %2058 = dma.vmem_to_hbm [thread:$0]  %s2054_s5, 256, %s2056_s8, [#allocation4]  }
 0xcfc   :  { %2513 = dma.done.wait [#allocation4], 256  }
 0xcfd   :  { %2514 = vsyncadd [#allocation4], 4294967040 }
 0xcfe   :  { %2063 = vsyncpa [#allocation3], 1 }
 0xcff   :  { %2064 = vsyncpa [#allocation6], 1 }
 0xd00   :  { %2065 = vsyncpa [#allocation4], 1 }

</bundles_post_ra>
